<compile_context>
chip_gen: v6e
topology: v6e:2x2x1
jax: 0.10.0
libtpu: 0.0.40
codegen_flags: <defaults>
</compile_context>

<pallas_src>
import functools

import jax
import jax.numpy as jnp
from jax.experimental import pallas as pl
from jax.experimental.pallas import tpu as pltpu


COMPUTE_DTYPE = jnp.bfloat16      # operand storage; accumulation is always f32


def _vmem_limit_bytes():
    try:
        cap = pltpu.get_tpu_info().vmem_capacity_bytes
    except Exception:
        cap = 128 << 20
    return int(min(cap * 3 // 4, 100 << 20))


_VMEM_LIMIT = _vmem_limit_bytes()
_ROW_CAP = 512 if _VMEM_LIMIT >= (64 << 20) else 256   # smaller tiles on 64MiB parts


def _cparams(n_parallel_axes):
    return pltpu.CompilerParams(
        dimension_semantics=("parallel",) * n_parallel_axes,
        vmem_limit_bytes=_VMEM_LIMIT)


def _row_tile(m):
    for t in (_ROW_CAP, 256, 128):
        if t <= _ROW_CAP and m % t == 0:
            return t
    return m


def _seq_tile(t):
    for c in (256, 128):
        if t % c == 0:
            return c
    return t


# ----------------------------------------------------------------------------- kernels

def _layernorm_f32(x, g, b, eps):
    mu = jnp.mean(x, axis=-1, keepdims=True)
    xc = x - mu
    var = jnp.mean(xc * xc, axis=-1, keepdims=True)
    return xc * jax.lax.rsqrt(var + eps) * g + b


def ln_qkv_kernel(x_ref, g_ref, b_ref, w_ref, bias_ref, q_ref, kv_ref, *, eps, d_model):
    # LayerNorm1 + one fused (D, 3D) projection; split into q / kv on the store side.
    x = x_ref[...].astype(jnp.float32)
    xn = _layernorm_f32(x, g_ref[...].astype(jnp.float32),
                        b_ref[...].astype(jnp.float32), eps)
    y = jnp.dot(xn.astype(w_ref.dtype), w_ref[...],
                preferred_element_type=jnp.float32) + bias_ref[...].astype(jnp.float32)
    q_ref[...] = y[:, :d_model].astype(q_ref.dtype)
    kv_ref[...] = y[:, d_model:].astype(kv_ref.dtype)


def ln_matmul_kernel(x_ref, g_ref, b_ref, w_ref, bias_ref, o_ref, *, eps):
    x = x_ref[...].astype(jnp.float32)
    xn = _layernorm_f32(x, g_ref[...].astype(jnp.float32),
                        b_ref[...].astype(jnp.float32), eps)
    y = jnp.dot(xn.astype(w_ref.dtype), w_ref[...],
                preferred_element_type=jnp.float32) + bias_ref[...].astype(jnp.float32)
    o_ref[...] = y.astype(o_ref.dtype)


def matmul_bias_kernel(x_ref, w_ref, bias_ref, o_ref):
    y = jnp.dot(x_ref[...], w_ref[...],
                preferred_element_type=jnp.float32) + bias_ref[...].astype(jnp.float32)
    o_ref[...] = y.astype(o_ref.dtype)


def matmul_residual_kernel(x_ref, w_ref, bias_ref, res_ref, o_ref):
    y = jnp.dot(x_ref[...], w_ref[...],
                preferred_element_type=jnp.float32) + bias_ref[...].astype(jnp.float32)
    o_ref[...] = (res_ref[...].astype(jnp.float32) + y).astype(o_ref.dtype)


def attention_kernel(q_ref, kv_ref, mask_ref, ctx_ref, attn_ref, *, heads, dk):
    # q_ref : (tq, H*dk)   -- already scaled by 1/sqrt(dk) (folded into the Q weight)
    # kv_ref: (Tk, 2*H*dk)
    # mask  : (tq, Tk) int8, 1 = keep / 0 = mask   -> masked_fill(-1e9) in-kernel
    q = q_ref[...]
    kv = kv_ref[...]
    keep = mask_ref[...].astype(jnp.float32) != 0.0
    d = heads * dk
    ctx_parts = []
    # static unroll (heads is small in this config); see fori_loop TODO above.
    for h in range(heads):
        lo = h * dk
        qh = q[:, lo:lo + dk]
        kh = kv[:, lo:lo + dk]
        vh = kv[:, d + lo:d + lo + dk]
        # q @ k^T without materializing a transpose (bf16 MXU, f32 accumulation)
        s = jax.lax.dot_general(qh, kh, (((1,), (1,)), ((), ())),
                                preferred_element_type=jnp.float32)
        s = jnp.where(keep, s, -1e9)
        s = s - jnp.max(s, axis=-1, keepdims=True)
        p = jnp.exp(s)
        p = p / jnp.sum(p, axis=-1, keepdims=True)   # exact divide (torch parity)
        attn_ref[h] = p.astype(attn_ref.dtype)
        ctx_parts.append(jnp.dot(p.astype(vh.dtype), vh,
                                 preferred_element_type=jnp.float32))
    # one lane-dense full-width store instead of H dk-wide masked stores
    ctx_ref[...] = jnp.concatenate(ctx_parts, axis=-1).astype(ctx_ref.dtype)


def ff_conv1_kernel(x_ref, g_ref, b_ref, w_ref, bias_ref, o_ref, pad_ref, *, eps, ksize):
    # LayerNorm3 + Conv1d(d_model->d_ff, k) + ReLU.  Halo built in VMEM scratch
    # (no XLA-side jnp.pad HBM round trip); conv = k shifted matmuls.
    T, D = x_ref.shape
    pad = (ksize - 1) // 2
    x = x_ref[...].astype(jnp.float32)
    xn = _layernorm_f32(x, g_ref[...].astype(jnp.float32),
                        b_ref[...].astype(jnp.float32), eps)
    if pad:
        pad_ref[pl.ds(0, pad), :] = jnp.zeros((pad, D), pad_ref.dtype)
        pad_ref[pl.ds(pad + T, pad), :] = jnp.zeros((pad, D), pad_ref.dtype)
    pad_ref[pl.ds(pad, T), :] = xn.astype(pad_ref.dtype)
    dff = o_ref.shape[-1]
    acc = jnp.zeros((T, dff), jnp.float32)
    for j in range(ksize):
        acc = acc + jnp.dot(pad_ref[pl.ds(j, T), :], w_ref[j],
                            preferred_element_type=jnp.float32)
    acc = acc + bias_ref[...].astype(jnp.float32)
    o_ref[...] = jnp.maximum(acc, 0.0).astype(o_ref.dtype)


def ff_conv2_kernel(h_ref, w_ref, bias_ref, res_ref, o_ref, pad_ref, *, ksize):
    # Conv1d(d_ff->d_model, k) + bias + residual add (halo via VMEM scratch).
    T, dff = h_ref.shape
    pad = (ksize - 1) // 2
    if pad:
        pad_ref[pl.ds(0, pad), :] = jnp.zeros((pad, dff), pad_ref.dtype)
        pad_ref[pl.ds(pad + T, pad), :] = jnp.zeros((pad, dff), pad_ref.dtype)
    pad_ref[pl.ds(pad, T), :] = h_ref[...]
    D = o_ref.shape[-1]
    acc = jnp.zeros((T, D), jnp.float32)
    for j in range(ksize):
        acc = acc + jnp.dot(pad_ref[pl.ds(j, T), :], w_ref[j],
                            preferred_element_type=jnp.float32)
    acc = acc + bias_ref[...].astype(jnp.float32)
    o_ref[...] = (res_ref[...].astype(jnp.float32) + acc).astype(o_ref.dtype)


# ----------------------------------------------------------------------------- wrappers

def ln_qkv(x2d, g, b, wqkv, bqkv, d_model, eps=1e-5):
    M, D = x2d.shape
    N3 = wqkv.shape[1]
    tm = _row_tile(M)
    rep = lambda i: (0, 0)
    return pl.pallas_call(
        functools.partial(ln_qkv_kernel, eps=eps, d_model=d_model),
        grid=(pl.cdiv(M, tm),),
        in_specs=[
            pl.BlockSpec((tm, D), lambda i: (i, 0)),
            pl.BlockSpec((1, D), rep), pl.BlockSpec((1, D), rep),
            pl.BlockSpec((D, N3), rep), pl.BlockSpec((1, N3), rep),
        ],
        out_specs=[
            pl.BlockSpec((tm, d_model), lambda i: (i, 0)),
            pl.BlockSpec((tm, N3 - d_model), lambda i: (i, 0)),
        ],
        out_shape=[jax.ShapeDtypeStruct((M, d_model), x2d.dtype),
                   jax.ShapeDtypeStruct((M, N3 - d_model), x2d.dtype)],
        compiler_params=_cparams(1),
    )(x2d, g.reshape(1, D), b.reshape(1, D), wqkv, bqkv.reshape(1, N3))


def ln_matmul(x2d, g, b, w, bias, eps=1e-5):
    M, D = x2d.shape
    N = w.shape[1]
    tm = _row_tile(M)
    rep = lambda i: (0, 0)
    return pl.pallas_call(
        functools.partial(ln_matmul_kernel, eps=eps),
        grid=(pl.cdiv(M, tm),),
        in_specs=[
            pl.BlockSpec((tm, D), lambda i: (i, 0)),
            pl.BlockSpec((1, D), rep), pl.BlockSpec((1, D), rep),
            pl.BlockSpec((D, N), rep), pl.BlockSpec((1, N), rep),
        ],
        out_specs=pl.BlockSpec((tm, N), lambda i: (i, 0)),
        out_shape=jax.ShapeDtypeStruct((M, N), x2d.dtype),
        compiler_params=_cparams(1),
    )(x2d, g.reshape(1, D), b.reshape(1, D), w, bias.reshape(1, N))


def matmul_bias(x2d, w, bias):
    M, K = x2d.shape
    N = w.shape[1]
    tm = _row_tile(M)
    rep = lambda i: (0, 0)
    return pl.pallas_call(
        matmul_bias_kernel,
        grid=(pl.cdiv(M, tm),),
        in_specs=[
            pl.BlockSpec((tm, K), lambda i: (i, 0)),
            pl.BlockSpec((K, N), rep), pl.BlockSpec((1, N), rep),
        ],
        out_specs=pl.BlockSpec((tm, N), lambda i: (i, 0)),
        out_shape=jax.ShapeDtypeStruct((M, N), x2d.dtype),
        compiler_params=_cparams(1),
    )(x2d, w, bias.reshape(1, N))


def matmul_residual(x2d, w, bias, res2d):
    M, K = x2d.shape
    N = w.shape[1]
    tm = _row_tile(M)
    rep = lambda i: (0, 0)
    return pl.pallas_call(
        matmul_residual_kernel,
        grid=(pl.cdiv(M, tm),),
        in_specs=[
            pl.BlockSpec((tm, K), lambda i: (i, 0)),
            pl.BlockSpec((K, N), rep), pl.BlockSpec((1, N), rep),
            pl.BlockSpec((tm, N), lambda i: (i, 0)),
        ],
        out_specs=pl.BlockSpec((tm, N), lambda i: (i, 0)),
        out_shape=jax.ShapeDtypeStruct((M, N), res2d.dtype),
        compiler_params=_cparams(1),
    )(x2d, w, bias.reshape(1, N), res2d)


def attention(q, kv, keep_mask_i8, *, heads):
    # q: (B, Tq, D) packed heads (pre-scaled); kv: (B, Tk, 2D); mask: (B, Tq, Tk) int8.
    B, Tq, D = q.shape
    Tk = kv.shape[1]
    dk = D // heads
    tq = _seq_tile(Tq)
    ctx, attn = pl.pallas_call(
        functools.partial(attention_kernel, heads=heads, dk=dk),
        grid=(B, pl.cdiv(Tq, tq)),
        in_specs=[
            pl.BlockSpec((None, tq, D), lambda b, i: (b, i, 0)),
            pl.BlockSpec((None, Tk, 2 * D), lambda b, i: (b, 0, 0)),
            pl.BlockSpec((None, tq, Tk), lambda b, i: (b, i, 0)),
        ],
        out_specs=[
            pl.BlockSpec((None, tq, D), lambda b, i: (b, i, 0)),
            pl.BlockSpec((None, heads, tq, Tk), lambda b, i: (b, 0, i, 0)),
        ],
        out_shape=[
            jax.ShapeDtypeStruct((B, Tq, D), q.dtype),
            jax.ShapeDtypeStruct((B, heads, Tq, Tk), q.dtype),   # bf16 attn weights
        ],
        compiler_params=_cparams(2),
    )(q, kv, keep_mask_i8)
    return ctx, attn


def ff_conv1(x, g, b, w1, b1, *, ksize, eps=1e-5):
    B, T, D = x.shape
    dff = w1.shape[-1]
    pad = (ksize - 1) // 2
    return pl.pallas_call(
        functools.partial(ff_conv1_kernel, eps=eps, ksize=ksize),
        grid=(B,),
        in_specs=[
            pl.BlockSpec((None, T, D), lambda i: (i, 0, 0)),
            pl.BlockSpec((1, D), lambda i: (0, 0)),
            pl.BlockSpec((1, D), lambda i: (0, 0)),
            pl.BlockSpec((ksize, D, dff), lambda i: (0, 0, 0)),
            pl.BlockSpec((1, dff), lambda i: (0, 0)),
        ],
        out_specs=pl.BlockSpec((None, T, dff), lambda i: (i, 0, 0)),
        out_shape=jax.ShapeDtypeStruct((B, T, dff), x.dtype),
        scratch_shapes=[pltpu.VMEM((T + 2 * pad, D), x.dtype)],
        compiler_params=_cparams(1),
    )(x, g.reshape(1, D), b.reshape(1, D), w1, b1.reshape(1, dff))


def ff_conv2(h, w2, b2, res, *, ksize, out_dtype=None):
    B, T, dff = h.shape
    D = w2.shape[-1]
    pad = (ksize - 1) // 2
    if out_dtype is None:
        out_dtype = h.dtype
    return pl.pallas_call(
        functools.partial(ff_conv2_kernel, ksize=ksize),
        grid=(B,),
        in_specs=[
            pl.BlockSpec((None, T, dff), lambda i: (i, 0, 0)),
            pl.BlockSpec((ksize, dff, D), lambda i: (0, 0, 0)),
            pl.BlockSpec((1, D), lambda i: (0, 0)),
            pl.BlockSpec((None, T, D), lambda i: (i, 0, 0)),
        ],
        out_specs=pl.BlockSpec((None, T, D), lambda i: (i, 0, 0)),
        out_shape=jax.ShapeDtypeStruct((B, T, D), out_dtype),
        scratch_shapes=[pltpu.VMEM((T + 2 * pad, dff), h.dtype)],
        compiler_params=_cparams(1),
    )(h, w2, b2.reshape(1, D), res)


# ----------------------------------------------------------------------------- layer

def decoder_layer(params, x, e_outputs, src_mask, trg_mask, *, heads, ksize,
                  compute_dtype=COMPUTE_DTYPE):
    # Dropout layers are identity (eval mode).  multi_speaker branch disabled.
    # Set compute_dtype=jnp.float32 for bit-closer parity with the PyTorch module.
    B, T, D = x.shape
    S = e_outputs.shape[1]
    dk = D // heads
    scale = 1.0 / (dk ** 0.5)
    cdt = compute_dtype
    out_dtype = x.dtype

    x2d = x.astype(cdt).reshape(B * T, D)
    e2d = e_outputs.astype(cdt).reshape(B * S, D)

    # boolean keep-masks as int8; the -1e9 masked_fill happens inside the kernel
    trg_keep = (trg_mask != 0).astype(jnp.int8)
    src_keep = (src_mask != 0).astype(jnp.int8)

    # ---- self-attention (LN1 fused with the single (D,3D) QKV projection;
    #      softmax scale folded into the Q weight; residual fused into Wo)
    p1 = params["attn1"]
    wqkv1 = jnp.concatenate([p1["wq"] * scale, p1["wkv"]], axis=1).astype(cdt)
    bqkv1 = jnp.concatenate([p1["bq"] * scale, p1["bkv"]], axis=0)
    q, kv = ln_qkv(x2d, params["ln1_g"], params["ln1_b"], wqkv1, bqkv1, D)
    ctx, attn_1 = attention(q.reshape(B, T, D), kv.reshape(B, T, 2 * D), trg_keep,
                            heads=heads)
    x2d = matmul_residual(ctx.reshape(B * T, D), p1["wo"].astype(cdt), p1["bo"], x2d)

    # ---- cross-attention (LN2 fused into the scaled Q projection; K,V from e_outputs)
    p2 = params["attn2"]
    q = ln_matmul(x2d, params["ln2_g"], params["ln2_b"],
                  (p2["wq"] * scale).astype(cdt), p2["bq"] * scale)
    kv = matmul_bias(e2d, p2["wkv"].astype(cdt), p2["bkv"])
    ctx, attn_2 = attention(q.reshape(B, T, D), kv.reshape(B, S, 2 * D), src_keep,
                            heads=heads)
    x2d = matmul_residual(ctx.reshape(B * T, D), p2["wo"].astype(cdt), p2["bo"], x2d)

    # ---- feed-forward (LN3 + conv1 + ReLU fused; conv2 + residual fused)
    # TODO(synk): multi_speaker path (Linear/Embedding + softsign) omitted.
    x3 = x2d.reshape(B, T, D)
    h = ff_conv1(x3, params["ln3_g"], params["ln3_b"],
                 params["ff"]["w1"].astype(cdt), params["ff"]["b1"], ksize=ksize)
    y = ff_conv2(h, params["ff"]["w2"].astype(cdt), params["ff"]["b2"], x3,
                 ksize=ksize, out_dtype=out_dtype)

    return y, attn_1, attn_2


# ----------------------------------------------------------------------------- params

def init_params(key, d_model, ksize, d_ff):
    def dense(k, shape, scl=0.05):
        return (scl * jax.random.normal(k, shape)).astype(jnp.float32)

    def mha(k):
        ks = jax.random.split(k, 6)
        return {
            "wq": dense(ks[0], (d_model, d_model)), "bq": dense(ks[1], (d_model,)),
            "wkv": dense(ks[2], (d_model, 2 * d_model)), "bkv": dense(ks[3], (2 * d_model,)),
            "wo": dense(ks[4], (d_model, d_model)), "bo": dense(ks[5], (d_model,)),
        }

    keys = jax.random.split(key, 6)
    ones = jnp.ones((d_model,), jnp.float32)
    zeros = jnp.zeros((d_model,), jnp.float32)
    return {
        "ln1_g": ones, "ln1_b": zeros,
        "ln2_g": ones, "ln2_b": zeros,
        "ln3_g": ones, "ln3_b": zeros,
        "attn1": mha(keys[0]),
        "attn2": mha(keys[1]),
        "ff": {
            # conv weights stored as (ksize, in_ch, out_ch) for shifted-matmul accumulation
            "w1": dense(keys[2], (ksize, d_model, d_ff)), "b1": dense(keys[3], (d_ff,)),
            "w2": dense(keys[4], (ksize, d_ff, d_model)), "b2": dense(keys[5], (d_model,)),
        },
    }


# ----------------------------------------------------------------------------- main

if __name__ == "__main__":
    d_model, heads, ksize, d_ff = 32, 4, 3, 64
    B, T, S = 2, 8, 16                                # decoder len T, encoder len S

    key = jax.random.PRNGKey(0)
    kx, ke, kp = jax.random.split(key, 3)
    x = jax.random.normal(kx, (B, T, d_model), jnp.float32)
    e_outputs = jax.random.normal(ke, (B, S, d_model), jnp.float32)

    # trg_mask: causal (B, T, T); src_mask: all-ones (B, T, S)  (1=keep, 0=mask)
    trg_mask = jnp.broadcast_to(jnp.tril(jnp.ones((T, T), jnp.float32)), (B, T, T))
    src_mask = jnp.ones((B, T, S), jnp.float32)

    params = init_params(kp, d_model, ksize, d_ff)

    fwd = jax.jit(functools.partial(decoder_layer, heads=heads, ksize=ksize))
    y, attn_1, attn_2 = fwd(params, x, e_outputs, src_mask, trg_mask)
    jax.block_until_ready((y, attn_1, attn_2))

    assert y.shape == (B, T, d_model)
    assert attn_1.shape == (B, heads, T, T)
    assert attn_2.shape == (B, heads, T, S)
    assert jnp.all(jnp.isfinite(y.astype(jnp.float32)))
    assert jnp.all(jnp.isfinite(attn_1.astype(jnp.float32)))
    assert jnp.all(jnp.isfinite(attn_2.astype(jnp.float32)))
    print("KERNEL_OK")
</pallas_src>

<mosaic_0001>
module attributes {stable_mosaic.version = 11 : i64} {
  func.func @ln_qkv_kernel(%arg0: i32, %arg1: memref<16x32xbf16, #tpu.memory_space<vmem>>, %arg2: memref<1x32xf32, #tpu.memory_space<vmem>>, %arg3: memref<1x32xf32, #tpu.memory_space<vmem>>, %arg4: memref<32x96xbf16, #tpu.memory_space<vmem>>, %arg5: memref<1x96xf32, #tpu.memory_space<vmem>>, %arg6: memref<16x32xbf16, #tpu.memory_space<vmem>>, %arg7: memref<16x64xbf16, #tpu.memory_space<vmem>>) attributes {dimension_semantics = [#tpu.dimension_semantics<parallel>], iteration_bounds = array<i64: 1>, scalar_prefetch = 0 : i64, scratch_operands = 0 : i64, tpu.core_type = #tpu.core_type<tc>, window_params = [{transform_indices = @transform_0, window_bounds = array<i64: 16, 32>}, {pipeline_mode = #tpu.pipeline_mode<synchronous>, transform_indices = @transform_1, window_bounds = array<i64: 1, 32>}, {pipeline_mode = #tpu.pipeline_mode<synchronous>, transform_indices = @transform_2, window_bounds = array<i64: 1, 32>}, {pipeline_mode = #tpu.pipeline_mode<synchronous>, transform_indices = @transform_3, window_bounds = array<i64: 32, 96>}, {pipeline_mode = #tpu.pipeline_mode<synchronous>, transform_indices = @transform_4, window_bounds = array<i64: 1, 96>}, {transform_indices = @transform_5, window_bounds = array<i64: 16, 32>}, {transform_indices = @transform_6, window_bounds = array<i64: 16, 64>}]} {
    %c0 = arith.constant 0 : index
    %c0_0 = arith.constant 0 : index
    %0 = vector.load %arg1[%c0, %c0_0] : memref<16x32xbf16, #tpu.memory_space<vmem>>, vector<16x32xbf16>
    %1 = arith.extf %0 : vector<16x32xbf16> to vector<16x32xf32>
    %c0_1 = arith.constant 0 : index
    %c0_2 = arith.constant 0 : index
    %2 = vector.load %arg2[%c0_1, %c0_2] : memref<1x32xf32, #tpu.memory_space<vmem>>, vector<1x32xf32>
    %c0_3 = arith.constant 0 : index
    %c0_4 = arith.constant 0 : index
    %3 = vector.load %arg3[%c0_3, %c0_4] : memref<1x32xf32, #tpu.memory_space<vmem>>, vector<1x32xf32>
    %cst = arith.constant dense<0.000000e+00> : vector<16xf32>
    %4 = vector.multi_reduction <add>, %1, %cst [1] : vector<16x32xf32> to vector<16xf32>
    %5 = vector.shape_cast %4 : vector<16xf32> to vector<16x1xf32>
    %cst_5 = arith.constant 3.200000e+01 : f32
    %6 = vector.broadcast %cst_5 : f32 to vector<16x1xf32>
    %7 = arith.divf %5, %6 : vector<16x1xf32>
    %8 = vector.broadcast %7 : vector<16x1xf32> to vector<16x32xf32>
    %9 = arith.subf %1, %8 : vector<16x32xf32>
    %10 = arith.mulf %9, %9 : vector<16x32xf32>
    %cst_6 = arith.constant dense<0.000000e+00> : vector<16xf32>
    %11 = vector.multi_reduction <add>, %10, %cst_6 [1] : vector<16x32xf32> to vector<16xf32>
    %12 = vector.shape_cast %11 : vector<16xf32> to vector<16x1xf32>
    %cst_7 = arith.constant 3.200000e+01 : f32
    %13 = vector.broadcast %cst_7 : f32 to vector<16x1xf32>
    %14 = arith.divf %12, %13 : vector<16x1xf32>
    %cst_8 = arith.constant 9.99999974E-6 : f32
    %15 = vector.broadcast %cst_8 : f32 to vector<16x1xf32>
    %16 = arith.addf %14, %15 : vector<16x1xf32>
    %17 = math.rsqrt %16 : vector<16x1xf32>
    %18 = vector.broadcast %17 : vector<16x1xf32> to vector<16x32xf32>
    %19 = arith.mulf %9, %18 : vector<16x32xf32>
    %20 = vector.broadcast %2 : vector<1x32xf32> to vector<16x32xf32>
    %21 = arith.mulf %19, %20 : vector<16x32xf32>
    %22 = vector.broadcast %3 : vector<1x32xf32> to vector<16x32xf32>
    %23 = arith.addf %21, %22 : vector<16x32xf32>
    %24 = arith.truncf %23 : vector<16x32xf32> to vector<16x32xbf16>
    %c0_9 = arith.constant 0 : index
    %c0_10 = arith.constant 0 : index
    %25 = vector.load %arg4[%c0_9, %c0_10] : memref<32x96xbf16, #tpu.memory_space<vmem>>, vector<32x96xbf16>
    %cst_11 = arith.constant dense<0.000000e+00> : vector<16x96xf32>
    %26 = tpu.matmul %24, %25, %cst_11 {dimension_numbers = #tpu.dot_dimension_numbers<[1], [0], [0], [1], [0, 0, 1, 1], [], []>} : vector<16x32xbf16>, vector<32x96xbf16>, vector<16x96xf32> -> vector<16x96xf32>
    %c0_12 = arith.constant 0 : index
    %c0_13 = arith.constant 0 : index
    %27 = vector.load %arg5[%c0_12, %c0_13] : memref<1x96xf32, #tpu.memory_space<vmem>>, vector<1x96xf32>
    %28 = vector.broadcast %27 : vector<1x96xf32> to vector<16x96xf32>
    %29 = arith.addf %26, %28 : vector<16x96xf32>
    %30 = vector.extract_strided_slice %29 {offsets = [0, 0], sizes = [16, 32], strides = [1, 1]} : vector<16x96xf32> to vector<16x32xf32>
    %31 = arith.truncf %30 : vector<16x32xf32> to vector<16x32xbf16>
    %c0_14 = arith.constant 0 : index
    %c0_15 = arith.constant 0 : index
    %32 = vector.load %arg6[%c0_14, %c0_15] : memref<16x32xbf16, #tpu.memory_space<vmem>>, vector<16x32xbf16>
    tpu.vector_store %arg6[%c0_14, %c0_15], %31 {strides = array<i32>} : memref<16x32xbf16, #tpu.memory_space<vmem>>, vector<16x32xbf16>,
    %33 = vector.extract_strided_slice %29 {offsets = [0, 32], sizes = [16, 64], strides = [1, 1]} : vector<16x96xf32> to vector<16x64xf32>
    %34 = arith.truncf %33 : vector<16x64xf32> to vector<16x64xbf16>
    %c0_16 = arith.constant 0 : index
    %c0_17 = arith.constant 0 : index
    %35 = vector.load %arg7[%c0_16, %c0_17] : memref<16x64xbf16, #tpu.memory_space<vmem>>, vector<16x64xbf16>
    tpu.vector_store %arg7[%c0_16, %c0_17], %34 {strides = array<i32>} : memref<16x64xbf16, #tpu.memory_space<vmem>>, vector<16x64xbf16>,
    return
  }
  func.func @transform_0(%arg0: i32) -> (i32, i32) {
    %c0_i32 = arith.constant 0 : i32
    %c0_i32_0 = arith.constant 0 : i32
    return %arg0, %c0_i32 : i32, i32
  }
  func.func @transform_1(%arg0: i32) -> (i32, i32) {
    %c0_i32 = arith.constant 0 : i32
    %c0_i32_0 = arith.constant 0 : i32
    %c0_i32_1 = arith.constant 0 : i32
    return %c0_i32, %c0_i32_0 : i32, i32
  }
  func.func @transform_2(%arg0: i32) -> (i32, i32) {
    %c0_i32 = arith.constant 0 : i32
    %c0_i32_0 = arith.constant 0 : i32
    %c0_i32_1 = arith.constant 0 : i32
    return %c0_i32, %c0_i32_0 : i32, i32
  }
  func.func @transform_3(%arg0: i32) -> (i32, i32) {
    %c0_i32 = arith.constant 0 : i32
    %c0_i32_0 = arith.constant 0 : i32
    %c0_i32_1 = arith.constant 0 : i32
    return %c0_i32, %c0_i32_0 : i32, i32
  }
  func.func @transform_4(%arg0: i32) -> (i32, i32) {
    %c0_i32 = arith.constant 0 : i32
    %c0_i32_0 = arith.constant 0 : i32
    %c0_i32_1 = arith.constant 0 : i32
    return %c0_i32, %c0_i32_0 : i32, i32
  }
  func.func @transform_5(%arg0: i32) -> (i32, i32) {
    %c0_i32 = arith.constant 0 : i32
    %c0_i32_0 = arith.constant 0 : i32
    return %arg0, %c0_i32 : i32, i32
  }
  func.func @transform_6(%arg0: i32) -> (i32, i32) {
    %c0_i32 = arith.constant 0 : i32
    %c0_i32_0 = arith.constant 0 : i32
    return %arg0, %c0_i32 : i32, i32
  }
}

module attributes {stable_mosaic.version = 11 : i64} {
  func.func @matmul_bias_kernel(%arg0: i32, %arg1: memref<32x32xbf16, #tpu.memory_space<vmem>>, %arg2: memref<32x64xbf16, #tpu.memory_space<vmem>>, %arg3: memref<1x64xf32, #tpu.memory_space<vmem>>, %arg4: memref<32x64xbf16, #tpu.memory_space<vmem>>) attributes {dimension_semantics = [#tpu.dimension_semantics<parallel>], iteration_bounds = array<i64: 1>, scalar_prefetch = 0 : i64, scratch_operands = 0 : i64, tpu.core_type = #tpu.core_type<tc>, window_params = [{transform_indices = @transform_0, window_bounds = array<i64: 32, 32>}, {pipeline_mode = #tpu.pipeline_mode<synchronous>, transform_indices = @transform_1, window_bounds = array<i64: 32, 64>}, {pipeline_mode = #tpu.pipeline_mode<synchronous>, transform_indices = @transform_2, window_bounds = array<i64: 1, 64>}, {transform_indices = @transform_3, window_bounds = array<i64: 32, 64>}]} {
    %c0 = arith.constant 0 : index
    %c0_0 = arith.constant 0 : index
    %0 = vector.load %arg1[%c0, %c0_0] : memref<32x32xbf16, #tpu.memory_space<vmem>>, vector<32x32xbf16>
    %c0_1 = arith.constant 0 : index
    %c0_2 = arith.constant 0 : index
    %1 = vector.load %arg2[%c0_1, %c0_2] : memref<32x64xbf16, #tpu.memory_space<vmem>>, vector<32x64xbf16>
    %cst = arith.constant dense<0.000000e+00> : vector<32x64xf32>
    %2 = tpu.matmul %0, %1, %cst {dimension_numbers = #tpu.dot_dimension_numbers<[1], [0], [0], [1], [0, 0, 1, 1], [], []>} : vector<32x32xbf16>, vector<32x64xbf16>, vector<32x64xf32> -> vector<32x64xf32>
    %c0_3 = arith.constant 0 : index
    %c0_4 = arith.constant 0 : index
    %3 = vector.load %arg3[%c0_3, %c0_4] : memref<1x64xf32, #tpu.memory_space<vmem>>, vector<1x64xf32>
    %4 = vector.broadcast %3 : vector<1x64xf32> to vector<32x64xf32>
    %5 = arith.addf %2, %4 : vector<32x64xf32>
    %6 = arith.truncf %5 : vector<32x64xf32> to vector<32x64xbf16>
    %c0_5 = arith.constant 0 : index
    %c0_6 = arith.constant 0 : index
    %7 = vector.load %arg4[%c0_5, %c0_6] : memref<32x64xbf16, #tpu.memory_space<vmem>>, vector<32x64xbf16>
    tpu.vector_store %arg4[%c0_5, %c0_6], %6 {strides = array<i32>} : memref<32x64xbf16, #tpu.memory_space<vmem>>, vector<32x64xbf16>,
    return
  }
  func.func @transform_0(%arg0: i32) -> (i32, i32) {
    %c0_i32 = arith.constant 0 : i32
    %c0_i32_0 = arith.constant 0 : i32
    return %arg0, %c0_i32 : i32, i32
  }
  func.func @transform_1(%arg0: i32) -> (i32, i32) {
    %c0_i32 = arith.constant 0 : i32
    %c0_i32_0 = arith.constant 0 : i32
    %c0_i32_1 = arith.constant 0 : i32
    return %c0_i32, %c0_i32_0 : i32, i32
  }
  func.func @transform_2(%arg0: i32) -> (i32, i32) {
    %c0_i32 = arith.constant 0 : i32
    %c0_i32_0 = arith.constant 0 : i32
    %c0_i32_1 = arith.constant 0 : i32
    return %c0_i32, %c0_i32_0 : i32, i32
  }
  func.func @transform_3(%arg0: i32) -> (i32, i32) {
    %c0_i32 = arith.constant 0 : i32
    %c0_i32_0 = arith.constant 0 : i32
    return %arg0, %c0_i32 : i32, i32
  }
}

module attributes {stable_mosaic.version = 11 : i64} {
  func.func @attention_kernel(%arg0: i32, %arg1: i32, %arg2: memref<1x8x32xbf16, #tpu.memory_space<vmem>>, %arg3: memref<1x8x64xbf16, #tpu.memory_space<vmem>>, %arg4: memref<1x8x8xi8, #tpu.memory_space<vmem>>, %arg5: memref<1x8x32xbf16, #tpu.memory_space<vmem>>, %arg6: memref<1x4x8x8xbf16, #tpu.memory_space<vmem>>) attributes {dimension_semantics = [#tpu.dimension_semantics<parallel>, #tpu.dimension_semantics<parallel>], iteration_bounds = array<i64: 2, 1>, scalar_prefetch = 0 : i64, scratch_operands = 0 : i64, tpu.core_type = #tpu.core_type<tc>, window_params = [{transform_indices = @transform_0, window_bounds = array<i64: 1, 8, 32>}, {transform_indices = @transform_1, window_bounds = array<i64: 1, 8, 64>}, {transform_indices = @transform_2, window_bounds = array<i64: 1, 8, 8>}, {transform_indices = @transform_3, window_bounds = array<i64: 1, 8, 32>}, {transform_indices = @transform_4, window_bounds = array<i64: 1, 4, 8, 8>}]} {
    %c0 = arith.constant 0 : index
    %c0_0 = arith.constant 0 : index
    %c0_1 = arith.constant 0 : index
    %0 = vector.load %arg2[%c0, %c0_0, %c0_1] : memref<1x8x32xbf16, #tpu.memory_space<vmem>>, vector<1x8x32xbf16>
    %1 = vector.shape_cast %0 : vector<1x8x32xbf16> to vector<8x32xbf16>
    %c0_2 = arith.constant 0 : index
    %c0_3 = arith.constant 0 : index
    %c0_4 = arith.constant 0 : index
    %2 = vector.load %arg3[%c0_2, %c0_3, %c0_4] : memref<1x8x64xbf16, #tpu.memory_space<vmem>>, vector<1x8x64xbf16>
    %3 = vector.shape_cast %2 : vector<1x8x64xbf16> to vector<8x64xbf16>
    %c0_5 = arith.constant 0 : index
    %c0_6 = arith.constant 0 : index
    %c0_7 = arith.constant 0 : index
    %4 = vector.load %arg4[%c0_5, %c0_6, %c0_7] : memref<1x8x8xi8, #tpu.memory_space<vmem>>, vector<1x8x8xi8>
    %5 = vector.shape_cast %4 : vector<1x8x8xi8> to vector<8x8xi8>
    %6 = arith.sitofp %5 : vector<8x8xi8> to vector<8x8xf32>
    %cst = arith.constant 0.000000e+00 : f32
    %7 = vector.broadcast %cst : f32 to vector<8x8xf32>
    %8 = arith.cmpf one, %6, %7 : vector<8x8xf32>
    %9 = vector.extract_strided_slice %1 {offsets = [0, 0], sizes = [8, 8], strides = [1, 1]} : vector<8x32xbf16> to vector<8x8xbf16>
    %10 = vector.extract_strided_slice %3 {offsets = [0, 0], sizes = [8, 8], strides = [1, 1]} : vector<8x64xbf16> to vector<8x8xbf16>
    %11 = vector.extract_strided_slice %3 {offsets = [0, 32], sizes = [8, 8], strides = [1, 1]} : vector<8x64xbf16> to vector<8x8xbf16>
    %cst_8 = arith.constant dense<0.000000e+00> : vector<8x8xf32>
    %12 = tpu.matmul %9, %10, %cst_8 {dimension_numbers = #tpu.dot_dimension_numbers<[1], [1], [0], [0], [0, 0, 1, 0], [], []>} : vector<8x8xbf16>, vector<8x8xbf16>, vector<8x8xf32> -> vector<8x8xf32>
    %cst_9 = arith.constant -1.000000e+09 : f32
    %13 = vector.broadcast %cst_9 : f32 to vector<8x8xf32>
    %14 = arith.select %8, %12, %13 : vector<8x8xi1>, vector<8x8xf32>
    %cst_10 = arith.constant dense<0xFF800000> : vector<8xf32>
    %15 = vector.multi_reduction <maximumf>, %14, %cst_10 [1] : vector<8x8xf32> to vector<8xf32>
    %16 = vector.shape_cast %15 : vector<8xf32> to vector<8x1xf32>
    %17 = vector.broadcast %16 : vector<8x1xf32> to vector<8x8xf32>
    %18 = arith.subf %14, %17 : vector<8x8xf32>
    %19 = math.exp %18 : vector<8x8xf32>
    %cst_11 = arith.constant dense<0.000000e+00> : vector<8xf32>
    %20 = vector.multi_reduction <add>, %19, %cst_11 [1] : vector<8x8xf32> to vector<8xf32>
    %21 = vector.shape_cast %20 : vector<8xf32> to vector<8x1xf32>
    %22 = vector.broadcast %21 : vector<8x1xf32> to vector<8x8xf32>
    %23 = arith.divf %19, %22 : vector<8x8xf32>
    %24 = arith.truncf %23 : vector<8x8xf32> to vector<8x8xbf16>
    %c0_12 = arith.constant 0 : index
    %c0_13 = arith.constant 0 : index
    %c0_14 = arith.constant 0 : index
    %c0_15 = arith.constant 0 : index
    %25 = vector.load %arg6[%c0_12, %c0_13, %c0_14, %c0_15] : memref<1x4x8x8xbf16, #tpu.memory_space<vmem>>, vector<1x1x8x8xbf16>
    %26 = vector.shape_cast %25 : vector<1x1x8x8xbf16> to vector<8x8xbf16>
    %27 = vector.shape_cast %24 : vector<8x8xbf16> to vector<1x1x8x8xbf16>
    tpu.vector_store %arg6[%c0_12, %c0_13, %c0_14, %c0_15], %27 {strides = array<i32>} : memref<1x4x8x8xbf16, #tpu.memory_space<vmem>>, vector<1x1x8x8xbf16>,
    %28 = arith.truncf %23 : vector<8x8xf32> to vector<8x8xbf16>
    %cst_16 = arith.constant dense<0.000000e+00> : vector<8x8xf32>
    %29 = tpu.matmul %28, %11, %cst_16 {dimension_numbers = #tpu.dot_dimension_numbers<[1], [0], [0], [1], [0, 0, 1, 1], [], []>} : vector<8x8xbf16>, vector<8x8xbf16>, vector<8x8xf32> -> vector<8x8xf32>
    %30 = vector.extract_strided_slice %1 {offsets = [0, 8], sizes = [8, 8], strides = [1, 1]} : vector<8x32xbf16> to vector<8x8xbf16>
    %31 = vector.extract_strided_slice %3 {offsets = [0, 8], sizes = [8, 8], strides = [1, 1]} : vector<8x64xbf16> to vector<8x8xbf16>
    %32 = vector.extract_strided_slice %3 {offsets = [0, 40], sizes = [8, 8], strides = [1, 1]} : vector<8x64xbf16> to vector<8x8xbf16>
    %cst_17 = arith.constant dense<0.000000e+00> : vector<8x8xf32>
    %33 = tpu.matmul %30, %31, %cst_17 {dimension_numbers = #tpu.dot_dimension_numbers<[1], [1], [0], [0], [0, 0, 1, 0], [], []>} : vector<8x8xbf16>, vector<8x8xbf16>, vector<8x8xf32> -> vector<8x8xf32>
    %cst_18 = arith.constant -1.000000e+09 : f32
    %34 = vector.broadcast %cst_18 : f32 to vector<8x8xf32>
    %35 = arith.select %8, %33, %34 : vector<8x8xi1>, vector<8x8xf32>
    %cst_19 = arith.constant dense<0xFF800000> : vector<8xf32>
    %36 = vector.multi_reduction <maximumf>, %35, %cst_19 [1] : vector<8x8xf32> to vector<8xf32>
    %37 = vector.shape_cast %36 : vector<8xf32> to vector<8x1xf32>
    %38 = vector.broadcast %37 : vector<8x1xf32> to vector<8x8xf32>
    %39 = arith.subf %35, %38 : vector<8x8xf32>
    %40 = math.exp %39 : vector<8x8xf32>
    %cst_20 = arith.constant dense<0.000000e+00> : vector<8xf32>
    %41 = vector.multi_reduction <add>, %40, %cst_20 [1] : vector<8x8xf32> to vector<8xf32>
    %42 = vector.shape_cast %41 : vector<8xf32> to vector<8x1xf32>
    %43 = vector.broadcast %42 : vector<8x1xf32> to vector<8x8xf32>
    %44 = arith.divf %40, %43 : vector<8x8xf32>
    %45 = arith.truncf %44 : vector<8x8xf32> to vector<8x8xbf16>
    %c0_21 = arith.constant 0 : index
    %c1 = arith.constant 1 : index
    %c0_22 = arith.constant 0 : index
    %c0_23 = arith.constant 0 : index
    %46 = vector.load %arg6[%c0_21, %c1, %c0_22, %c0_23] : memref<1x4x8x8xbf16, #tpu.memory_space<vmem>>, vector<1x1x8x8xbf16>
    %47 = vector.shape_cast %46 : vector<1x1x8x8xbf16> to vector<8x8xbf16>
    %48 = vector.shape_cast %45 : vector<8x8xbf16> to vector<1x1x8x8xbf16>
    tpu.vector_store %arg6[%c0_21, %c1, %c0_22, %c0_23], %48 {strides = array<i32>} : memref<1x4x8x8xbf16, #tpu.memory_space<vmem>>, vector<1x1x8x8xbf16>,
    %49 = arith.truncf %44 : vector<8x8xf32> to vector<8x8xbf16>
    %cst_24 = arith.constant dense<0.000000e+00> : vector<8x8xf32>
    %50 = tpu.matmul %49, %32, %cst_24 {dimension_numbers = #tpu.dot_dimension_numbers<[1], [0], [0], [1], [0, 0, 1, 1], [], []>} : vector<8x8xbf16>, vector<8x8xbf16>, vector<8x8xf32> -> vector<8x8xf32>
    %51 = vector.extract_strided_slice %1 {offsets = [0, 16], sizes = [8, 8], strides = [1, 1]} : vector<8x32xbf16> to vector<8x8xbf16>
    %52 = vector.extract_strided_slice %3 {offsets = [0, 16], sizes = [8, 8], strides = [1, 1]} : vector<8x64xbf16> to vector<8x8xbf16>
    %53 = vector.extract_strided_slice %3 {offsets = [0, 48], sizes = [8, 8], strides = [1, 1]} : vector<8x64xbf16> to vector<8x8xbf16>
    %cst_25 = arith.constant dense<0.000000e+00> : vector<8x8xf32>
    %54 = tpu.matmul %51, %52, %cst_25 {dimension_numbers = #tpu.dot_dimension_numbers<[1], [1], [0], [0], [0, 0, 1, 0], [], []>} : vector<8x8xbf16>, vector<8x8xbf16>, vector<8x8xf32> -> vector<8x8xf32>
    %cst_26 = arith.constant -1.000000e+09 : f32
    %55 = vector.broadcast %cst_26 : f32 to vector<8x8xf32>
    %56 = arith.select %8, %54, %55 : vector<8x8xi1>, vector<8x8xf32>
    %cst_27 = arith.constant dense<0xFF800000> : vector<8xf32>
    %57 = vector.multi_reduction <maximumf>, %56, %cst_27 [1] : vector<8x8xf32> to vector<8xf32>
    %58 = vector.shape_cast %57 : vector<8xf32> to vector<8x1xf32>
    %59 = vector.broadcast %58 : vector<8x1xf32> to vector<8x8xf32>
    %60 = arith.subf %56, %59 : vector<8x8xf32>
    %61 = math.exp %60 : vector<8x8xf32>
    %cst_28 = arith.constant dense<0.000000e+00> : vector<8xf32>
    %62 = vector.multi_reduction <add>, %61, %cst_28 [1] : vector<8x8xf32> to vector<8xf32>
    %63 = vector.shape_cast %62 : vector<8xf32> to vector<8x1xf32>
    %64 = vector.broadcast %63 : vector<8x1xf32> to vector<8x8xf32>
    %65 = arith.divf %61, %64 : vector<8x8xf32>
    %66 = arith.truncf %65 : vector<8x8xf32> to vector<8x8xbf16>
    %c0_29 = arith.constant 0 : index
    %c2 = arith.constant 2 : index
    %c0_30 = arith.constant 0 : index
    %c0_31 = arith.constant 0 : index
    %67 = vector.load %arg6[%c0_29, %c2, %c0_30, %c0_31] : memref<1x4x8x8xbf16, #tpu.memory_space<vmem>>, vector<1x1x8x8xbf16>
    %68 = vector.shape_cast %67 : vector<1x1x8x8xbf16> to vector<8x8xbf16>
    %69 = vector.shape_cast %66 : vector<8x8xbf16> to vector<1x1x8x8xbf16>
    tpu.vector_store %arg6[%c0_29, %c2, %c0_30, %c0_31], %69 {strides = array<i32>} : memref<1x4x8x8xbf16, #tpu.memory_space<vmem>>, vector<1x1x8x8xbf16>,
    %70 = arith.truncf %65 : vector<8x8xf32> to vector<8x8xbf16>
    %cst_32 = arith.constant dense<0.000000e+00> : vector<8x8xf32>
    %71 = tpu.matmul %70, %53, %cst_32 {dimension_numbers = #tpu.dot_dimension_numbers<[1], [0], [0], [1], [0, 0, 1, 1], [], []>} : vector<8x8xbf16>, vector<8x8xbf16>, vector<8x8xf32> -> vector<8x8xf32>
    %72 = vector.extract_strided_slice %1 {offsets = [0, 24], sizes = [8, 8], strides = [1, 1]} : vector<8x32xbf16> to vector<8x8xbf16>
    %73 = vector.extract_strided_slice %3 {offsets = [0, 24], sizes = [8, 8], strides = [1, 1]} : vector<8x64xbf16> to vector<8x8xbf16>
    %74 = vector.extract_strided_slice %3 {offsets = [0, 56], sizes = [8, 8], strides = [1, 1]} : vector<8x64xbf16> to vector<8x8xbf16>
    %cst_33 = arith.constant dense<0.000000e+00> : vector<8x8xf32>
    %75 = tpu.matmul %72, %73, %cst_33 {dimension_numbers = #tpu.dot_dimension_numbers<[1], [1], [0], [0], [0, 0, 1, 0], [], []>} : vector<8x8xbf16>, vector<8x8xbf16>, vector<8x8xf32> -> vector<8x8xf32>
    %cst_34 = arith.constant -1.000000e+09 : f32
    %76 = vector.broadcast %cst_34 : f32 to vector<8x8xf32>
    %77 = arith.select %8, %75, %76 : vector<8x8xi1>, vector<8x8xf32>
    %cst_35 = arith.constant dense<0xFF800000> : vector<8xf32>
    %78 = vector.multi_reduction <maximumf>, %77, %cst_35 [1] : vector<8x8xf32> to vector<8xf32>
    %79 = vector.shape_cast %78 : vector<8xf32> to vector<8x1xf32>
    %80 = vector.broadcast %79 : vector<8x1xf32> to vector<8x8xf32>
    %81 = arith.subf %77, %80 : vector<8x8xf32>
    %82 = math.exp %81 : vector<8x8xf32>
    %cst_36 = arith.constant dense<0.000000e+00> : vector<8xf32>
    %83 = vector.multi_reduction <add>, %82, %cst_36 [1] : vector<8x8xf32> to vector<8xf32>
    %84 = vector.shape_cast %83 : vector<8xf32> to vector<8x1xf32>
    %85 = vector.broadcast %84 : vector<8x1xf32> to vector<8x8xf32>
    %86 = arith.divf %82, %85 : vector<8x8xf32>
    %87 = arith.truncf %86 : vector<8x8xf32> to vector<8x8xbf16>
    %c0_37 = arith.constant 0 : index
    %c3 = arith.constant 3 : index
    %c0_38 = arith.constant 0 : index
    %c0_39 = arith.constant 0 : index
    %88 = vector.load %arg6[%c0_37, %c3, %c0_38, %c0_39] : memref<1x4x8x8xbf16, #tpu.memory_space<vmem>>, vector<1x1x8x8xbf16>
    %89 = vector.shape_cast %88 : vector<1x1x8x8xbf16> to vector<8x8xbf16>
    %90 = vector.shape_cast %87 : vector<8x8xbf16> to vector<1x1x8x8xbf16>
    tpu.vector_store %arg6[%c0_37, %c3, %c0_38, %c0_39], %90 {strides = array<i32>} : memref<1x4x8x8xbf16, #tpu.memory_space<vmem>>, vector<1x1x8x8xbf16>,
    %91 = arith.truncf %86 : vector<8x8xf32> to vector<8x8xbf16>
    %cst_40 = arith.constant dense<0.000000e+00> : vector<8x8xf32>
    %92 = tpu.matmul %91, %74, %cst_40 {dimension_numbers = #tpu.dot_dimension_numbers<[1], [0], [0], [1], [0, 0, 1, 1], [], []>} : vector<8x8xbf16>, vector<8x8xbf16>, vector<8x8xf32> -> vector<8x8xf32>
    %93 = tpu.concatenate %29, %50, %71, %92 in 1 : vector<8x8xf32>, vector<8x8xf32>, vector<8x8xf32>, vector<8x8xf32> -> vector<8x32xf32>
    %94 = arith.truncf %93 : vector<8x32xf32> to vector<8x32xbf16>
    %c0_41 = arith.constant 0 : index
    %c0_42 = arith.constant 0 : index
    %c0_43 = arith.constant 0 : index
    %95 = vector.load %arg5[%c0_41, %c0_42, %c0_43] : memref<1x8x32xbf16, #tpu.memory_space<vmem>>, vector<1x8x32xbf16>
    %96 = vector.shape_cast %95 : vector<1x8x32xbf16> to vector<8x32xbf16>
    %97 = vector.shape_cast %94 : vector<8x32xbf16> to vector<1x8x32xbf16>
    tpu.vector_store %arg5[%c0_41, %c0_42, %c0_43], %97 {strides = array<i32>} : memref<1x8x32xbf16, #tpu.memory_space<vmem>>, vector<1x8x32xbf16>,
    return
  }
  func.func @transform_0(%arg0: i32, %arg1: i32) -> (i32, i32, i32) {
    %c0_i32 = arith.constant 0 : i32
    %c0_i32_0 = arith.constant 0 : i32
    return %arg0, %arg1, %c0_i32 : i32, i32, i32
  }
  func.func @transform_1(%arg0: i32, %arg1: i32) -> (i32, i32, i32) {
    %c0_i32 = arith.constant 0 : i32
    %c0_i32_0 = arith.constant 0 : i32
    %c0_i32_1 = arith.constant 0 : i32
    return %arg0, %c0_i32, %c0_i32_0 : i32, i32, i32
  }
  func.func @transform_2(%arg0: i32, %arg1: i32) -> (i32, i32, i32) {
    %c0_i32 = arith.constant 0 : i32
    %c0_i32_0 = arith.constant 0 : i32
    return %arg0, %arg1, %c0_i32 : i32, i32, i32
  }
  func.func @transform_3(%arg0: i32, %arg1: i32) -> (i32, i32, i32) {
    %c0_i32 = arith.constant 0 : i32
    %c0_i32_0 = arith.constant 0 : i32
    return %arg0, %arg1, %c0_i32 : i32, i32, i32
  }
  func.func @transform_4(%arg0: i32, %arg1: i32) -> (i32, i32, i32, i32) {
    %c0_i32 = arith.constant 0 : i32
    %c0_i32_0 = arith.constant 0 : i32
    %c0_i32_1 = arith.constant 0 : i32
    return %arg0, %c0_i32, %arg1, %c0_i32_0 : i32, i32, i32, i32
  }
}

module attributes {stable_mosaic.version = 11 : i64} {
  func.func @matmul_residual_kernel(%arg0: i32, %arg1: memref<16x32xbf16, #tpu.memory_space<vmem>>, %arg2: memref<32x32xbf16, #tpu.memory_space<vmem>>, %arg3: memref<1x32xf32, #tpu.memory_space<vmem>>, %arg4: memref<16x32xbf16, #tpu.memory_space<vmem>>, %arg5: memref<16x32xbf16, #tpu.memory_space<vmem>>) attributes {dimension_semantics = [#tpu.dimension_semantics<parallel>], iteration_bounds = array<i64: 1>, scalar_prefetch = 0 : i64, scratch_operands = 0 : i64, tpu.core_type = #tpu.core_type<tc>, window_params = [{transform_indices = @transform_0, window_bounds = array<i64: 16, 32>}, {pipeline_mode = #tpu.pipeline_mode<synchronous>, transform_indices = @transform_1, window_bounds = array<i64: 32, 32>}, {pipeline_mode = #tpu.pipeline_mode<synchronous>, transform_indices = @transform_2, window_bounds = array<i64: 1, 32>}, {transform_indices = @transform_3, window_bounds = array<i64: 16, 32>}, {transform_indices = @transform_4, window_bounds = array<i64: 16, 32>}]} {
    %c0 = arith.constant 0 : index
    %c0_0 = arith.constant 0 : index
    %0 = vector.load %arg1[%c0, %c0_0] : memref<16x32xbf16, #tpu.memory_space<vmem>>, vector<16x32xbf16>
    %c0_1 = arith.constant 0 : index
    %c0_2 = arith.constant 0 : index
    %1 = vector.load %arg2[%c0_1, %c0_2] : memref<32x32xbf16, #tpu.memory_space<vmem>>, vector<32x32xbf16>
    %cst = arith.constant dense<0.000000e+00> : vector<16x32xf32>
    %2 = tpu.matmul %0, %1, %cst {dimension_numbers = #tpu.dot_dimension_numbers<[1], [0], [0], [1], [0, 0, 1, 1], [], []>} : vector<16x32xbf16>, vector<32x32xbf16>, vector<16x32xf32> -> vector<16x32xf32>
    %c0_3 = arith.constant 0 : index
    %c0_4 = arith.constant 0 : index
    %3 = vector.load %arg3[%c0_3, %c0_4] : memref<1x32xf32, #tpu.memory_space<vmem>>, vector<1x32xf32>
    %4 = vector.broadcast %3 : vector<1x32xf32> to vector<16x32xf32>
    %5 = arith.addf %2, %4 : vector<16x32xf32>
    %c0_5 = arith.constant 0 : index
    %c0_6 = arith.constant 0 : index
    %6 = vector.load %arg4[%c0_5, %c0_6] : memref<16x32xbf16, #tpu.memory_space<vmem>>, vector<16x32xbf16>
    %7 = arith.extf %6 : vector<16x32xbf16> to vector<16x32xf32>
    %8 = arith.addf %7, %5 : vector<16x32xf32>
    %9 = arith.truncf %8 : vector<16x32xf32> to vector<16x32xbf16>
    %c0_7 = arith.constant 0 : index
    %c0_8 = arith.constant 0 : index
    %10 = vector.load %arg5[%c0_7, %c0_8] : memref<16x32xbf16, #tpu.memory_space<vmem>>, vector<16x32xbf16>
    tpu.vector_store %arg5[%c0_7, %c0_8], %9 {strides = array<i32>} : memref<16x32xbf16, #tpu.memory_space<vmem>>, vector<16x32xbf16>,
    return
  }
  func.func @transform_0(%arg0: i32) -> (i32, i32) {
    %c0_i32 = arith.constant 0 : i32
    %c0_i32_0 = arith.constant 0 : i32
    return %arg0, %c0_i32 : i32, i32
  }
  func.func @transform_1(%arg0: i32) -> (i32, i32) {
    %c0_i32 = arith.constant 0 : i32
    %c0_i32_0 = arith.constant 0 : i32
    %c0_i32_1 = arith.constant 0 : i32
    return %c0_i32, %c0_i32_0 : i32, i32
  }
  func.func @transform_2(%arg0: i32) -> (i32, i32) {
    %c0_i32 = arith.constant 0 : i32
    %c0_i32_0 = arith.constant 0 : i32
    %c0_i32_1 = arith.constant 0 : i32
    return %c0_i32, %c0_i32_0 : i32, i32
  }
  func.func @transform_3(%arg0: i32) -> (i32, i32) {
    %c0_i32 = arith.constant 0 : i32
    %c0_i32_0 = arith.constant 0 : i32
    return %arg0, %c0_i32 : i32, i32
  }
  func.func @transform_4(%arg0: i32) -> (i32, i32) {
    %c0_i32 = arith.constant 0 : i32
    %c0_i32_0 = arith.constant 0 : i32
    return %arg0, %c0_i32 : i32, i32
  }
}

module attributes {stable_mosaic.version = 11 : i64} {
  func.func @ln_matmul_kernel(%arg0: i32, %arg1: memref<16x32xbf16, #tpu.memory_space<vmem>>, %arg2: memref<1x32xf32, #tpu.memory_space<vmem>>, %arg3: memref<1x32xf32, #tpu.memory_space<vmem>>, %arg4: memref<32x32xbf16, #tpu.memory_space<vmem>>, %arg5: memref<1x32xf32, #tpu.memory_space<vmem>>, %arg6: memref<16x32xbf16, #tpu.memory_space<vmem>>) attributes {dimension_semantics = [#tpu.dimension_semantics<parallel>], iteration_bounds = array<i64: 1>, scalar_prefetch = 0 : i64, scratch_operands = 0 : i64, tpu.core_type = #tpu.core_type<tc>, window_params = [{transform_indices = @transform_0, window_bounds = array<i64: 16, 32>}, {pipeline_mode = #tpu.pipeline_mode<synchronous>, transform_indices = @transform_1, window_bounds = array<i64: 1, 32>}, {pipeline_mode = #tpu.pipeline_mode<synchronous>, transform_indices = @transform_2, window_bounds = array<i64: 1, 32>}, {pipeline_mode = #tpu.pipeline_mode<synchronous>, transform_indices = @transform_3, window_bounds = array<i64: 32, 32>}, {pipeline_mode = #tpu.pipeline_mode<synchronous>, transform_indices = @transform_4, window_bounds = array<i64: 1, 32>}, {transform_indices = @transform_5, window_bounds = array<i64: 16, 32>}]} {
    %c0 = arith.constant 0 : index
    %c0_0 = arith.constant 0 : index
    %0 = vector.load %arg1[%c0, %c0_0] : memref<16x32xbf16, #tpu.memory_space<vmem>>, vector<16x32xbf16>
    %1 = arith.extf %0 : vector<16x32xbf16> to vector<16x32xf32>
    %c0_1 = arith.constant 0 : index
    %c0_2 = arith.constant 0 : index
    %2 = vector.load %arg2[%c0_1, %c0_2] : memref<1x32xf32, #tpu.memory_space<vmem>>, vector<1x32xf32>
    %c0_3 = arith.constant 0 : index
    %c0_4 = arith.constant 0 : index
    %3 = vector.load %arg3[%c0_3, %c0_4] : memref<1x32xf32, #tpu.memory_space<vmem>>, vector<1x32xf32>
    %cst = arith.constant dense<0.000000e+00> : vector<16xf32>
    %4 = vector.multi_reduction <add>, %1, %cst [1] : vector<16x32xf32> to vector<16xf32>
    %5 = vector.shape_cast %4 : vector<16xf32> to vector<16x1xf32>
    %cst_5 = arith.constant 3.200000e+01 : f32
    %6 = vector.broadcast %cst_5 : f32 to vector<16x1xf32>
    %7 = arith.divf %5, %6 : vector<16x1xf32>
    %8 = vector.broadcast %7 : vector<16x1xf32> to vector<16x32xf32>
    %9 = arith.subf %1, %8 : vector<16x32xf32>
    %10 = arith.mulf %9, %9 : vector<16x32xf32>
    %cst_6 = arith.constant dense<0.000000e+00> : vector<16xf32>
    %11 = vector.multi_reduction <add>, %10, %cst_6 [1] : vector<16x32xf32> to vector<16xf32>
    %12 = vector.shape_cast %11 : vector<16xf32> to vector<16x1xf32>
    %cst_7 = arith.constant 3.200000e+01 : f32
    %13 = vector.broadcast %cst_7 : f32 to vector<16x1xf32>
    %14 = arith.divf %12, %13 : vector<16x1xf32>
    %cst_8 = arith.constant 9.99999974E-6 : f32
    %15 = vector.broadcast %cst_8 : f32 to vector<16x1xf32>
    %16 = arith.addf %14, %15 : vector<16x1xf32>
    %17 = math.rsqrt %16 : vector<16x1xf32>
    %18 = vector.broadcast %17 : vector<16x1xf32> to vector<16x32xf32>
    %19 = arith.mulf %9, %18 : vector<16x32xf32>
    %20 = vector.broadcast %2 : vector<1x32xf32> to vector<16x32xf32>
    %21 = arith.mulf %19, %20 : vector<16x32xf32>
    %22 = vector.broadcast %3 : vector<1x32xf32> to vector<16x32xf32>
    %23 = arith.addf %21, %22 : vector<16x32xf32>
    %24 = arith.truncf %23 : vector<16x32xf32> to vector<16x32xbf16>
    %c0_9 = arith.constant 0 : index
    %c0_10 = arith.constant 0 : index
    %25 = vector.load %arg4[%c0_9, %c0_10] : memref<32x32xbf16, #tpu.memory_space<vmem>>, vector<32x32xbf16>
    %cst_11 = arith.constant dense<0.000000e+00> : vector<16x32xf32>
    %26 = tpu.matmul %24, %25, %cst_11 {dimension_numbers = #tpu.dot_dimension_numbers<[1], [0], [0], [1], [0, 0, 1, 1], [], []>} : vector<16x32xbf16>, vector<32x32xbf16>, vector<16x32xf32> -> vector<16x32xf32>
    %c0_12 = arith.constant 0 : index
    %c0_13 = arith.constant 0 : index
    %27 = vector.load %arg5[%c0_12, %c0_13] : memref<1x32xf32, #tpu.memory_space<vmem>>, vector<1x32xf32>
    %28 = vector.broadcast %27 : vector<1x32xf32> to vector<16x32xf32>
    %29 = arith.addf %26, %28 : vector<16x32xf32>
    %30 = arith.truncf %29 : vector<16x32xf32> to vector<16x32xbf16>
    %c0_14 = arith.constant 0 : index
    %c0_15 = arith.constant 0 : index
    %31 = vector.load %arg6[%c0_14, %c0_15] : memref<16x32xbf16, #tpu.memory_space<vmem>>, vector<16x32xbf16>
    tpu.vector_store %arg6[%c0_14, %c0_15], %30 {strides = array<i32>} : memref<16x32xbf16, #tpu.memory_space<vmem>>, vector<16x32xbf16>,
    return
  }
  func.func @transform_0(%arg0: i32) -> (i32, i32) {
    %c0_i32 = arith.constant 0 : i32
    %c0_i32_0 = arith.constant 0 : i32
    return %arg0, %c0_i32 : i32, i32
  }
  func.func @transform_1(%arg0: i32) -> (i32, i32) {
    %c0_i32 = arith.constant 0 : i32
    %c0_i32_0 = arith.constant 0 : i32
    %c0_i32_1 = arith.constant 0 : i32
    return %c0_i32, %c0_i32_0 : i32, i32
  }
  func.func @transform_2(%arg0: i32) -> (i32, i32) {
    %c0_i32 = arith.constant 0 : i32
    %c0_i32_0 = arith.constant 0 : i32
    %c0_i32_1 = arith.constant 0 : i32
    return %c0_i32, %c0_i32_0 : i32, i32
  }
  func.func @transform_3(%arg0: i32) -> (i32, i32) {
    %c0_i32 = arith.constant 0 : i32
    %c0_i32_0 = arith.constant 0 : i32
    %c0_i32_1 = arith.constant 0 : i32
    return %c0_i32, %c0_i32_0 : i32, i32
  }
  func.func @transform_4(%arg0: i32) -> (i32, i32) {
    %c0_i32 = arith.constant 0 : i32
    %c0_i32_0 = arith.constant 0 : i32
    %c0_i32_1 = arith.constant 0 : i32
    return %c0_i32, %c0_i32_0 : i32, i32
  }
  func.func @transform_5(%arg0: i32) -> (i32, i32) {
    %c0_i32 = arith.constant 0 : i32
    %c0_i32_0 = arith.constant 0 : i32
    return %arg0, %c0_i32 : i32, i32
  }
}

module attributes {stable_mosaic.version = 11 : i64} {
  func.func @attention_kernel(%arg0: i32, %arg1: i32, %arg2: memref<1x8x32xbf16, #tpu.memory_space<vmem>>, %arg3: memref<1x16x64xbf16, #tpu.memory_space<vmem>>, %arg4: memref<1x8x16xi8, #tpu.memory_space<vmem>>, %arg5: memref<1x8x32xbf16, #tpu.memory_space<vmem>>, %arg6: memref<1x4x8x16xbf16, #tpu.memory_space<vmem>>) attributes {dimension_semantics = [#tpu.dimension_semantics<parallel>, #tpu.dimension_semantics<parallel>], iteration_bounds = array<i64: 2, 1>, scalar_prefetch = 0 : i64, scratch_operands = 0 : i64, tpu.core_type = #tpu.core_type<tc>, window_params = [{transform_indices = @transform_0, window_bounds = array<i64: 1, 8, 32>}, {transform_indices = @transform_1, window_bounds = array<i64: 1, 16, 64>}, {transform_indices = @transform_2, window_bounds = array<i64: 1, 8, 16>}, {transform_indices = @transform_3, window_bounds = array<i64: 1, 8, 32>}, {transform_indices = @transform_4, window_bounds = array<i64: 1, 4, 8, 16>}]} {
    %c0 = arith.constant 0 : index
    %c0_0 = arith.constant 0 : index
    %c0_1 = arith.constant 0 : index
    %0 = vector.load %arg2[%c0, %c0_0, %c0_1] : memref<1x8x32xbf16, #tpu.memory_space<vmem>>, vector<1x8x32xbf16>
    %1 = vector.shape_cast %0 : vector<1x8x32xbf16> to vector<8x32xbf16>
    %c0_2 = arith.constant 0 : index
    %c0_3 = arith.constant 0 : index
    %c0_4 = arith.constant 0 : index
    %2 = vector.load %arg3[%c0_2, %c0_3, %c0_4] : memref<1x16x64xbf16, #tpu.memory_space<vmem>>, vector<1x16x64xbf16>
    %3 = vector.shape_cast %2 : vector<1x16x64xbf16> to vector<16x64xbf16>
    %c0_5 = arith.constant 0 : index
    %c0_6 = arith.constant 0 : index
    %c0_7 = arith.constant 0 : index
    %4 = vector.load %arg4[%c0_5, %c0_6, %c0_7] : memref<1x8x16xi8, #tpu.memory_space<vmem>>, vector<1x8x16xi8>
    %5 = vector.shape_cast %4 : vector<1x8x16xi8> to vector<8x16xi8>
    %6 = arith.sitofp %5 : vector<8x16xi8> to vector<8x16xf32>
    %cst = arith.constant 0.000000e+00 : f32
    %7 = vector.broadcast %cst : f32 to vector<8x16xf32>
    %8 = arith.cmpf one, %6, %7 : vector<8x16xf32>
    %9 = vector.extract_strided_slice %1 {offsets = [0, 0], sizes = [8, 8], strides = [1, 1]} : vector<8x32xbf16> to vector<8x8xbf16>
    %10 = vector.extract_strided_slice %3 {offsets = [0, 0], sizes = [16, 8], strides = [1, 1]} : vector<16x64xbf16> to vector<16x8xbf16>
    %11 = vector.extract_strided_slice %3 {offsets = [0, 32], sizes = [16, 8], strides = [1, 1]} : vector<16x64xbf16> to vector<16x8xbf16>
    %cst_8 = arith.constant dense<0.000000e+00> : vector<8x16xf32>
    %12 = tpu.matmul %9, %10, %cst_8 {dimension_numbers = #tpu.dot_dimension_numbers<[1], [1], [0], [0], [0, 0, 1, 0], [], []>} : vector<8x8xbf16>, vector<16x8xbf16>, vector<8x16xf32> -> vector<8x16xf32>
    %cst_9 = arith.constant -1.000000e+09 : f32
    %13 = vector.broadcast %cst_9 : f32 to vector<8x16xf32>
    %14 = arith.select %8, %12, %13 : vector<8x16xi1>, vector<8x16xf32>
    %cst_10 = arith.constant dense<0xFF800000> : vector<8xf32>
    %15 = vector.multi_reduction <maximumf>, %14, %cst_10 [1] : vector<8x16xf32> to vector<8xf32>
    %16 = vector.shape_cast %15 : vector<8xf32> to vector<8x1xf32>
    %17 = vector.broadcast %16 : vector<8x1xf32> to vector<8x16xf32>
    %18 = arith.subf %14, %17 : vector<8x16xf32>
    %19 = math.exp %18 : vector<8x16xf32>
    %cst_11 = arith.constant dense<0.000000e+00> : vector<8xf32>
    %20 = vector.multi_reduction <add>, %19, %cst_11 [1] : vector<8x16xf32> to vector<8xf32>
    %21 = vector.shape_cast %20 : vector<8xf32> to vector<8x1xf32>
    %22 = vector.broadcast %21 : vector<8x1xf32> to vector<8x16xf32>
    %23 = arith.divf %19, %22 : vector<8x16xf32>
    %24 = arith.truncf %23 : vector<8x16xf32> to vector<8x16xbf16>
    %c0_12 = arith.constant 0 : index
    %c0_13 = arith.constant 0 : index
    %c0_14 = arith.constant 0 : index
    %c0_15 = arith.constant 0 : index
    %25 = vector.load %arg6[%c0_12, %c0_13, %c0_14, %c0_15] : memref<1x4x8x16xbf16, #tpu.memory_space<vmem>>, vector<1x1x8x16xbf16>
    %26 = vector.shape_cast %25 : vector<1x1x8x16xbf16> to vector<8x16xbf16>
    %27 = vector.shape_cast %24 : vector<8x16xbf16> to vector<1x1x8x16xbf16>
    tpu.vector_store %arg6[%c0_12, %c0_13, %c0_14, %c0_15], %27 {strides = array<i32>} : memref<1x4x8x16xbf16, #tpu.memory_space<vmem>>, vector<1x1x8x16xbf16>,
    %28 = arith.truncf %23 : vector<8x16xf32> to vector<8x16xbf16>
    %cst_16 = arith.constant dense<0.000000e+00> : vector<8x8xf32>
    %29 = tpu.matmul %28, %11, %cst_16 {dimension_numbers = #tpu.dot_dimension_numbers<[1], [0], [0], [1], [0, 0, 1, 1], [], []>} : vector<8x16xbf16>, vector<16x8xbf16>, vector<8x8xf32> -> vector<8x8xf32>
    %30 = vector.extract_strided_slice %1 {offsets = [0, 8], sizes = [8, 8], strides = [1, 1]} : vector<8x32xbf16> to vector<8x8xbf16>
    %31 = vector.extract_strided_slice %3 {offsets = [0, 8], sizes = [16, 8], strides = [1, 1]} : vector<16x64xbf16> to vector<16x8xbf16>
    %32 = vector.extract_strided_slice %3 {offsets = [0, 40], sizes = [16, 8], strides = [1, 1]} : vector<16x64xbf16> to vector<16x8xbf16>
    %cst_17 = arith.constant dense<0.000000e+00> : vector<8x16xf32>
    %33 = tpu.matmul %30, %31, %cst_17 {dimension_numbers = #tpu.dot_dimension_numbers<[1], [1], [0], [0], [0, 0, 1, 0], [], []>} : vector<8x8xbf16>, vector<16x8xbf16>, vector<8x16xf32> -> vector<8x16xf32>
    %cst_18 = arith.constant -1.000000e+09 : f32
    %34 = vector.broadcast %cst_18 : f32 to vector<8x16xf32>
    %35 = arith.select %8, %33, %34 : vector<8x16xi1>, vector<8x16xf32>
    %cst_19 = arith.constant dense<0xFF800000> : vector<8xf32>
    %36 = vector.multi_reduction <maximumf>, %35, %cst_19 [1] : vector<8x16xf32> to vector<8xf32>
    %37 = vector.shape_cast %36 : vector<8xf32> to vector<8x1xf32>
    %38 = vector.broadcast %37 : vector<8x1xf32> to vector<8x16xf32>
    %39 = arith.subf %35, %38 : vector<8x16xf32>
    %40 = math.exp %39 : vector<8x16xf32>
    %cst_20 = arith.constant dense<0.000000e+00> : vector<8xf32>
    %41 = vector.multi_reduction <add>, %40, %cst_20 [1] : vector<8x16xf32> to vector<8xf32>
    %42 = vector.shape_cast %41 : vector<8xf32> to vector<8x1xf32>
    %43 = vector.broadcast %42 : vector<8x1xf32> to vector<8x16xf32>
    %44 = arith.divf %40, %43 : vector<8x16xf32>
    %45 = arith.truncf %44 : vector<8x16xf32> to vector<8x16xbf16>
    %c0_21 = arith.constant 0 : index
    %c1 = arith.constant 1 : index
    %c0_22 = arith.constant 0 : index
    %c0_23 = arith.constant 0 : index
    %46 = vector.load %arg6[%c0_21, %c1, %c0_22, %c0_23] : memref<1x4x8x16xbf16, #tpu.memory_space<vmem>>, vector<1x1x8x16xbf16>
    %47 = vector.shape_cast %46 : vector<1x1x8x16xbf16> to vector<8x16xbf16>
    %48 = vector.shape_cast %45 : vector<8x16xbf16> to vector<1x1x8x16xbf16>
    tpu.vector_store %arg6[%c0_21, %c1, %c0_22, %c0_23], %48 {strides = array<i32>} : memref<1x4x8x16xbf16, #tpu.memory_space<vmem>>, vector<1x1x8x16xbf16>,
    %49 = arith.truncf %44 : vector<8x16xf32> to vector<8x16xbf16>
    %cst_24 = arith.constant dense<0.000000e+00> : vector<8x8xf32>
    %50 = tpu.matmul %49, %32, %cst_24 {dimension_numbers = #tpu.dot_dimension_numbers<[1], [0], [0], [1], [0, 0, 1, 1], [], []>} : vector<8x16xbf16>, vector<16x8xbf16>, vector<8x8xf32> -> vector<8x8xf32>
    %51 = vector.extract_strided_slice %1 {offsets = [0, 16], sizes = [8, 8], strides = [1, 1]} : vector<8x32xbf16> to vector<8x8xbf16>
    %52 = vector.extract_strided_slice %3 {offsets = [0, 16], sizes = [16, 8], strides = [1, 1]} : vector<16x64xbf16> to vector<16x8xbf16>
    %53 = vector.extract_strided_slice %3 {offsets = [0, 48], sizes = [16, 8], strides = [1, 1]} : vector<16x64xbf16> to vector<16x8xbf16>
    %cst_25 = arith.constant dense<0.000000e+00> : vector<8x16xf32>
    %54 = tpu.matmul %51, %52, %cst_25 {dimension_numbers = #tpu.dot_dimension_numbers<[1], [1], [0], [0], [0, 0, 1, 0], [], []>} : vector<8x8xbf16>, vector<16x8xbf16>, vector<8x16xf32> -> vector<8x16xf32>
    %cst_26 = arith.constant -1.000000e+09 : f32
    %55 = vector.broadcast %cst_26 : f32 to vector<8x16xf32>
    %56 = arith.select %8, %54, %55 : vector<8x16xi1>, vector<8x16xf32>
    %cst_27 = arith.constant dense<0xFF800000> : vector<8xf32>
    %57 = vector.multi_reduction <maximumf>, %56, %cst_27 [1] : vector<8x16xf32> to vector<8xf32>
    %58 = vector.shape_cast %57 : vector<8xf32> to vector<8x1xf32>
    %59 = vector.broadcast %58 : vector<8x1xf32> to vector<8x16xf32>
    %60 = arith.subf %56, %59 : vector<8x16xf32>
    %61 = math.exp %60 : vector<8x16xf32>
    %cst_28 = arith.constant dense<0.000000e+00> : vector<8xf32>
    %62 = vector.multi_reduction <add>, %61, %cst_28 [1] : vector<8x16xf32> to vector<8xf32>
    %63 = vector.shape_cast %62 : vector<8xf32> to vector<8x1xf32>
    %64 = vector.broadcast %63 : vector<8x1xf32> to vector<8x16xf32>
    %65 = arith.divf %61, %64 : vector<8x16xf32>
    %66 = arith.truncf %65 : vector<8x16xf32> to vector<8x16xbf16>
    %c0_29 = arith.constant 0 : index
    %c2 = arith.constant 2 : index
    %c0_30 = arith.constant 0 : index
    %c0_31 = arith.constant 0 : index
    %67 = vector.load %arg6[%c0_29, %c2, %c0_30, %c0_31] : memref<1x4x8x16xbf16, #tpu.memory_space<vmem>>, vector<1x1x8x16xbf16>
    %68 = vector.shape_cast %67 : vector<1x1x8x16xbf16> to vector<8x16xbf16>
    %69 = vector.shape_cast %66 : vector<8x16xbf16> to vector<1x1x8x16xbf16>
    tpu.vector_store %arg6[%c0_29, %c2, %c0_30, %c0_31], %69 {strides = array<i32>} : memref<1x4x8x16xbf16, #tpu.memory_space<vmem>>, vector<1x1x8x16xbf16>,
    %70 = arith.truncf %65 : vector<8x16xf32> to vector<8x16xbf16>
    %cst_32 = arith.constant dense<0.000000e+00> : vector<8x8xf32>
    %71 = tpu.matmul %70, %53, %cst_32 {dimension_numbers = #tpu.dot_dimension_numbers<[1], [0], [0], [1], [0, 0, 1, 1], [], []>} : vector<8x16xbf16>, vector<16x8xbf16>, vector<8x8xf32> -> vector<8x8xf32>
    %72 = vector.extract_strided_slice %1 {offsets = [0, 24], sizes = [8, 8], strides = [1, 1]} : vector<8x32xbf16> to vector<8x8xbf16>
    %73 = vector.extract_strided_slice %3 {offsets = [0, 24], sizes = [16, 8], strides = [1, 1]} : vector<16x64xbf16> to vector<16x8xbf16>
    %74 = vector.extract_strided_slice %3 {offsets = [0, 56], sizes = [16, 8], strides = [1, 1]} : vector<16x64xbf16> to vector<16x8xbf16>
    %cst_33 = arith.constant dense<0.000000e+00> : vector<8x16xf32>
    %75 = tpu.matmul %72, %73, %cst_33 {dimension_numbers = #tpu.dot_dimension_numbers<[1], [1], [0], [0], [0, 0, 1, 0], [], []>} : vector<8x8xbf16>, vector<16x8xbf16>, vector<8x16xf32> -> vector<8x16xf32>
    %cst_34 = arith.constant -1.000000e+09 : f32
    %76 = vector.broadcast %cst_34 : f32 to vector<8x16xf32>
    %77 = arith.select %8, %75, %76 : vector<8x16xi1>, vector<8x16xf32>
    %cst_35 = arith.constant dense<0xFF800000> : vector<8xf32>
    %78 = vector.multi_reduction <maximumf>, %77, %cst_35 [1] : vector<8x16xf32> to vector<8xf32>
    %79 = vector.shape_cast %78 : vector<8xf32> to vector<8x1xf32>
    %80 = vector.broadcast %79 : vector<8x1xf32> to vector<8x16xf32>
    %81 = arith.subf %77, %80 : vector<8x16xf32>
    %82 = math.exp %81 : vector<8x16xf32>
    %cst_36 = arith.constant dense<0.000000e+00> : vector<8xf32>
    %83 = vector.multi_reduction <add>, %82, %cst_36 [1] : vector<8x16xf32> to vector<8xf32>
    %84 = vector.shape_cast %83 : vector<8xf32> to vector<8x1xf32>
    %85 = vector.broadcast %84 : vector<8x1xf32> to vector<8x16xf32>
    %86 = arith.divf %82, %85 : vector<8x16xf32>
    %87 = arith.truncf %86 : vector<8x16xf32> to vector<8x16xbf16>
    %c0_37 = arith.constant 0 : index
    %c3 = arith.constant 3 : index
    %c0_38 = arith.constant 0 : index
    %c0_39 = arith.constant 0 : index
    %88 = vector.load %arg6[%c0_37, %c3, %c0_38, %c0_39] : memref<1x4x8x16xbf16, #tpu.memory_space<vmem>>, vector<1x1x8x16xbf16>
    %89 = vector.shape_cast %88 : vector<1x1x8x16xbf16> to vector<8x16xbf16>
    %90 = vector.shape_cast %87 : vector<8x16xbf16> to vector<1x1x8x16xbf16>
    tpu.vector_store %arg6[%c0_37, %c3, %c0_38, %c0_39], %90 {strides = array<i32>} : memref<1x4x8x16xbf16, #tpu.memory_space<vmem>>, vector<1x1x8x16xbf16>,
    %91 = arith.truncf %86 : vector<8x16xf32> to vector<8x16xbf16>
    %cst_40 = arith.constant dense<0.000000e+00> : vector<8x8xf32>
    %92 = tpu.matmul %91, %74, %cst_40 {dimension_numbers = #tpu.dot_dimension_numbers<[1], [0], [0], [1], [0, 0, 1, 1], [], []>} : vector<8x16xbf16>, vector<16x8xbf16>, vector<8x8xf32> -> vector<8x8xf32>
    %93 = tpu.concatenate %29, %50, %71, %92 in 1 : vector<8x8xf32>, vector<8x8xf32>, vector<8x8xf32>, vector<8x8xf32> -> vector<8x32xf32>
    %94 = arith.truncf %93 : vector<8x32xf32> to vector<8x32xbf16>
    %c0_41 = arith.constant 0 : index
    %c0_42 = arith.constant 0 : index
    %c0_43 = arith.constant 0 : index
    %95 = vector.load %arg5[%c0_41, %c0_42, %c0_43] : memref<1x8x32xbf16, #tpu.memory_space<vmem>>, vector<1x8x32xbf16>
    %96 = vector.shape_cast %95 : vector<1x8x32xbf16> to vector<8x32xbf16>
    %97 = vector.shape_cast %94 : vector<8x32xbf16> to vector<1x8x32xbf16>
    tpu.vector_store %arg5[%c0_41, %c0_42, %c0_43], %97 {strides = array<i32>} : memref<1x8x32xbf16, #tpu.memory_space<vmem>>, vector<1x8x32xbf16>,
    return
  }
  func.func @transform_0(%arg0: i32, %arg1: i32) -> (i32, i32, i32) {
    %c0_i32 = arith.constant 0 : i32
    %c0_i32_0 = arith.constant 0 : i32
    return %arg0, %arg1, %c0_i32 : i32, i32, i32
  }
  func.func @transform_1(%arg0: i32, %arg1: i32) -> (i32, i32, i32) {
    %c0_i32 = arith.constant 0 : i32
    %c0_i32_0 = arith.constant 0 : i32
    %c0_i32_1 = arith.constant 0 : i32
    return %arg0, %c0_i32, %c0_i32_0 : i32, i32, i32
  }
  func.func @transform_2(%arg0: i32, %arg1: i32) -> (i32, i32, i32) {
    %c0_i32 = arith.constant 0 : i32
    %c0_i32_0 = arith.constant 0 : i32
    return %arg0, %arg1, %c0_i32 : i32, i32, i32
  }
  func.func @transform_3(%arg0: i32, %arg1: i32) -> (i32, i32, i32) {
    %c0_i32 = arith.constant 0 : i32
    %c0_i32_0 = arith.constant 0 : i32
    return %arg0, %arg1, %c0_i32 : i32, i32, i32
  }
  func.func @transform_4(%arg0: i32, %arg1: i32) -> (i32, i32, i32, i32) {
    %c0_i32 = arith.constant 0 : i32
    %c0_i32_0 = arith.constant 0 : i32
    %c0_i32_1 = arith.constant 0 : i32
    return %arg0, %c0_i32, %arg1, %c0_i32_0 : i32, i32, i32, i32
  }
}

module attributes {stable_mosaic.version = 11 : i64} {
  func.func @ff_conv1_kernel(%arg0: i32, %arg1: memref<1x8x32xbf16, #tpu.memory_space<vmem>>, %arg2: memref<1x32xf32, #tpu.memory_space<vmem>>, %arg3: memref<1x32xf32, #tpu.memory_space<vmem>>, %arg4: memref<3x32x64xbf16, #tpu.memory_space<vmem>>, %arg5: memref<1x64xf32, #tpu.memory_space<vmem>>, %arg6: memref<1x8x64xbf16, #tpu.memory_space<vmem>>, %arg7: memref<10x32xbf16, #tpu.memory_space<vmem>>) attributes {dimension_semantics = [#tpu.dimension_semantics<parallel>], iteration_bounds = array<i64: 2>, scalar_prefetch = 0 : i64, scratch_operands = 1 : i64, tpu.core_type = #tpu.core_type<tc>, window_params = [{transform_indices = @transform_0, window_bounds = array<i64: 1, 8, 32>}, {pipeline_mode = #tpu.pipeline_mode<synchronous>, transform_indices = @transform_1, window_bounds = array<i64: 1, 32>}, {pipeline_mode = #tpu.pipeline_mode<synchronous>, transform_indices = @transform_2, window_bounds = array<i64: 1, 32>}, {pipeline_mode = #tpu.pipeline_mode<synchronous>, transform_indices = @transform_3, window_bounds = array<i64: 3, 32, 64>}, {pipeline_mode = #tpu.pipeline_mode<synchronous>, transform_indices = @transform_4, window_bounds = array<i64: 1, 64>}, {transform_indices = @transform_5, window_bounds = array<i64: 1, 8, 64>}]} {
    %c0 = arith.constant 0 : index
    %c0_0 = arith.constant 0 : index
    %c0_1 = arith.constant 0 : index
    %0 = vector.load %arg1[%c0, %c0_0, %c0_1] : memref<1x8x32xbf16, #tpu.memory_space<vmem>>, vector<1x8x32xbf16>
    %1 = vector.shape_cast %0 : vector<1x8x32xbf16> to vector<8x32xbf16>
    %2 = arith.extf %1 : vector<8x32xbf16> to vector<8x32xf32>
    %c0_2 = arith.constant 0 : index
    %c0_3 = arith.constant 0 : index
    %3 = vector.load %arg2[%c0_2, %c0_3] : memref<1x32xf32, #tpu.memory_space<vmem>>, vector<1x32xf32>
    %c0_4 = arith.constant 0 : index
    %c0_5 = arith.constant 0 : index
    %4 = vector.load %arg3[%c0_4, %c0_5] : memref<1x32xf32, #tpu.memory_space<vmem>>, vector<1x32xf32>
    %cst = arith.constant dense<0.000000e+00> : vector<8xf32>
    %5 = vector.multi_reduction <add>, %2, %cst [1] : vector<8x32xf32> to vector<8xf32>
    %6 = vector.shape_cast %5 : vector<8xf32> to vector<8x1xf32>
    %cst_6 = arith.constant 3.200000e+01 : f32
    %7 = vector.broadcast %cst_6 : f32 to vector<8x1xf32>
    %8 = arith.divf %6, %7 : vector<8x1xf32>
    %9 = vector.broadcast %8 : vector<8x1xf32> to vector<8x32xf32>
    %10 = arith.subf %2, %9 : vector<8x32xf32>
    %11 = arith.mulf %10, %10 : vector<8x32xf32>
    %cst_7 = arith.constant dense<0.000000e+00> : vector<8xf32>
    %12 = vector.multi_reduction <add>, %11, %cst_7 [1] : vector<8x32xf32> to vector<8xf32>
    %13 = vector.shape_cast %12 : vector<8xf32> to vector<8x1xf32>
    %cst_8 = arith.constant 3.200000e+01 : f32
    %14 = vector.broadcast %cst_8 : f32 to vector<8x1xf32>
    %15 = arith.divf %13, %14 : vector<8x1xf32>
    %cst_9 = arith.constant 9.99999974E-6 : f32
    %16 = vector.broadcast %cst_9 : f32 to vector<8x1xf32>
    %17 = arith.addf %15, %16 : vector<8x1xf32>
    %18 = math.rsqrt %17 : vector<8x1xf32>
    %19 = vector.broadcast %18 : vector<8x1xf32> to vector<8x32xf32>
    %20 = arith.mulf %10, %19 : vector<8x32xf32>
    %21 = vector.broadcast %3 : vector<1x32xf32> to vector<8x32xf32>
    %22 = arith.mulf %20, %21 : vector<8x32xf32>
    %23 = vector.broadcast %4 : vector<1x32xf32> to vector<8x32xf32>
    %24 = arith.addf %22, %23 : vector<8x32xf32>
    %cst_10 = arith.constant 0.000000e+00 : bf16
    %25 = vector.broadcast %cst_10 : bf16 to vector<1x32xbf16>
    %c0_11 = arith.constant 0 : index
    %c0_12 = arith.constant 0 : index
    %26 = vector.load %arg7[%c0_11, %c0_12] : memref<10x32xbf16, #tpu.memory_space<vmem>>, vector<1x32xbf16>
    tpu.vector_store %arg7[%c0_11, %c0_12], %25 {strides = array<i32>} : memref<10x32xbf16, #tpu.memory_space<vmem>>, vector<1x32xbf16>,
    %cst_13 = arith.constant 0.000000e+00 : bf16
    %27 = vector.broadcast %cst_13 : bf16 to vector<1x32xbf16>
    %c9 = arith.constant 9 : index
    %c0_14 = arith.constant 0 : index
    %28 = vector.load %arg7[%c9, %c0_14] : memref<10x32xbf16, #tpu.memory_space<vmem>>, vector<1x32xbf16>
    tpu.vector_store %arg7[%c9, %c0_14], %27 {strides = array<i32>} : memref<10x32xbf16, #tpu.memory_space<vmem>>, vector<1x32xbf16>,
    %29 = arith.truncf %24 : vector<8x32xf32> to vector<8x32xbf16>
    %c1 = arith.constant 1 : index
    %c0_15 = arith.constant 0 : index
    %30 = vector.load %arg7[%c1, %c0_15] : memref<10x32xbf16, #tpu.memory_space<vmem>>, vector<8x32xbf16>
    tpu.vector_store %arg7[%c1, %c0_15], %29 {strides = array<i32>} : memref<10x32xbf16, #tpu.memory_space<vmem>>, vector<8x32xbf16>,
    %cst_16 = arith.constant 0.000000e+00 : f32
    %31 = vector.broadcast %cst_16 : f32 to vector<8x64xf32>
    %c0_17 = arith.constant 0 : index
    %c0_18 = arith.constant 0 : index
    %32 = vector.load %arg7[%c0_17, %c0_18] : memref<10x32xbf16, #tpu.memory_space<vmem>>, vector<8x32xbf16>
    %c0_19 = arith.constant 0 : index
    %c0_20 = arith.constant 0 : index
    %c0_21 = arith.constant 0 : index
    %33 = vector.load %arg4[%c0_19, %c0_20, %c0_21] : memref<3x32x64xbf16, #tpu.memory_space<vmem>>, vector<1x32x64xbf16>
    %34 = vector.shape_cast %33 : vector<1x32x64xbf16> to vector<32x64xbf16>
    %cst_22 = arith.constant dense<0.000000e+00> : vector<8x64xf32>
    %35 = tpu.matmul %32, %34, %cst_22 {dimension_numbers = #tpu.dot_dimension_numbers<[1], [0], [0], [1], [0, 0, 1, 1], [], []>} : vector<8x32xbf16>, vector<32x64xbf16>, vector<8x64xf32> -> vector<8x64xf32>
    %36 = arith.addf %31, %35 : vector<8x64xf32>
    %c1_23 = arith.constant 1 : index
    %c0_24 = arith.constant 0 : index
    %37 = vector.load %arg7[%c1_23, %c0_24] : memref<10x32xbf16, #tpu.memory_space<vmem>>, vector<8x32xbf16>
    %c1_25 = arith.constant 1 : index
    %c0_26 = arith.constant 0 : index
    %c0_27 = arith.constant 0 : index
    %38 = vector.load %arg4[%c1_25, %c0_26, %c0_27] : memref<3x32x64xbf16, #tpu.memory_space<vmem>>, vector<1x32x64xbf16>
    %39 = vector.shape_cast %38 : vector<1x32x64xbf16> to vector<32x64xbf16>
    %cst_28 = arith.constant dense<0.000000e+00> : vector<8x64xf32>
    %40 = tpu.matmul %37, %39, %cst_28 {dimension_numbers = #tpu.dot_dimension_numbers<[1], [0], [0], [1], [0, 0, 1, 1], [], []>} : vector<8x32xbf16>, vector<32x64xbf16>, vector<8x64xf32> -> vector<8x64xf32>
    %41 = arith.addf %36, %40 : vector<8x64xf32>
    %c2 = arith.constant 2 : index
    %c0_29 = arith.constant 0 : index
    %42 = vector.load %arg7[%c2, %c0_29] : memref<10x32xbf16, #tpu.memory_space<vmem>>, vector<8x32xbf16>
    %c2_30 = arith.constant 2 : index
    %c0_31 = arith.constant 0 : index
    %c0_32 = arith.constant 0 : index
    %43 = vector.load %arg4[%c2_30, %c0_31, %c0_32] : memref<3x32x64xbf16, #tpu.memory_space<vmem>>, vector<1x32x64xbf16>
    %44 = vector.shape_cast %43 : vector<1x32x64xbf16> to vector<32x64xbf16>
    %cst_33 = arith.constant dense<0.000000e+00> : vector<8x64xf32>
    %45 = tpu.matmul %42, %44, %cst_33 {dimension_numbers = #tpu.dot_dimension_numbers<[1], [0], [0], [1], [0, 0, 1, 1], [], []>} : vector<8x32xbf16>, vector<32x64xbf16>, vector<8x64xf32> -> vector<8x64xf32>
    %46 = arith.addf %41, %45 : vector<8x64xf32>
    %c0_34 = arith.constant 0 : index
    %c0_35 = arith.constant 0 : index
    %47 = vector.load %arg5[%c0_34, %c0_35] : memref<1x64xf32, #tpu.memory_space<vmem>>, vector<1x64xf32>
    %48 = vector.broadcast %47 : vector<1x64xf32> to vector<8x64xf32>
    %49 = arith.addf %46, %48 : vector<8x64xf32>
    %cst_36 = arith.constant 0.000000e+00 : f32
    %50 = vector.broadcast %cst_36 : f32 to vector<8x64xf32>
    %51 = arith.maximumf %49, %50 : vector<8x64xf32>
    %52 = arith.truncf %51 : vector<8x64xf32> to vector<8x64xbf16>
    %c0_37 = arith.constant 0 : index
    %c0_38 = arith.constant 0 : index
    %c0_39 = arith.constant 0 : index
    %53 = vector.load %arg6[%c0_37, %c0_38, %c0_39] : memref<1x8x64xbf16, #tpu.memory_space<vmem>>, vector<1x8x64xbf16>
    %54 = vector.shape_cast %53 : vector<1x8x64xbf16> to vector<8x64xbf16>
    %55 = vector.shape_cast %52 : vector<8x64xbf16> to vector<1x8x64xbf16>
    tpu.vector_store %arg6[%c0_37, %c0_38, %c0_39], %55 {strides = array<i32>} : memref<1x8x64xbf16, #tpu.memory_space<vmem>>, vector<1x8x64xbf16>,
    return
  }
  func.func @transform_0(%arg0: i32) -> (i32, i32, i32) {
    %c0_i32 = arith.constant 0 : i32
    %c0_i32_0 = arith.constant 0 : i32
    %c0_i32_1 = arith.constant 0 : i32
    return %arg0, %c0_i32, %c0_i32_0 : i32, i32, i32
  }
  func.func @transform_1(%arg0: i32) -> (i32, i32) {
    %c0_i32 = arith.constant 0 : i32
    %c0_i32_0 = arith.constant 0 : i32
    %c0_i32_1 = arith.constant 0 : i32
    return %c0_i32, %c0_i32_0 : i32, i32
  }
  func.func @transform_2(%arg0: i32) -> (i32, i32) {
    %c0_i32 = arith.constant 0 : i32
    %c0_i32_0 = arith.constant 0 : i32
    %c0_i32_1 = arith.constant 0 : i32
    return %c0_i32, %c0_i32_0 : i32, i32
  }
  func.func @transform_3(%arg0: i32) -> (i32, i32, i32) {
    %c0_i32 = arith.constant 0 : i32
    %c0_i32_0 = arith.constant 0 : i32
    %c0_i32_1 = arith.constant 0 : i32
    %c0_i32_2 = arith.constant 0 : i32
    return %c0_i32, %c0_i32_0, %c0_i32_1 : i32, i32, i32
  }
  func.func @transform_4(%arg0: i32) -> (i32, i32) {
    %c0_i32 = arith.constant 0 : i32
    %c0_i32_0 = arith.constant 0 : i32
    %c0_i32_1 = arith.constant 0 : i32
    return %c0_i32, %c0_i32_0 : i32, i32
  }
  func.func @transform_5(%arg0: i32) -> (i32, i32, i32) {
    %c0_i32 = arith.constant 0 : i32
    %c0_i32_0 = arith.constant 0 : i32
    %c0_i32_1 = arith.constant 0 : i32
    return %arg0, %c0_i32, %c0_i32_0 : i32, i32, i32
  }
}

module attributes {stable_mosaic.version = 11 : i64} {
  func.func @ff_conv2_kernel(%arg0: i32, %arg1: memref<1x8x64xbf16, #tpu.memory_space<vmem>>, %arg2: memref<3x64x32xbf16, #tpu.memory_space<vmem>>, %arg3: memref<1x32xf32, #tpu.memory_space<vmem>>, %arg4: memref<1x8x32xbf16, #tpu.memory_space<vmem>>, %arg5: memref<1x8x32xf32, #tpu.memory_space<vmem>>, %arg6: memref<10x64xbf16, #tpu.memory_space<vmem>>) attributes {dimension_semantics = [#tpu.dimension_semantics<parallel>], iteration_bounds = array<i64: 2>, scalar_prefetch = 0 : i64, scratch_operands = 1 : i64, tpu.core_type = #tpu.core_type<tc>, window_params = [{transform_indices = @transform_0, window_bounds = array<i64: 1, 8, 64>}, {pipeline_mode = #tpu.pipeline_mode<synchronous>, transform_indices = @transform_1, window_bounds = array<i64: 3, 64, 32>}, {pipeline_mode = #tpu.pipeline_mode<synchronous>, transform_indices = @transform_2, window_bounds = array<i64: 1, 32>}, {transform_indices = @transform_3, window_bounds = array<i64: 1, 8, 32>}, {transform_indices = @transform_4, window_bounds = array<i64: 1, 8, 32>}]} {
    %cst = arith.constant 0.000000e+00 : bf16
    %0 = vector.broadcast %cst : bf16 to vector<1x64xbf16>
    %c0 = arith.constant 0 : index
    %c0_0 = arith.constant 0 : index
    %1 = vector.load %arg6[%c0, %c0_0] : memref<10x64xbf16, #tpu.memory_space<vmem>>, vector<1x64xbf16>
    tpu.vector_store %arg6[%c0, %c0_0], %0 {strides = array<i32>} : memref<10x64xbf16, #tpu.memory_space<vmem>>, vector<1x64xbf16>,
    %cst_1 = arith.constant 0.000000e+00 : bf16
    %2 = vector.broadcast %cst_1 : bf16 to vector<1x64xbf16>
    %c9 = arith.constant 9 : index
    %c0_2 = arith.constant 0 : index
    %3 = vector.load %arg6[%c9, %c0_2] : memref<10x64xbf16, #tpu.memory_space<vmem>>, vector<1x64xbf16>
    tpu.vector_store %arg6[%c9, %c0_2], %2 {strides = array<i32>} : memref<10x64xbf16, #tpu.memory_space<vmem>>, vector<1x64xbf16>,
    %c0_3 = arith.constant 0 : index
    %c0_4 = arith.constant 0 : index
    %c0_5 = arith.constant 0 : index
    %4 = vector.load %arg1[%c0_3, %c0_4, %c0_5] : memref<1x8x64xbf16, #tpu.memory_space<vmem>>, vector<1x8x64xbf16>
    %5 = vector.shape_cast %4 : vector<1x8x64xbf16> to vector<8x64xbf16>
    %c1 = arith.constant 1 : index
    %c0_6 = arith.constant 0 : index
    %6 = vector.load %arg6[%c1, %c0_6] : memref<10x64xbf16, #tpu.memory_space<vmem>>, vector<8x64xbf16>
    tpu.vector_store %arg6[%c1, %c0_6], %5 {strides = array<i32>} : memref<10x64xbf16, #tpu.memory_space<vmem>>, vector<8x64xbf16>,
    %cst_7 = arith.constant 0.000000e+00 : f32
    %7 = vector.broadcast %cst_7 : f32 to vector<8x32xf32>
    %c0_8 = arith.constant 0 : index
    %c0_9 = arith.constant 0 : index
    %8 = vector.load %arg6[%c0_8, %c0_9] : memref<10x64xbf16, #tpu.memory_space<vmem>>, vector<8x64xbf16>
    %c0_10 = arith.constant 0 : index
    %c0_11 = arith.constant 0 : index
    %c0_12 = arith.constant 0 : index
    %9 = vector.load %arg2[%c0_10, %c0_11, %c0_12] : memref<3x64x32xbf16, #tpu.memory_space<vmem>>, vector<1x64x32xbf16>
    %10 = vector.shape_cast %9 : vector<1x64x32xbf16> to vector<64x32xbf16>
    %cst_13 = arith.constant dense<0.000000e+00> : vector<8x32xf32>
    %11 = tpu.matmul %8, %10, %cst_13 {dimension_numbers = #tpu.dot_dimension_numbers<[1], [0], [0], [1], [0, 0, 1, 1], [], []>} : vector<8x64xbf16>, vector<64x32xbf16>, vector<8x32xf32> -> vector<8x32xf32>
    %12 = arith.addf %7, %11 : vector<8x32xf32>
    %c1_14 = arith.constant 1 : index
    %c0_15 = arith.constant 0 : index
    %13 = vector.load %arg6[%c1_14, %c0_15] : memref<10x64xbf16, #tpu.memory_space<vmem>>, vector<8x64xbf16>
    %c1_16 = arith.constant 1 : index
    %c0_17 = arith.constant 0 : index
    %c0_18 = arith.constant 0 : index
    %14 = vector.load %arg2[%c1_16, %c0_17, %c0_18] : memref<3x64x32xbf16, #tpu.memory_space<vmem>>, vector<1x64x32xbf16>
    %15 = vector.shape_cast %14 : vector<1x64x32xbf16> to vector<64x32xbf16>
    %cst_19 = arith.constant dense<0.000000e+00> : vector<8x32xf32>
    %16 = tpu.matmul %13, %15, %cst_19 {dimension_numbers = #tpu.dot_dimension_numbers<[1], [0], [0], [1], [0, 0, 1, 1], [], []>} : vector<8x64xbf16>, vector<64x32xbf16>, vector<8x32xf32> -> vector<8x32xf32>
    %17 = arith.addf %12, %16 : vector<8x32xf32>
    %c2 = arith.constant 2 : index
    %c0_20 = arith.constant 0 : index
    %18 = vector.load %arg6[%c2, %c0_20] : memref<10x64xbf16, #tpu.memory_space<vmem>>, vector<8x64xbf16>
    %c2_21 = arith.constant 2 : index
    %c0_22 = arith.constant 0 : index
    %c0_23 = arith.constant 0 : index
    %19 = vector.load %arg2[%c2_21, %c0_22, %c0_23] : memref<3x64x32xbf16, #tpu.memory_space<vmem>>, vector<1x64x32xbf16>
    %20 = vector.shape_cast %19 : vector<1x64x32xbf16> to vector<64x32xbf16>
    %cst_24 = arith.constant dense<0.000000e+00> : vector<8x32xf32>
    %21 = tpu.matmul %18, %20, %cst_24 {dimension_numbers = #tpu.dot_dimension_numbers<[1], [0], [0], [1], [0, 0, 1, 1], [], []>} : vector<8x64xbf16>, vector<64x32xbf16>, vector<8x32xf32> -> vector<8x32xf32>
    %22 = arith.addf %17, %21 : vector<8x32xf32>
    %c0_25 = arith.constant 0 : index
    %c0_26 = arith.constant 0 : index
    %23 = vector.load %arg3[%c0_25, %c0_26] : memref<1x32xf32, #tpu.memory_space<vmem>>, vector<1x32xf32>
    %24 = vector.broadcast %23 : vector<1x32xf32> to vector<8x32xf32>
    %25 = arith.addf %22, %24 : vector<8x32xf32>
    %c0_27 = arith.constant 0 : index
    %c0_28 = arith.constant 0 : index
    %c0_29 = arith.constant 0 : index
    %26 = vector.load %arg4[%c0_27, %c0_28, %c0_29] : memref<1x8x32xbf16, #tpu.memory_space<vmem>>, vector<1x8x32xbf16>
    %27 = vector.shape_cast %26 : vector<1x8x32xbf16> to vector<8x32xbf16>
    %28 = arith.extf %27 : vector<8x32xbf16> to vector<8x32xf32>
    %29 = arith.addf %28, %25 : vector<8x32xf32>
    %c0_30 = arith.constant 0 : index
    %c0_31 = arith.constant 0 : index
    %c0_32 = arith.constant 0 : index
    %30 = vector.load %arg5[%c0_30, %c0_31, %c0_32] : memref<1x8x32xf32, #tpu.memory_space<vmem>>, vector<1x8x32xf32>
    %31 = vector.shape_cast %30 : vector<1x8x32xf32> to vector<8x32xf32>
    %32 = vector.shape_cast %29 : vector<8x32xf32> to vector<1x8x32xf32>
    tpu.vector_store %arg5[%c0_30, %c0_31, %c0_32], %32 {strides = array<i32>} : memref<1x8x32xf32, #tpu.memory_space<vmem>>, vector<1x8x32xf32>,
    return
  }
  func.func @transform_0(%arg0: i32) -> (i32, i32, i32) {
    %c0_i32 = arith.constant 0 : i32
    %c0_i32_0 = arith.constant 0 : i32
    %c0_i32_1 = arith.constant 0 : i32
    return %arg0, %c0_i32, %c0_i32_0 : i32, i32, i32
  }
  func.func @transform_1(%arg0: i32) -> (i32, i32, i32) {
    %c0_i32 = arith.constant 0 : i32
    %c0_i32_0 = arith.constant 0 : i32
    %c0_i32_1 = arith.constant 0 : i32
    %c0_i32_2 = arith.constant 0 : i32
    return %c0_i32, %c0_i32_0, %c0_i32_1 : i32, i32, i32
  }
  func.func @transform_2(%arg0: i32) -> (i32, i32) {
    %c0_i32 = arith.constant 0 : i32
    %c0_i32_0 = arith.constant 0 : i32
    %c0_i32_1 = arith.constant 0 : i32
    return %c0_i32, %c0_i32_0 : i32, i32
  }
  func.func @transform_3(%arg0: i32) -> (i32, i32, i32) {
    %c0_i32 = arith.constant 0 : i32
    %c0_i32_0 = arith.constant 0 : i32
    %c0_i32_1 = arith.constant 0 : i32
    return %arg0, %c0_i32, %c0_i32_0 : i32, i32, i32
  }
  func.func @transform_4(%arg0: i32) -> (i32, i32, i32) {
    %c0_i32 = arith.constant 0 : i32
    %c0_i32_0 = arith.constant 0 : i32
    %c0_i32_1 = arith.constant 0 : i32
    return %arg0, %c0_i32, %c0_i32_0 : i32, i32, i32
  }
}

</mosaic_0001>

<bundles_post_ra>
// kernel: decoder_layer.9
= control target key start
LH: loop header
LB: loop body
LE: loop exit
PB: predicated region body
PF: predicated region fallthrough
CT: control target
= control target key end

     0   :  { %vm29_vm0 = vcmask 261120   ;;  %v203_v15 = vmov 0.0   ;;  %vm204_vm1 = vmmov 0   ;;  %vm149_vm2 = vcmask 257024   ;;  %s276_s0 = inlined_call_operand.vmem [shape: bf16[16,32], index: 0, kind: input, shape index: {}]   ;;  %s277_s3 = inlined_call_operand.vmem [shape: bf16[32,96], index: 3, kind: input, shape index: {}]   ;;  %s278_s1 = inlined_call_operand.vmem [shape: f32[1,32], index: 1, kind: input, shape index: {}]   ;;  %s279_s2 = inlined_call_operand.vmem [shape: f32[1,32], index: 2, kind: input, shape index: {}]   ;;  %s280_s4 = inlined_call_operand.vmem [shape: f32[1,96], index: 4, kind: input, shape index: {}]   ;;  %s281_s5 = inlined_call_operand.vmem [shape: bf16[16,32], index: 5, kind: output, shape index: {0}]   ;;  %s282_s6 = inlined_call_operand.vmem [shape: bf16[16,64], index: 6, kind: output, shape index: {1}]  }
   0x1   :  { %v180_v0 = vld [vmem:[%s276_s0] sm:$0xff]   ;;  %186 = vmatprep.subr.bf16.mxu0 %v203_v15  ;;  %v197_v16 = vld [vmem:[%s277_s3 + $0x8] sm:$0xff]   ;;  %190 = vmatprep.mubr.msk.bf16.mxu0 %vm204_vm1, %v203_v15  ;;  %vm158_vm3 = vcmask 519168  }
   0x2   :  { %v181_v1 = vunpack.c.l.bf16 %v180_v0  ;;  %v182_v2 = vunpack.c.h.bf16 %v180_v0  ;;  %187 = vmatpush3.bf16.msra.mxu0 %v197_v16  ;;  %v198_v17 = vld [vmem:[%s277_s3] sm:$0xff]  }
   0x3   :  { %188 = vmatprep.subr.bf16.mxu0 %v203_v15  ;;  %v169_v26 = vld [vmem:[%s278_s1] ss:$0 sm:$0xff] }
   0x4   :  { %v30_v3 = vsel %vm29_vm0, %v181_v1, 0.0  ;;  %v33_v4 = vsel %vm29_vm0, %v182_v2, 0.0  ;;  %v170_v30 = vld [vmem:[%s279_s2] ss:$0 sm:$0xff]  ;;  %s205_s2 = smov 96  }
   0x5   :  { %31 = vadd.xlane.f32.xlu0 %v30_v3  ;;  %v171_v35 = vld [vmem:[%s280_s4] ss:$0 sm:$0xff] }
   0x6   :  { %189 = vmatpush3.bf16.msra.mxu0 %v198_v17 }
   0x9   :  { %34 = vadd.xlane.f32.xlu0 %v33_v4 }
  0x8e   :  { %v32_v5 = vpop.xlane.xlu0 %31 }
  0x8f   :  { %v37_v6 = vmul.f32 0.03125, %v32_v5 }
  0x91   :  { %v39_v7 = vsub.f32 %v181_v1, %v37_v6 }
  0x92   :  { %v35_v8 = vpop.xlane.xlu0 %34 }
  0x93   :  { %v38_v9 = vmul.f32 0.03125, %v35_v8  ;;  %v41_v10 = vmul.f32 %v39_v7, %v39_v7 }
  0x95   :  { %v40_v11 = vsub.f32 %v182_v2, %v38_v9  ;;  %v43_v12 = vsel %vm29_vm0, %v41_v10, 0.0 }
  0x96   :  { %44 = vadd.xlane.f32.xlu1 %v43_v12 }
  0x97   :  { %v42_v13 = vmul.f32 %v40_v11, %v40_v11 }
  0x99   :  { %v46_v14 = vsel %vm29_vm0, %v42_v13, 0.0 }
  0x9a   :  { %47 = vadd.xlane.f32.xlu1 %v46_v14 }
 0x11f   :  { %v45_v18 = vpop.xlane.xlu1 %44 }
 0x120   :  { %v49_v19 = vmul.f32 0.03125, %v45_v18 }
 0x122   :  { %v51_v20 = vadd.f32 1e-05, %v49_v19 }
 0x123   :  { %v48_v21 = vpop.xlane.xlu1 %47 }
 0x124   :  { %199 = vrsqrt.f32 %v51_v20  ;;  %v50_v22 = vmul.f32 0.03125, %v48_v21 }
 0x126   :  { %v52_v23 = vadd.f32 1e-05, %v50_v22 }
 0x128   :  { %201 = vrsqrt.f32 %v52_v23 }
 0x131   :  { %v200_v24 = vpop.eup %199 }
 0x132   :  { %v55_v25 = vmul.f32 %v200_v24, %v39_v7 }
 0x134   :  { %v63_v29 = vmul.f32 %v169_v26, %v55_v25 }
 0x135   :  { %v202_v27 = vpop.eup %201 }
 0x136   :  { %v56_v28 = vmul.f32 %v202_v27, %v40_v11  ;;  %v71_v32 = vadd.f32 %v170_v30, %v63_v29 }
 0x138   :  { %v64_v31 = vmul.f32 %v169_v26, %v56_v28 }
 0x13a   :  { %v72_v33 = vadd.f32 %v170_v30, %v64_v31 }
 0x13c   :  { %v73_v34 = vpack.c.bf16 %v72_v33, %v71_v32 }
 0x13e   :  { %191 = vmatmul.mubr.msk.bf16.vlgmr.msra.gmra.mxu0 %vm29_vm0, %v73_v34 }
 0x1fe   :  { %v134_v36 = vpop.f32.mrf.mxu0 }
 0x1ff   :  { %v135_v37 = vadd.f32 %v171_v35, %v134_v36 }
 0x200   :  { %v192_v38 = vpop.f32.mrf.mxu0 }
 0x201   :  { %v177_v39 = vpack.c.bf16 %v135_v37, %v135_v37 }
 0x202   :  { %v137_v40 = vpop.f32.mrf.mxu0 }
 0x203   :  { %150 = vst.msk [vmem:[%s281_s5] sm:$0xf] %vm149_vm2, %v177_v39  ;;  %v138_v41 = vadd.f32 %v171_v35, %v137_v40  ;;  %152 = vrot.lane.b32.xlu0 %v177_v39, %s205_s2 }
 0x204   :  { %v193_v42 = vpop.f32.mrf.mxu0 }
 0x205   :  { %v178_v43 = vpack.c.bf16 %v138_v41, %v138_v41 }
 0x207   :  { %151 = vst.msk [vmem:[%s281_s5 + $0x4] sm:$0xf] %vm149_vm2, %v178_v43  ;;  %154 = vrot.lane.b32.xlu1 %v178_v43, %s205_s2 }
 0x275   :  { %v153_v44 = vpop.permute.xlu0 %152 }
 0x276   :  { %159 = vst.msk [vmem:[%s282_s6] sm:$0xf] %vm158_vm3, %v153_v44 }
 0x279   :  { %v155_v45 = vpop.permute.xlu1 %154 }
 0x27a   :  { %160 = vst.msk [vmem:[%s282_s6 + $0x4] sm:$0xf] %vm158_vm3, %v155_v45 }

// kernel: decoder_layer.13
= control target key start
LH: loop header
LB: loop body
LE: loop exit
PB: predicated region body
PF: predicated region fallthrough
CT: control target
= control target key end

     0   :  { %vm52_vm0 = vcmask 261120   ;;  %vm124_vm1 = vcmask 519168   ;;  %s211_s1 = inlined_call_operand.vmem [shape: bf16[32,64], index: 1, kind: input, shape index: {}]   ;;  %s212_s0 = inlined_call_operand.vmem [shape: bf16[32,32], index: 0, kind: input, shape index: {}]   ;;  %s213_s2 = inlined_call_operand.vmem [shape: f32[1,64], index: 2, kind: input, shape index: {}]   ;;  %s214_s3 = inlined_call_operand.vmem [shape: bf16[32,64], index: 3, kind: output, shape index: {}]  }
   0x1   :  { %v160_v0 = vld [vmem:[%s211_s1 + $0x8] sm:$0xff]   ;;  %v161_v1 = vld [vmem:[%s211_s1] sm:$0xff]  }
   0x2   :  { %152 = vmatprep.subr.bf16.mxu0 %v160_v0  ;;  %v162_v2 = vld [vmem:[%s212_s0] sm:$0xff]   ;;  %v163_v3 = vld [vmem:[%s212_s0 + $0x8] sm:$0xff]  }
   0x3   :  { %153 = vmatpush3.bf16.msra.mxu0 %v160_v0  ;;  %156 = vmatprep.mubr.msk.bf16.mxu0 %vm52_vm0, %v162_v2  ;;  %v133_v4 = vld [vmem:[%s213_s2] ss:$0 sm:$0xff] }
   0x4   :  { %154 = vmatprep.subr.bf16.mxu0 %v161_v1 }
   0x7   :  { %155 = vmatpush3.bf16.msra.mxu0 %v161_v1 }
   0xa   :  { %157 = vmatmul.mubr.msk.bf16.vlgmr.msra.gmra.mxu0 %vm52_vm0, %v163_v3 }
  0xca   :  { %v158_v5 = vpop.f32.mrf.mxu0 }
  0xcb   :  { %v102_v6 = vadd.f32 %v158_v5, %v133_v4 }
  0xcc   :  { %v93_v7 = vpop.f32.mrf.mxu0 }
  0xcd   :  { %v146_v8 = vpack.c.bf16 %v102_v6, %v102_v6  ;;  %v94_v9 = vadd.f32 %v133_v4, %v93_v7 }
  0xce   :  { %v159_v10 = vpop.f32.mrf.mxu0 }
  0xcf   :  { %127 = vst.msk [vmem:[%s214_s3 + $0x8] sm:$0xf] %vm124_vm1, %v146_v8  ;;  %v144_v11 = vpack.c.bf16 %v94_v9, %v94_v9  ;;  %v105_v12 = vadd.f32 %v159_v10, %v133_v4 }
  0xd0   :  { %v96_v13 = vpop.f32.mrf.mxu0 }
  0xd1   :  { %125 = vst.msk [vmem:[%s214_s3] sm:$0xf] %vm124_vm1, %v144_v11  ;;  %v147_v14 = vpack.c.bf16 %v105_v12, %v105_v12  ;;  %v97_v15 = vadd.f32 %v133_v4, %v96_v13 }
  0xd3   :  { %128 = vst.msk [vmem:[%s214_s3 + $0xc] sm:$0xf] %vm124_vm1, %v147_v14  ;;  %v145_v16 = vpack.c.bf16 %v97_v15, %v97_v15 }
  0xd5   :  { %126 = vst.msk [vmem:[%s214_s3 + $0x4] sm:$0xf] %vm124_vm1, %v145_v16 }

// kernel: decoder_layer.11
= control target key start
LH: loop header
LB: loop body
LE: loop exit
PB: predicated region body
PF: predicated region fallthrough
CT: control target
= control target key end

     0   :  { %v143_v0 = vmov 0.0   ;;  %vm144_vm0 = vmmov 0   ;;  %vm48_vm1 = vcmask 261120   ;;  %vm107_vm2 = vcmask 257024   ;;  %s191_s1 = inlined_call_operand.vmem [shape: bf16[32,32], index: 1, kind: input, shape index: {}]   ;;  %s192_s0 = inlined_call_operand.vmem [shape: bf16[16,32], index: 0, kind: input, shape index: {}]   ;;  %s193_s3 = inlined_call_operand.vmem [shape: bf16[16,32], index: 3, kind: input, shape index: {}]   ;;  %s194_s2 = inlined_call_operand.vmem [shape: f32[1,32], index: 2, kind: input, shape index: {}]   ;;  %s195_s4 = inlined_call_operand.vmem [shape: bf16[16,32], index: 4, kind: output, shape index: {}]  }
   0x1   :  { %130 = vmatprep.subr.bf16.mxu0 %v143_v0  ;;  %v140_v1 = vld [vmem:[%s191_s1 + $0x8] sm:$0xff]   ;;  %134 = vmatprep.mubr.msk.bf16.mxu0 %vm144_vm0, %v143_v0  ;;  %v141_v2 = vld [vmem:[%s191_s1] sm:$0xff]  }
   0x2   :  { %131 = vmatpush3.bf16.msra.mxu0 %v140_v1  ;;  %v142_v3 = vld [vmem:[%s192_s0] sm:$0xff]  }
   0x3   :  { %132 = vmatprep.subr.bf16.mxu0 %v143_v0  ;;  %v124_v4 = vld [vmem:[%s193_s3] sm:$0xff]  }
   0x4   :  { %v114_v5 = vld [vmem:[%s194_s2] ss:$0 sm:$0xff]  ;;  %v125_v6 = vunpack.c.l.bf16 %v124_v4  ;;  %v126_v11 = vunpack.c.h.bf16 %v124_v4 }
   0x6   :  { %133 = vmatpush3.bf16.msra.mxu0 %v141_v2 }
   0x9   :  { %135 = vmatmul.mubr.msk.bf16.vlgmr.msra.gmra.mxu0 %vm48_vm1, %v142_v3 }
  0xc9   :  { %v86_v7 = vpop.f32.mrf.mxu0 }
  0xca   :  { %v87_v8 = vadd.f32 %v114_v5, %v86_v7 }
  0xcb   :  { %v136_v9 = vpop.f32.mrf.mxu0 }
  0xcc   :  { %v97_v10 = vadd.f32 %v125_v6, %v87_v8 }
  0xcd   :  { %v89_v12 = vpop.f32.mrf.mxu0 }
  0xce   :  { %v121_v13 = vpack.c.bf16 %v97_v10, %v97_v10  ;;  %v90_v14 = vadd.f32 %v114_v5, %v89_v12 }
  0xcf   :  { %v137_v15 = vpop.f32.mrf.mxu0 }
  0xd0   :  { %108 = vst.msk [vmem:[%s195_s4] sm:$0xf] %vm107_vm2, %v121_v13  ;;  %v98_v16 = vadd.f32 %v126_v11, %v90_v14 }
  0xd2   :  { %v122_v17 = vpack.c.bf16 %v98_v16, %v98_v16 }
  0xd4   :  { %109 = vst.msk [vmem:[%s195_s4 + $0x4] sm:$0xf] %vm107_vm2, %v122_v17 }

// kernel: decoder_layer.10
= control target key start
LH: loop header
LB: loop body
LE: loop exit
PB: predicated region body
PF: predicated region fallthrough
CT: control target
= control target key end

     0   :  { %10 = vsyncpa [#allocation3], 0  ;;  %s1436_s0 = inlined_call_operand.vmem [shape: bf16[2,8,32], index: 0, kind: input, shape index: {}]   ;;  %s1437_s1 = inlined_call_operand.vmem [shape: bf16[2,8,64], index: 1, kind: input, shape index: {}]   ;;  %s1438_s2 = inlined_call_operand.vmem [shape: s8[2,8,8], index: 2, kind: input, shape index: {}]   ;;  %s1439_s3 = inlined_call_operand.vmem [shape: bf16[2,8,32], index: 3, kind: output, shape index: {0}]   ;;  %s1440_s4 = inlined_call_operand.hbm [shape: bf16[2,4,8,8], index: 4, kind: output, shape index: {1}]  }
   0x1   :  { %12 = vsyncpa [#allocation3 + $0x1], 0  ;;  %s1221_s15 = smov 0   ;;  %s1223_s16 = smov 0  }
   0x2   :  { %s1225_s17 = smov 0   ;;  %s1227_s18 = smov 0  }
   0x3   :  { %s1229_s19 = smov 0   ;;  %s1231_s20 = smov 0  }
   0x4 LB: > { %s923_s21 = sadd.s32 4294967295, %s1179_s20   ;;  %s924_s22 = sadd.s32 4294967294, %s1179_s20   ;;  %s1179_s20 = sphi %s1231_s20, %s18_s20   ;;  %s1175_s19 = sphi %s1229_s19, %s1447_s19   ;;  %s1171_s18 = sphi %s1227_s18, %s1446_s18   ;;  %s1167_s17 = sphi %s1225_s17, %s1445_s17   ;;  %s1163_s16 = sphi %s1223_s16, %s1444_s16   ;;  %s1159_s15 = sphi %s1221_s15, %s1443_s15  }
   0x5   : > { %s30_s23 = sadd.s32 1, %s1175_s19  ;;  %s149_s24 = sadd.s32 1, %s1167_s17 }
   0x6   : > { %p32_p0 = scmp.ge.s32.totalorder %s30_s23, 2  ;;  %p159_p1 = scmp.ne.s32.totalorder %s1167_s17, %s1163_s16 }
   0x7   : > { %p160_p2 = scmp.eq.s32.totalorder %s923_s21, 1  ;;  %p165_p3 = scmp.ne.s32.totalorder %s1163_s16, %s1159_s15 }
   0x8   : > { %s1449_s23 = smov (%p32_p0, %s30_s23), 0  ;;  %p166_p5 = scmp.eq.s32.totalorder %s924_s22, 1 }
   0x9   : > { %p1261_p4 = por %p160_p2, %p159_p1  ;;  %s144_s26 = ssub.s32 %s1175_s19, %s1449_s23 }
   0xa   : > { %p927_p6 = scmp.ge.s32.totalorder %s1179_s20, 1  ;;  %p147_p7 = scmp.eq.s32.totalorder %s144_s26, 0 }
   0xb   : > { %p1268_p8 = por %p166_p5, %p165_p3  ;;  %p211_p9 = scmp.lt.s32.totalorder %s1179_s20, 3 }
   0xc   : > { %s1274_s28 = scalar_select %p147_p7, %s1167_s17, %s149_s24  }
   0xd   : > { %p212_p10 = pnand %p927_p6, %p211_p9 }
   0xe   : > { %p257_p11 = scmp.lt.s32.totalorder (!%p212_p10), %s1171_s18, 1  ;;  %s1183_s21 = smov (!%p212_p10), 96  }
   0xf   : > { %215 = sbr.rel (%p212_p10) target bundleno = 1395 (0x573), region = 32  ;;  %s1184_s22 = smov (!%p212_p10), 120  }
  0x10   : > { %s1185_s24 = smov (!%p212_p10), 112   ;;  %s1186_s26 = smov (!%p212_p10), 104  }
  0x11   : > { %s1188_s8 = smov (!%p212_p10), 72   ;;  %s1189_s9 = smov (!%p212_p10), 80  }
  0x14   : > { %v1181_v0 = vmov 0.0   ;;  %vm1182_vm0 = vmmov 0   ;;  %s258_s29 = scalar_select %p257_p11, %s1171_s18, 1  ;;  %vm289_vm1 = vcmask 64512   ;;  %vm359_vm3 = vcmask 1043456  }
  0x15   : > { %968 = vmatprep.subr.bf16.mxu0 %v1181_v0  ;;  %970 = vmatprep.mubr.msk.bf16.mxu0 %vm1182_vm0, %v1181_v0  ;;  %vm349_vm4 = vcmask 60416  }
  0x16   : > { %974 = vmatprep.subr.bf16.mxu1 %v1181_v0  ;;  %976 = vmatprep.mubr.msk.bf16.mxu1 %vm1182_vm0, %v1181_v0  ;;  %s1284_s30 = sshll.u32 %s258_s29, 2  ;;  %s931_s11 = sshll.u32 %s258_s29, 1 }
  0x17   : > { %s267_s7 = scalar_lea.vmem %s1437_s1, %s1284_s30  ;;  %s263_s10 = scalar_lea.vmem %s1436_s0, %s1284_s30 }
  0x18   : > { %v284_v1 = vld [vmem:[%s267_s7] sm:$0xf]  ;;  %s274_s14 = scalar_lea.vmem %s1438_s2, %s931_s11  ;;  %s254_s29 = sand.u32 1, %s1163_s16  }
  0x19   : > { %v294_v2 = vsel %vm289_vm1, %v284_v1, 0  ;;  %v283_v3 = vld [vmem:[%s263_s10] sm:$0xf]  ;;  %v1308_v13 = vcombine.low %v284_v1, %v284_v1  ;;  %s928_s5 = sshll.u32 %s254_s29, 4  ;;  %s1187_s7 = smov 88  }
  0x1a   : > { %969 = vmatpush3.bf16.xpose.msra.mxu0 %v294_v2  ;;  %v285_v4 = vld [vmem:[%s274_s14] sm:$0x3]  ;;  %v936_v14 = vcombine.low %v283_v3, %v283_v3  ;;  %s1321_s6 = scalar_lea.vmem [#allocation2], %s928_s5  ;;  %s1190_s10 = smov 8  }
  0x1b   : > { %986 = vmatprep.subr.bf16.mxu0 %v1181_v0  ;;  %v286_v5 = vunpack.c.0.s8 %v285_v4  ;;  %354 = vrot.lane.b32.xlu1 %v1308_v13, %s1183_s21  ;;  %s951_s11 = sshll.u32 %s1171_s18, 8  ;;  %s790_s12 = sshll.u32 %s1321_s6, 4  ;;  %s1381_s12 = int_to_ptr.vmem [resolvable:$true] %s790_s12 }
  0x1c   : > { %s1379_s21 = scalar_lea.hbm %s1440_s4, %s951_s11  ;;  %s1103_s18 = scalar_lea.vmem %s1381_s12, 256 }
  0x1d   : > { %v1302_v6 = vcvt.s32.f32 %v286_v5  ;;  %p1104_p12 = scmp.ne.s32.totalorder %s1381_s12, %s1103_s18 }
  0x1f   : > { %vm288_vm2 = vcmp.ne.f32.partialorder %v1302_v6, 0.0  ;;  %408 = vrot.lane.b32.xlu1 %v1308_v13, %s1184_s22  ;;  %p1105_p13 = pnand %p1104_p12, %p1261_p4 }
  0x21   : > { %971 = vmatmul.mubr.msk.bf16.vlgmr.msra.gmra.mxu0 %vm289_vm1, %v283_v3  ;;  %p1106_p0 = pneg %p1105_p13 }
  0x22   : > { %988 = vmatprep.mubr.msk.bf16.mxu0 %vm1182_vm0, %v1181_v0 }
  0x23   : > { %521 = vrot.lane.b32.xlu1 %v1308_v13, %s1185_s24 }
  0x27   : > { %519 = vrot.lane.b32.xlu1 %v936_v14, %s1185_s24  ;;  %s1385_s24 = scalar_lea.sflag [#allocation3], %s254_s29 }
  0x2b   : > { %634 = vrot.lane.b32.xlu1 %v1308_v13, %s1186_s26 }
  0x2f   : > { %632 = vrot.lane.b32.xlu1 %v936_v14, %s1186_s26  ;;  %s1192_s26 = smov [#allocation2]  }
  0x30   : > { %s1107_s5 = sshll.u32 %s1192_s26, 4  ;;  %s1108_s5 = int_to_ptr.vmem [resolvable:$false] %s1107_s5 }
  0x31   : > { %p1110_p1 = scmp.lt.s32.totalorder %s1381_s12, %s1108_s5 }
  0x8d   : > { %v355_v20 = vpop.permute.xlu1 %354 }
  0x8e   : > { %v361_v21 = vsel %vm359_vm3, %v355_v20, 0 }
  0x8f   : > { %975 = vmatpush3.bf16.msra.mxu1 %v361_v21 }
  0x90   : > { %980 = vmatprep.subr.bf16.mxu1 %v1181_v0 }
  0x91   : > { %v409_v24 = vpop.permute.xlu1 %408 }
  0x92   : > { %v414_v26 = vsel %vm289_vm1, %v409_v24, 0 }
  0x95   : > { %v522_v28 = vpop.permute.xlu1 %521 }
  0x96   : > { %v527_v31 = vsel %vm289_vm1, %v522_v28, 0 }
  0x99   : > { %v520_v30 = vpop.permute.xlu1 %519 }
  0x9d   : > { %v635_v32 = vpop.permute.xlu1 %634 }
  0x9e   : > { %v640_v33 = vsel %vm289_vm1, %v635_v32, 0 }
  0xa1   : > { %v633_v34 = vpop.permute.xlu1 %632 }
  0xe1   : > { %v330_v7 = vpop.f32.mrf.mxu0 }
  0xe2   : > { %v336_v8 = vsel %vm288_vm2, %v330_v7, -1e+09 }
  0xe3   : > { %v972_v9 = vpop.f32.mrf.mxu0  ;;  %v337_v10 = vsel %vm289_vm1, %v336_v8, -inf }
  0xe4   : > { %338 = vmax.xlane.f32.xlu0 %v337_v10 }
  0xe5   : > { %v333_v11 = vpop.f32.mrf.mxu0 }
  0xe7   : > { %v973_v12 = vpop.f32.mrf.mxu0 }
 0x16d   : > { %v339_v15 = vpop.xlane.xlu0 %338 }
 0x16e   : > { %v340_v16 = vsub.f32 %v336_v8, %v339_v15 }
 0x170   : > { %v341_v17 = vmul.f32 1.442695, %v340_v16 }
 0x172   : > { %1087 = vpow2.f32 %v341_v17 }
 0x17f   : > { %v1088_v18 = vpop.eup %1087 }
 0x180   : > { %v343_v19 = vsel %vm289_vm1, %v1088_v18, 0.0 }
 0x181   : > { %344 = vadd.xlane.f32.xlu0 %v343_v19 }
 0x197   : > { %406 = vrot.lane.b32.xlu0 %v936_v14, %s1184_s22  ;;  %s1191_s22 = smov 16  }
 0x20a   : > { %v345_v22 = vpop.xlane.xlu0 %344 }
 0x20b   : > { %1089 = vrcp.f32 %v345_v22 }
 0x20e   : > { %v407_v29 = vpop.permute.xlu0 %406 }
 0x218   : > { %v1090_v23 = vpop.eup %1089 }
 0x219   : > { %v347_v25 = vmul.f32 %v1090_v23, %v1088_v18 }
 0x21b   : > { %v348_v27 = vpack.c.bf16 %v347_v25, %v347_v25 }
 0x21d   : > { %350 = vst.msk [vmem:[%s1321_s6] sm:$0xf] %vm349_vm4, %v348_v27  ;;  %977 = vmatmul.mubr.msk.bf16.vlgmr.msra.gmra.mxu1 %vm289_vm1, %v348_v27 }
 0x21e   : > { %981 = vmatpush3.bf16.xpose.msra.mxu1 %v414_v26  ;;  %982 = vmatprep.mubr.msk.bf16.mxu1 %vm1182_vm0, %v1181_v0 }
 0x21f   : > { %992 = vmatprep.subr.bf16.mxu1 %v1181_v0 }
 0x225   : > { %983 = vmatmul.mubr.msk.bf16.vlgmr.msra.gmra.mxu1 %vm289_vm1, %v407_v29 }
 0x226   : > { %993 = vmatpush3.bf16.xpose.msra.mxu1 %v527_v31  ;;  %994 = vmatprep.mubr.msk.bf16.mxu1 %vm1182_vm0, %v1181_v0 }
 0x227   : > { %1004 = vmatprep.subr.bf16.mxu1 %v1181_v0 }
 0x22d   : > { %995 = vmatmul.mubr.msk.bf16.vlgmr.msra.gmra.mxu1 %vm289_vm1, %v520_v30 }
 0x22e   : > { %1005 = vmatpush3.bf16.xpose.msra.mxu1 %v640_v33  ;;  %1006 = vmatprep.mubr.msk.bf16.mxu1 %vm1182_vm0, %v1181_v0 }
 0x235   : > { %1007 = vmatmul.mubr.msk.bf16.vlgmr.msra.gmra.mxu1 %vm289_vm1, %v633_v34 }
 0x2dd   : > { %v1339_v35 = vpop.f32.mrf.mxu1 }
 0x2df   : > { %v978_v36 = vpop.f32.mrf.mxu1 }
 0x2e1   : > { %v400_v37 = vpop.f32.mrf.mxu1 }
 0x2e3   : > { %v979_v38 = vpop.f32.mrf.mxu1 }
 0x2e5   : > { %v450_v39 = vpop.f32.mrf.mxu1 }
 0x2e6   : > { %v456_v40 = vsel %vm288_vm2, %v450_v39, -1e+09 }
 0x2e7   : > { %v984_v41 = vpop.f32.mrf.mxu1  ;;  %v457_v42 = vsel %vm289_vm1, %v456_v40, -inf }
 0x2e8   : > { %458 = vmax.xlane.f32.xlu1 %v457_v42 }
 0x2e9   : > { %v453_v43 = vpop.f32.mrf.mxu1 }
 0x2eb   : > { %v985_v44 = vpop.f32.mrf.mxu1 }
 0x2ed   : > { %v563_v45 = vpop.f32.mrf.mxu1 }
 0x2ee   : > { %v569_v46 = vsel %vm288_vm2, %v563_v45, -1e+09 }
 0x2ef   : > { %v996_v47 = vpop.f32.mrf.mxu1  ;;  %v570_v48 = vsel %vm289_vm1, %v569_v46, -inf }
 0x2f0   : > { %571 = vmax.xlane.f32.xlu0 %v570_v48 }
 0x2f1   : > { %v566_v49 = vpop.f32.mrf.mxu1 }
 0x2f3   : > { %v997_v50 = vpop.f32.mrf.mxu1 }
 0x2f5   : > { %v676_v51 = vpop.f32.mrf.mxu1 }
 0x2f6   : > { %v682_v52 = vsel %vm288_vm2, %v676_v51, -1e+09 }
 0x2f7   : > { %v1008_v53 = vpop.f32.mrf.mxu1  ;;  %v683_v54 = vsel %vm289_vm1, %v682_v52, -inf }
 0x2f8   : > { %684 = vmax.xlane.f32.xlu1 %v683_v54 }
 0x2f9   : > { %v679_v55 = vpop.f32.mrf.mxu1 }
 0x2fb   : > { %v1009_v56 = vpop.f32.mrf.mxu1 }
 0x309   : > { %471 = vrot.lane.b32.xlu1 %v1308_v13, %s1187_s7 }
 0x371   : > { %v459_v57 = vpop.xlane.xlu1 %458 }
 0x372   : > { %v460_v58 = vsub.f32 %v456_v40, %v459_v57 }
 0x374   : > { %v461_v59 = vmul.f32 1.442695, %v460_v58 }
 0x376   : > { %1091 = vpow2.f32 %v461_v59 }
 0x379   : > { %v572_v60 = vpop.xlane.xlu0 %571 }
 0x37a   : > { %v573_v61 = vsub.f32 %v569_v46, %v572_v60 }
 0x37c   : > { %v574_v62 = vmul.f32 1.442695, %v573_v61 }
 0x37e   : > { %1093 = vpow2.f32 %v574_v62 }
 0x381   : > { %v685_v63 = vpop.xlane.xlu1 %684 }
 0x382   : > { %v686_v1 = vsub.f32 %v682_v52, %v685_v63 }
 0x383   : > { %v1092_v2 = vpop.eup %1091 }
 0x384   : > { %v687_v3 = vmul.f32 1.442695, %v686_v1  ;;  %v463_v4 = vsel %vm289_vm1, %v1092_v2, 0.0 }
 0x385   : > { %464 = vadd.xlane.f32.xlu0 %v463_v4  ;;  %v472_v5 = vpop.permute.xlu1 %471 }
 0x386   : > { %1095 = vpow2.f32 %v687_v3  ;;  %v477_v6 = vsel %vm359_vm3, %v472_v5, 0 }
 0x387   : > { %987 = vmatpush3.bf16.msra.mxu0 %v477_v6 }
 0x388   : > { %998 = vmatprep.subr.bf16.mxu0 %v1181_v0 }
 0x38b   : > { %v1094_v7 = vpop.eup %1093 }
 0x38c   : > { %v576_v8 = vsel %vm289_vm1, %v1094_v7, 0.0 }
 0x38d   : > { %577 = vadd.xlane.f32.xlu1 %v576_v8 }
 0x393   : > { %v1096_v9 = vpop.eup %1095 }
 0x394   : > { %v689_v10 = vsel %vm289_vm1, %v1096_v9, 0.0 }
 0x395   : > { %690 = vadd.xlane.f32.xlu0 %v689_v10 }
 0x39e   : > { %697 = vrot.lane.b32.xlu1 %v1308_v13, %s1188_s8 }
 0x3ab   : > { %584 = vrot.lane.b32.xlu0 %v1308_v13, %s1189_s9 }
 0x40e   : > { %v465_v11 = vpop.xlane.xlu0 %464 }
 0x40f   : > { %1097 = vrcp.f32 %v465_v11 }
 0x416   : > { %v578_v12 = vpop.xlane.xlu1 %577 }
 0x417   : > { %1099 = vrcp.f32 %v578_v12 }
 0x41a   : > { %v698_v20 = vpop.permute.xlu1 %697 }
 0x41b   : > { %v703_v23 = vsel %vm359_vm3, %v698_v20, 0 }
 0x41c   : > { %v1098_v14 = vpop.eup %1097 }
 0x41d   : > { %v467_v15 = vmul.f32 %v1098_v14, %v1092_v2 }
 0x41e   : > { %v691_v16 = vpop.xlane.xlu0 %690 }
 0x41f   : > { %1101 = vrcp.f32 %v691_v16  ;;  %v468_v17 = vpack.c.bf16 %v467_v15, %v467_v15 }
 0x421   : > { %938 = vst.msk [vmem:[%s1321_s6 + $0x4] sm:$0xf] %vm349_vm4, %v468_v17  ;;  %989 = vmatmul.mubr.msk.bf16.vlgmr.msra.gmra.mxu0 %vm289_vm1, %v468_v17 }
 0x422   : > { %v585_v18 = vpop.permute.xlu0 %584  ;;  %1000 = vmatprep.mubr.msk.bf16.mxu0 %vm1182_vm0, %v1181_v0 }
 0x423   : > { %v590_v13 = vsel %vm359_vm3, %v585_v18, 0 }
 0x424   : > { %v1100_v19 = vpop.eup %1099  ;;  %999 = vmatpush3.bf16.msra.mxu0 %v590_v13 }
 0x425   : > { %v580_v21 = vmul.f32 %v1100_v19, %v1094_v7  ;;  %1010 = vmatprep.subr.bf16.mxu0 %v1181_v0 }
 0x427   : > { %v581_v22 = vpack.c.bf16 %v580_v21, %v580_v21 }
 0x429   : > { %941 = vst.msk [vmem:[%s1321_s6 + $0x8] sm:$0xf] %vm349_vm4, %v581_v22  ;;  %1001 = vmatmul.mubr.msk.bf16.vlgmr.msra.gmra.mxu0 %vm289_vm1, %v581_v22 }
 0x42a   : > { %1011 = vmatpush3.bf16.msra.mxu0 %v703_v23  ;;  %1012 = vmatprep.mubr.msk.bf16.mxu0 %vm1182_vm0, %v1181_v0 }
 0x42c   : > { %v1102_v24 = vpop.eup %1101 }
 0x42d   : > { %v693_v25 = vmul.f32 %v1102_v24, %v1096_v9 }
 0x42f   : > { %v694_v26 = vpack.c.bf16 %v693_v25, %v693_v25 }
 0x431   : > { %944 = vst.msk [vmem:[%s1321_s6 + $0xc] sm:$0xf] %vm349_vm4, %v694_v26  ;;  %1013 = vmatmul.mubr.msk.bf16.vlgmr.msra.gmra.mxu0 %vm289_vm1, %v694_v26  ;;  %s1109_s6 = scalar_lea.vmem %s1108_s5, 512 }
 0x432   : > { %p1111_p2 = scmp.lt.s32.totalorder %s1109_s6, %s1103_s18 }
 0x434   : > { %p1112_p3 = por %p1111_p2, %p1110_p1 }
 0x436   : > { %p1113_p5 = pnand %p1112_p3, %p1106_p0 }
 0x4e1   : > { %v513_v27 = vpop.f32.mrf.mxu0 }
 0x4e2   : > { %746 = vrot.lane.b32.xlu1 %v513_v27, %s1190_s10 }
 0x4e3   : > { %v990_v28 = vpop.f32.mrf.mxu0 }
 0x4e5   : > { %v516_v29 = vpop.f32.mrf.mxu0 }
 0x4e7   : > { %v991_v30 = vpop.f32.mrf.mxu0 }
 0x4e9   : > { %v626_v0 = vpop.f32.mrf.mxu0 }
 0x4ea   : > { %750 = vrot.lane.b32.xlu0 %v626_v0, %s1191_s22 }
 0x4eb   : > { %v1002_v31 = vpop.f32.mrf.mxu0 }
 0x4ec   : > { %1116 = shalt.err (!%p1113_p5)
}
 0x4ed   : > { %s1117_s29 = scalar_lea.hbm %s1379_s21, 256  ;;  %s1121_s9 = scalar_lea.hbm %s1440_s4, 512 }
 0x4ee   : > { %p1118_p6 = scmp.ne.s32.totalorder %s1379_s21, %s1117_s29  ;;  %p1122_p10 = scmp.lt.s32.totalorder %s1379_s21, %s1440_s4 }
 0x4ef   : > { %p1123_p11 = scmp.lt.s32.totalorder %s1121_s9, %s1117_s29 }
 0x4f0   : > { %p1119_p7 = pnand %p1118_p6, %p1261_p4 }
 0x4f1   : > { %p1124_p12 = por %p1123_p11, %p1122_p10 }
 0x4f2   : > { %p1120_p9 = pneg %p1119_p7 }
 0x4f4   : > { %p1125_p13 = pnand %p1124_p12, %p1120_p9 }
 0x4f6   : > { %1128 = shalt.err (!%p1125_p13)
}
 0x4f7   : > { %s1193_s13 = smov 64   ;;  %s1194_s14 = smov 4   ;;  %v629_v32 = vpop.f32.mrf.mxu0  ;;  %vm758_vm5 = vcmask 130048   ;;  %vm760_vm6 = vcmask 195584   ;;  %vm763_vm7 = vcmask 257024  }
 0x4f8   : > { %1016 = dma.vmem_to_hbm [thread:$0]  (%p1261_p4), %s1381_s12, 256, %s1379_s21, %s1385_s24, %s1193_s13, %s1193_s13, %s1194_s14  }
 0x4f9   : > { %v1003_v33 = vpop.f32.mrf.mxu0  ;;  %s1195_s22 = smov 24   ;;  %s281_s21 = scalar_lea.vmem %s1439_s3, %s1284_s30 }
 0x4fb   : > { %v739_v34 = vpop.f32.mrf.mxu0 }
 0x4fc   : > { %754 = vrot.lane.b32.xlu1 %v739_v34, %s1195_s22 }
 0x4fd   : > { %v1014_v36 = vpop.f32.mrf.mxu0 }
 0x4ff   : > { %v742_v37 = vpop.f32.mrf.mxu0 }
 0x501   : > { %v1015_v38 = vpop.f32.mrf.mxu0 }
 0x554   : > { %v747_v39 = vpop.permute.xlu1 %746 }
 0x555   : > { %v757_v41 = vsel %vm289_vm1, %v1339_v35, %v747_v39 }
 0x55c   : > { %v751_v40 = vpop.permute.xlu0 %750 }
 0x55d   : > { %v759_v42 = vsel %vm758_vm5, %v757_v41, %v751_v40 }
 0x56e   : > { %v755_v43 = vpop.permute.xlu1 %754 }
 0x56f   : > { %v761_v44 = vsel %vm760_vm6, %v759_v42, %v755_v43 }
 0x570   : > { %v762_v45 = vpack.c.bf16 %v761_v44, %v761_v44 }
 0x572   : > { %764 = vst.msk [vmem:[%s281_s21] sm:$0xf] %vm763_vm7, %v762_v45 }
 0x573 PF: > { %p1022_p4 = scmp.ge.s32.totalorder %s1179_s20, 2  ;;  %s815_s24 = sand.u32 1, %s1159_s15  }
 0x574   : > { %s816_s18 = scalar_lea.sflag [#allocation3], %s815_s24 }
 0x575   : > { %p1019_p0 = pnand %p1022_p4, %p1268_p8 }
 0x577   : > { %p1020_p1 = pneg %p1019_p0 }
 0x579   : > { %1154 = dma.done.wait (%p1020_p1), %s816_s18, 256  }
 0x57a   : > { %1156 = vsyncadd (%p1020_p1), %s816_s18, 4294967040  ;;  %s18_s20 = sadd.s32 1, %s1179_s20   ;;  %s1443_s15 = smov %s1163_s16 }
 0x57b   : > { %p15_p2 = scmp.ge.s32.totalorder %s18_s20, 4   ;;  %s1444_s16 = smov %s1167_s17 }
 0x57c   : > { %s1445_s17 = smov %s1274_s28  ;;  %s1446_s18 = smov %s1175_s19 }
 0x57d   : > { %s1447_s19 = smov %s1449_s23  ;;  %17 = sbr.rel (!%p15_p2) target bundleno = 4 (0x4), region = 88 }
 0x582   :  { %821 = vsyncpa [#allocation3], 1 }
 0x583   :  { %823 = vsyncpa [#allocation3 + $0x1], 1 }

// kernel: decoder_layer.12
= control target key start
LH: loop header
LB: loop body
LE: loop exit
PB: predicated region body
PF: predicated region fallthrough
CT: control target
= control target key end

     0   :  { %vm27_vm0 = vcmask 261120   ;;  %v187_v15 = vmov 0.0   ;;  %vm188_vm1 = vmmov 0   ;;  %vm147_vm2 = vcmask 257024   ;;  %s248_s0 = inlined_call_operand.vmem [shape: bf16[16,32], index: 0, kind: input, shape index: {}]   ;;  %s249_s3 = inlined_call_operand.vmem [shape: bf16[32,32], index: 3, kind: input, shape index: {}]   ;;  %s250_s1 = inlined_call_operand.vmem [shape: f32[1,32], index: 1, kind: input, shape index: {}]   ;;  %s251_s2 = inlined_call_operand.vmem [shape: f32[1,32], index: 2, kind: input, shape index: {}]   ;;  %s252_s4 = inlined_call_operand.vmem [shape: f32[1,32], index: 4, kind: input, shape index: {}]   ;;  %s253_s5 = inlined_call_operand.vmem [shape: bf16[16,32], index: 5, kind: output, shape index: {}]  }
   0x1   :  { %v165_v0 = vld [vmem:[%s248_s0] sm:$0xff]   ;;  %171 = vmatprep.subr.bf16.mxu0 %v187_v15  ;;  %v181_v16 = vld [vmem:[%s249_s3 + $0x8] sm:$0xff]   ;;  %175 = vmatprep.mubr.msk.bf16.mxu0 %vm188_vm1, %v187_v15 }
   0x2   :  { %v166_v1 = vunpack.c.l.bf16 %v165_v0  ;;  %v167_v2 = vunpack.c.h.bf16 %v165_v0  ;;  %172 = vmatpush3.bf16.msra.mxu0 %v181_v16  ;;  %v182_v17 = vld [vmem:[%s249_s3] sm:$0xff]  }
   0x3   :  { %173 = vmatprep.subr.bf16.mxu0 %v187_v15  ;;  %v154_v26 = vld [vmem:[%s250_s1] ss:$0 sm:$0xff] }
   0x4   :  { %v28_v3 = vsel %vm27_vm0, %v166_v1, 0.0  ;;  %v31_v4 = vsel %vm27_vm0, %v167_v2, 0.0  ;;  %v155_v30 = vld [vmem:[%s251_s2] ss:$0 sm:$0xff] }
   0x5   :  { %29 = vadd.xlane.f32.xlu0 %v28_v3  ;;  %v156_v35 = vld [vmem:[%s252_s4] ss:$0 sm:$0xff] }
   0x6   :  { %174 = vmatpush3.bf16.msra.mxu0 %v182_v17 }
   0x9   :  { %32 = vadd.xlane.f32.xlu0 %v31_v4 }
  0x8e   :  { %v30_v5 = vpop.xlane.xlu0 %29 }
  0x8f   :  { %v35_v6 = vmul.f32 0.03125, %v30_v5 }
  0x91   :  { %v37_v7 = vsub.f32 %v166_v1, %v35_v6 }
  0x92   :  { %v33_v8 = vpop.xlane.xlu0 %32 }
  0x93   :  { %v36_v9 = vmul.f32 0.03125, %v33_v8  ;;  %v39_v10 = vmul.f32 %v37_v7, %v37_v7 }
  0x95   :  { %v38_v11 = vsub.f32 %v167_v2, %v36_v9  ;;  %v41_v12 = vsel %vm27_vm0, %v39_v10, 0.0 }
  0x96   :  { %42 = vadd.xlane.f32.xlu1 %v41_v12 }
  0x97   :  { %v40_v13 = vmul.f32 %v38_v11, %v38_v11 }
  0x99   :  { %v44_v14 = vsel %vm27_vm0, %v40_v13, 0.0 }
  0x9a   :  { %45 = vadd.xlane.f32.xlu1 %v44_v14 }
 0x11f   :  { %v43_v18 = vpop.xlane.xlu1 %42 }
 0x120   :  { %v47_v19 = vmul.f32 0.03125, %v43_v18 }
 0x122   :  { %v49_v20 = vadd.f32 1e-05, %v47_v19 }
 0x123   :  { %v46_v21 = vpop.xlane.xlu1 %45 }
 0x124   :  { %183 = vrsqrt.f32 %v49_v20  ;;  %v48_v22 = vmul.f32 0.03125, %v46_v21 }
 0x126   :  { %v50_v23 = vadd.f32 1e-05, %v48_v22 }
 0x128   :  { %185 = vrsqrt.f32 %v50_v23 }
 0x131   :  { %v184_v24 = vpop.eup %183 }
 0x132   :  { %v53_v25 = vmul.f32 %v184_v24, %v37_v7 }
 0x134   :  { %v61_v29 = vmul.f32 %v154_v26, %v53_v25 }
 0x135   :  { %v186_v27 = vpop.eup %185 }
 0x136   :  { %v54_v28 = vmul.f32 %v186_v27, %v38_v11  ;;  %v69_v32 = vadd.f32 %v155_v30, %v61_v29 }
 0x138   :  { %v62_v31 = vmul.f32 %v154_v26, %v54_v28 }
 0x13a   :  { %v70_v33 = vadd.f32 %v155_v30, %v62_v31 }
 0x13c   :  { %v71_v34 = vpack.c.bf16 %v70_v33, %v69_v32 }
 0x13e   :  { %176 = vmatmul.mubr.msk.bf16.vlgmr.msra.gmra.mxu0 %vm27_vm0, %v71_v34 }
 0x1fe   :  { %v132_v36 = vpop.f32.mrf.mxu0 }
 0x1ff   :  { %v133_v37 = vadd.f32 %v156_v35, %v132_v36 }
 0x200   :  { %v177_v38 = vpop.f32.mrf.mxu0 }
 0x201   :  { %v162_v39 = vpack.c.bf16 %v133_v37, %v133_v37 }
 0x202   :  { %v135_v40 = vpop.f32.mrf.mxu0 }
 0x203   :  { %148 = vst.msk [vmem:[%s253_s5] sm:$0xf] %vm147_vm2, %v162_v39  ;;  %v136_v41 = vadd.f32 %v156_v35, %v135_v40 }
 0x204   :  { %v178_v42 = vpop.f32.mrf.mxu0 }
 0x205   :  { %v163_v43 = vpack.c.bf16 %v136_v41, %v136_v41 }
 0x207   :  { %149 = vst.msk [vmem:[%s253_s5 + $0x4] sm:$0xf] %vm147_vm2, %v163_v43 }

// kernel: decoder_layer.14
= control target key start
LH: loop header
LB: loop body
LE: loop exit
PB: predicated region body
PF: predicated region fallthrough
CT: control target
= control target key end

     0   :  { %10 = vsyncpa [#allocation3], 0  ;;  %s1437_s0 = inlined_call_operand.vmem [shape: bf16[2,8,32], index: 0, kind: input, shape index: {}]   ;;  %s1438_s1 = inlined_call_operand.vmem [shape: bf16[2,16,64], index: 1, kind: input, shape index: {}]   ;;  %s1439_s2 = inlined_call_operand.vmem [shape: s8[2,8,16], index: 2, kind: input, shape index: {}]   ;;  %s1440_s3 = inlined_call_operand.vmem [shape: bf16[2,8,32], index: 3, kind: output, shape index: {0}]   ;;  %s1441_s4 = inlined_call_operand.hbm [shape: bf16[2,4,8,16], index: 4, kind: output, shape index: {1}]  }
   0x1   :  { %12 = vsyncpa [#allocation3 + $0x1], 0  ;;  %s1220_s15 = smov 0   ;;  %s1222_s16 = smov 0  }
   0x2   :  { %s1224_s17 = smov 0   ;;  %s1226_s18 = smov 0  }
   0x3   :  { %s1228_s19 = smov 0   ;;  %s1230_s20 = smov 0  }
   0x4 LB: > { %s920_s21 = sadd.s32 4294967295, %s1178_s20   ;;  %s921_s22 = sadd.s32 4294967294, %s1178_s20   ;;  %s1178_s20 = sphi %s1230_s20, %s18_s20   ;;  %s1174_s19 = sphi %s1228_s19, %s1448_s19   ;;  %s1170_s18 = sphi %s1226_s18, %s1447_s18   ;;  %s1166_s17 = sphi %s1224_s17, %s1446_s17   ;;  %s1162_s16 = sphi %s1222_s16, %s1445_s16   ;;  %s1158_s15 = sphi %s1220_s15, %s1444_s15  }
   0x5   : > { %s30_s23 = sadd.s32 1, %s1174_s19  ;;  %s149_s24 = sadd.s32 1, %s1166_s17 }
   0x6   : > { %p32_p0 = scmp.ge.s32.totalorder %s30_s23, 2  ;;  %p159_p1 = scmp.ne.s32.totalorder %s1166_s17, %s1162_s16 }
   0x7   : > { %p160_p2 = scmp.eq.s32.totalorder %s920_s21, 1  ;;  %p165_p3 = scmp.ne.s32.totalorder %s1162_s16, %s1158_s15 }
   0x8   : > { %s1450_s23 = smov (%p32_p0, %s30_s23), 0  ;;  %p166_p5 = scmp.eq.s32.totalorder %s921_s22, 1 }
   0x9   : > { %p1260_p4 = por %p160_p2, %p159_p1  ;;  %s144_s26 = ssub.s32 %s1174_s19, %s1450_s23 }
   0xa   : > { %p924_p6 = scmp.ge.s32.totalorder %s1178_s20, 1  ;;  %p147_p7 = scmp.eq.s32.totalorder %s144_s26, 0 }
   0xb   : > { %p1267_p8 = por %p166_p5, %p165_p3  ;;  %p212_p9 = scmp.lt.s32.totalorder %s1178_s20, 3 }
   0xc   : > { %s1273_s28 = scalar_select %p147_p7, %s1166_s17, %s149_s24  }
   0xd   : > { %p213_p10 = pnand %p924_p6, %p212_p9 }
   0xe   : > { %p259_p11 = scmp.lt.s32.totalorder (!%p213_p10), %s1170_s18, 1  ;;  %s1182_s22 = smov (!%p213_p10), 96  }
   0xf   : > { %216 = sbr.rel (%p213_p10) target bundleno = 1395 (0x573), region = 32  ;;  %s1183_s24 = smov (!%p213_p10), 120  }
  0x10   : > { %s1184_s26 = smov (!%p213_p10), 112   ;;  %s256_s5 = sand.u32 (!%p213_p10), 1, %s1162_s16  }
  0x11   : > { %s925_s6 = sshll.u32 (!%p213_p10), %s256_s5, 4  ;;  %s1186_s9 = smov (!%p213_p10), 88  }
  0x12   : > { %s1187_s10 = smov (!%p213_p10), 72   ;;  %s950_s13 = sshll.u32 (!%p213_p10), %s1170_s18, 8 }
  0x14   : > { %v1180_v0 = vmov 0.0   ;;  %vm1181_vm0 = vmmov 0   ;;  %s1280_s29 = scalar_select %p259_p11, %s1170_s18, 1  ;;  %vm298_vm1 = vcmask 64512   ;;  %vm346_vm3 = vcmask 130048  }
  0x15   : > { %967 = vmatprep.subr.bf16.mxu0 %v1180_v0  ;;  %969 = vmatprep.mubr.msk.bf16.mxu0 %vm1181_vm0, %v1180_v0  ;;  %vm359_vm4 = vcmask 125952  }
  0x16   : > { %973 = vmatprep.subr.bf16.mxu1 %v1180_v0  ;;  %975 = vmatprep.mubr.msk.bf16.mxu1 %vm1181_vm0, %v1180_v0  ;;  %s949_s30 = sshll.u32 %s1280_s29, 3  ;;  %s926_s8 = sshll.u32 %s1280_s29, 2 }
  0x17   : > { %s270_s7 = scalar_lea.vmem %s1438_s1, %s949_s30  ;;  %s265_s11 = scalar_lea.vmem %s1437_s0, %s926_s8 }
  0x18   : > { %v1289_v1 = vld [vmem:[%s270_s7] sm:$0xff]   ;;  %s929_s12 = sshll.u32 %s1280_s29, 1  ;;  %s1185_s30 = smov 104  }
  0x19   : > { %v303_v2 = vsel %vm298_vm1, %v1289_v1, 0  ;;  %v286_v3 = vld [vmem:[%s265_s11] sm:$0xf]  ;;  %s277_s21 = scalar_lea.vmem %s1439_s2, %s929_s12  ;;  %361 = vrot.lane.b32.xlu1 %v1289_v1, %s1182_s22  ;;  %s1323_s7 = scalar_lea.vmem [#allocation2], %s925_s6 }
  0x1a   : > { %968 = vmatpush3.bf16.xpose.msra.mxu0 %v303_v2  ;;  %v289_v4 = vld [vmem:[%s277_s21] sm:$0x3]  ;;  %v934_v13 = vcombine.low %v286_v3, %v286_v3  ;;  %s1188_s11 = smov 80   ;;  %s1189_s12 = smov 8  }
  0x1b   : > { %985 = vmatprep.subr.bf16.mxu0 %v1180_v0  ;;  %v290_v5 = vunpack.c.0.s8 %v289_v4  ;;  %s787_s14 = sshll.u32 %s1323_s7, 4  ;;  %s1191_s6 = smov [#allocation2]   ;;  %s1380_s14 = int_to_ptr.vmem [resolvable:$true] %s787_s14 }
  0x1c   : > { %s1102_s18 = scalar_lea.vmem %s1380_s14, 256 }
  0x1d   : > { %v1307_v6 = vcvt.s32.f32 %v290_v5  ;;  %412 = vrot.lane.b32.xlu1 %v1289_v1, %s1183_s24  ;;  %p1103_p12 = scmp.ne.s32.totalorder %s1380_s14, %s1102_s18 }
  0x1f   : > { %vm292_vm2 = vcmp.ne.f32.partialorder %v1307_v6, 0.0  ;;  %p1104_p13 = pnand %p1103_p12, %p1260_p4 }
  0x21   : > { %970 = vmatmul.mubr.msk.bf16.vlgmr.msra.gmra.mxu0 %vm298_vm1, %v286_v3  ;;  %523 = vrot.lane.b32.xlu1 %v1289_v1, %s1184_s26  ;;  %p1105_p0 = pneg %p1104_p13 }
  0x22   : > { %987 = vmatprep.mubr.msk.bf16.mxu0 %vm1181_vm0, %v1180_v0 }
  0x25   : > { %521 = vrot.lane.b32.xlu1 %v934_v13, %s1184_s26  ;;  %s1190_s26 = smov 16  }
  0x29   : > { %634 = vrot.lane.b32.xlu1 %v1289_v1, %s1185_s30 }
  0x2d   : > { %632 = vrot.lane.b32.xlu1 %v934_v13, %s1185_s30  ;;  %s1384_s30 = scalar_lea.sflag [#allocation3], %s256_s5 }
  0x8b   : > { %v362_v19 = vpop.permute.xlu1 %361 }
  0x8c   : > { %974 = vmatpush3.bf16.msra.mxu1 %v362_v19 }
  0x8d   : > { %979 = vmatprep.subr.bf16.mxu1 %v1180_v0 }
  0x8f   : > { %v413_v22 = vpop.permute.xlu1 %412 }
  0x90   : > { %v418_v24 = vsel %vm298_vm1, %v413_v22, 0 }
  0x93   : > { %v524_v26 = vpop.permute.xlu1 %523 }
  0x94   : > { %v529_v29 = vsel %vm298_vm1, %v524_v26, 0 }
  0x97   : > { %v522_v28 = vpop.permute.xlu1 %521 }
  0x9b   : > { %v635_v30 = vpop.permute.xlu1 %634 }
  0x9c   : > { %v640_v31 = vsel %vm298_vm1, %v635_v30, 0 }
  0x9f   : > { %v633_v32 = vpop.permute.xlu1 %632 }
  0xe1   : > { %v339_v7 = vpop.f32.mrf.mxu0 }
  0xe2   : > { %v345_v8 = vsel %vm292_vm2, %v339_v7, -1e+09 }
  0xe3   : > { %v971_v9 = vpop.f32.mrf.mxu0  ;;  %v347_v10 = vsel %vm346_vm3, %v345_v8, -inf }
  0xe4   : > { %348 = vmax.xlane.f32.xlu0 %v347_v10 }
  0xe5   : > { %v342_v11 = vpop.f32.mrf.mxu0 }
  0xe7   : > { %v972_v12 = vpop.f32.mrf.mxu0 }
 0x16d   : > { %v349_v14 = vpop.xlane.xlu0 %348 }
 0x16e   : > { %v350_v15 = vsub.f32 %v345_v8, %v349_v14 }
 0x170   : > { %v351_v16 = vmul.f32 1.442695, %v350_v15 }
 0x172   : > { %1086 = vpow2.f32 %v351_v16 }
 0x17f   : > { %v1087_v17 = vpop.eup %1086 }
 0x180   : > { %v353_v18 = vsel %vm346_vm3, %v1087_v17, 0.0 }
 0x181   : > { %354 = vadd.xlane.f32.xlu0 %v353_v18 }
 0x197   : > { %410 = vrot.lane.b32.xlu0 %v934_v13, %s1183_s24  ;;  %s1378_s24 = scalar_lea.hbm %s1441_s4, %s950_s13 }
 0x20a   : > { %v355_v20 = vpop.xlane.xlu0 %354 }
 0x20b   : > { %1088 = vrcp.f32 %v355_v20 }
 0x20e   : > { %v411_v27 = vpop.permute.xlu0 %410 }
 0x218   : > { %v1089_v21 = vpop.eup %1088 }
 0x219   : > { %v357_v23 = vmul.f32 %v1089_v21, %v1087_v17 }
 0x21b   : > { %v358_v25 = vpack.c.bf16 %v357_v23, %v357_v23 }
 0x21d   : > { %360 = vst.msk [vmem:[%s1323_s7] sm:$0xf] %vm359_vm4, %v358_v25  ;;  %976 = vmatmul.mubr.msk.bf16.vlgmr.msra.gmra.mxu1 %vm346_vm3, %v358_v25 }
 0x21e   : > { %980 = vmatpush3.bf16.xpose.msra.mxu1 %v418_v24  ;;  %981 = vmatprep.mubr.msk.bf16.mxu1 %vm1181_vm0, %v1180_v0 }
 0x21f   : > { %991 = vmatprep.subr.bf16.mxu1 %v1180_v0 }
 0x225   : > { %982 = vmatmul.mubr.msk.bf16.vlgmr.msra.gmra.mxu1 %vm298_vm1, %v411_v27 }
 0x226   : > { %992 = vmatpush3.bf16.xpose.msra.mxu1 %v529_v29  ;;  %993 = vmatprep.mubr.msk.bf16.mxu1 %vm1181_vm0, %v1180_v0 }
 0x227   : > { %1003 = vmatprep.subr.bf16.mxu1 %v1180_v0 }
 0x22d   : > { %994 = vmatmul.mubr.msk.bf16.vlgmr.msra.gmra.mxu1 %vm298_vm1, %v522_v28 }
 0x22e   : > { %1004 = vmatpush3.bf16.xpose.msra.mxu1 %v640_v31  ;;  %1005 = vmatprep.mubr.msk.bf16.mxu1 %vm1181_vm0, %v1180_v0 }
 0x235   : > { %1006 = vmatmul.mubr.msk.bf16.vlgmr.msra.gmra.mxu1 %vm298_vm1, %v633_v32 }
 0x2dd   : > { %v1341_v33 = vpop.f32.mrf.mxu1 }
 0x2df   : > { %v977_v34 = vpop.f32.mrf.mxu1 }
 0x2e1   : > { %v404_v35 = vpop.f32.mrf.mxu1 }
 0x2e3   : > { %v978_v36 = vpop.f32.mrf.mxu1 }
 0x2e5   : > { %v454_v37 = vpop.f32.mrf.mxu1 }
 0x2e6   : > { %v460_v38 = vsel %vm292_vm2, %v454_v37, -1e+09 }
 0x2e7   : > { %v983_v39 = vpop.f32.mrf.mxu1  ;;  %v461_v40 = vsel %vm346_vm3, %v460_v38, -inf }
 0x2e8   : > { %462 = vmax.xlane.f32.xlu1 %v461_v40 }
 0x2e9   : > { %v457_v41 = vpop.f32.mrf.mxu1 }
 0x2eb   : > { %v984_v42 = vpop.f32.mrf.mxu1 }
 0x2ed   : > { %v565_v43 = vpop.f32.mrf.mxu1 }
 0x2ee   : > { %v571_v44 = vsel %vm292_vm2, %v565_v43, -1e+09 }
 0x2ef   : > { %v995_v45 = vpop.f32.mrf.mxu1  ;;  %v572_v46 = vsel %vm346_vm3, %v571_v44, -inf }
 0x2f0   : > { %573 = vmax.xlane.f32.xlu0 %v572_v46 }
 0x2f1   : > { %v568_v47 = vpop.f32.mrf.mxu1 }
 0x2f3   : > { %v996_v48 = vpop.f32.mrf.mxu1 }
 0x2f5   : > { %v676_v49 = vpop.f32.mrf.mxu1 }
 0x2f6   : > { %v682_v50 = vsel %vm292_vm2, %v676_v49, -1e+09 }
 0x2f7   : > { %v1007_v51 = vpop.f32.mrf.mxu1  ;;  %v683_v52 = vsel %vm346_vm3, %v682_v50, -inf }
 0x2f8   : > { %684 = vmax.xlane.f32.xlu1 %v683_v52 }
 0x2f9   : > { %v679_v53 = vpop.f32.mrf.mxu1 }
 0x2fb   : > { %v1008_v54 = vpop.f32.mrf.mxu1 }
 0x309   : > { %475 = vrot.lane.b32.xlu1 %v1289_v1, %s1186_s9 }
 0x371   : > { %v463_v55 = vpop.xlane.xlu1 %462 }
 0x372   : > { %v464_v56 = vsub.f32 %v460_v38, %v463_v55 }
 0x374   : > { %v465_v57 = vmul.f32 1.442695, %v464_v56 }
 0x376   : > { %1090 = vpow2.f32 %v465_v57 }
 0x379   : > { %v574_v58 = vpop.xlane.xlu0 %573 }
 0x37a   : > { %v575_v59 = vsub.f32 %v571_v44, %v574_v58 }
 0x37c   : > { %v576_v60 = vmul.f32 1.442695, %v575_v59 }
 0x37e   : > { %1092 = vpow2.f32 %v576_v60 }
 0x381   : > { %v685_v61 = vpop.xlane.xlu1 %684 }
 0x382   : > { %v686_v62 = vsub.f32 %v682_v50, %v685_v61 }
 0x383   : > { %v1091_v63 = vpop.eup %1090 }
 0x384   : > { %v687_v2 = vmul.f32 1.442695, %v686_v62  ;;  %v467_v3 = vsel %vm346_vm3, %v1091_v63, 0.0 }
 0x385   : > { %468 = vadd.xlane.f32.xlu0 %v467_v3  ;;  %v476_v4 = vpop.permute.xlu1 %475 }
 0x386   : > { %1094 = vpow2.f32 %v687_v2  ;;  %986 = vmatpush3.bf16.msra.mxu0 %v476_v4 }
 0x387   : > { %997 = vmatprep.subr.bf16.mxu0 %v1180_v0 }
 0x38b   : > { %v1093_v5 = vpop.eup %1092 }
 0x38c   : > { %v578_v6 = vsel %vm346_vm3, %v1093_v5, 0.0 }
 0x38d   : > { %579 = vadd.xlane.f32.xlu1 %v578_v6 }
 0x393   : > { %v1095_v7 = vpop.eup %1094 }
 0x394   : > { %v689_v8 = vsel %vm346_vm3, %v1095_v7, 0.0 }
 0x395   : > { %690 = vadd.xlane.f32.xlu0 %v689_v8 }
 0x39e   : > { %697 = vrot.lane.b32.xlu1 %v1289_v1, %s1187_s10 }
 0x3ab   : > { %586 = vrot.lane.b32.xlu0 %v1289_v1, %s1188_s11 }
 0x40e   : > { %v469_v9 = vpop.xlane.xlu0 %468 }
 0x40f   : > { %1096 = vrcp.f32 %v469_v9 }
 0x416   : > { %v580_v10 = vpop.xlane.xlu1 %579 }
 0x417   : > { %1098 = vrcp.f32 %v580_v10 }
 0x41a   : > { %v698_v18 = vpop.permute.xlu1 %697 }
 0x41c   : > { %v1097_v11 = vpop.eup %1096 }
 0x41d   : > { %v471_v12 = vmul.f32 %v1097_v11, %v1091_v63 }
 0x41e   : > { %v691_v13 = vpop.xlane.xlu0 %690 }
 0x41f   : > { %1100 = vrcp.f32 %v691_v13  ;;  %v472_v14 = vpack.c.bf16 %v471_v12, %v471_v12 }
 0x421   : > { %936 = vst.msk [vmem:[%s1323_s7 + $0x4] sm:$0xf] %vm359_vm4, %v472_v14  ;;  %988 = vmatmul.mubr.msk.bf16.vlgmr.msra.gmra.mxu0 %vm346_vm3, %v472_v14 }
 0x422   : > { %v587_v15 = vpop.permute.xlu0 %586  ;;  %999 = vmatprep.mubr.msk.bf16.mxu0 %vm1181_vm0, %v1180_v0 }
 0x423   : > { %998 = vmatpush3.bf16.msra.mxu0 %v587_v15 }
 0x424   : > { %v1099_v1 = vpop.eup %1098  ;;  %1009 = vmatprep.subr.bf16.mxu0 %v1180_v0 }
 0x425   : > { %v582_v16 = vmul.f32 %v1099_v1, %v1093_v5 }
 0x427   : > { %v583_v17 = vpack.c.bf16 %v582_v16, %v582_v16 }
 0x429   : > { %939 = vst.msk [vmem:[%s1323_s7 + $0x8] sm:$0xf] %vm359_vm4, %v583_v17  ;;  %1000 = vmatmul.mubr.msk.bf16.vlgmr.msra.gmra.mxu0 %vm346_vm3, %v583_v17 }
 0x42a   : > { %1010 = vmatpush3.bf16.msra.mxu0 %v698_v18  ;;  %1011 = vmatprep.mubr.msk.bf16.mxu0 %vm1181_vm0, %v1180_v0 }
 0x42c   : > { %v1101_v19 = vpop.eup %1100 }
 0x42d   : > { %v693_v20 = vmul.f32 %v1101_v19, %v1095_v7 }
 0x42f   : > { %v694_v21 = vpack.c.bf16 %v693_v20, %v693_v20 }
 0x431   : > { %942 = vst.msk [vmem:[%s1323_s7 + $0xc] sm:$0xf] %vm359_vm4, %v694_v21  ;;  %1012 = vmatmul.mubr.msk.bf16.vlgmr.msra.gmra.mxu0 %vm346_vm3, %v694_v21  ;;  %s1106_s7 = sshll.u32 %s1191_s6, 4  ;;  %s1107_s7 = int_to_ptr.vmem [resolvable:$false] %s1106_s7 }
 0x432   : > { %s1108_s9 = scalar_lea.vmem %s1107_s7, 512  ;;  %p1109_p1 = scmp.lt.s32.totalorder %s1380_s14, %s1107_s7 }
 0x433   : > { %p1110_p2 = scmp.lt.s32.totalorder %s1108_s9, %s1102_s18 }
 0x435   : > { %p1111_p3 = por %p1110_p2, %p1109_p1 }
 0x437   : > { %p1112_p5 = pnand %p1111_p3, %p1105_p0 }
 0x4e1   : > { %v515_v22 = vpop.f32.mrf.mxu0 }
 0x4e2   : > { %744 = vrot.lane.b32.xlu1 %v515_v22, %s1189_s12 }
 0x4e3   : > { %v989_v23 = vpop.f32.mrf.mxu0 }
 0x4e5   : > { %v518_v24 = vpop.f32.mrf.mxu0 }
 0x4e7   : > { %v990_v25 = vpop.f32.mrf.mxu0 }
 0x4e9   : > { %v626_v0 = vpop.f32.mrf.mxu0 }
 0x4ea   : > { %748 = vrot.lane.b32.xlu0 %v626_v0, %s1190_s26 }
 0x4eb   : > { %v1001_v26 = vpop.f32.mrf.mxu0 }
 0x4ec   : > { %1115 = shalt.err (!%p1112_p5)
}
 0x4ed   : > { %s1116_s5 = scalar_lea.hbm %s1378_s24, 256  ;;  %s1120_s12 = scalar_lea.hbm %s1441_s4, 512 }
 0x4ee   : > { %p1117_p6 = scmp.ne.s32.totalorder %s1378_s24, %s1116_s5  ;;  %p1121_p10 = scmp.lt.s32.totalorder %s1378_s24, %s1441_s4 }
 0x4ef   : > { %p1122_p11 = scmp.lt.s32.totalorder %s1120_s12, %s1116_s5 }
 0x4f0   : > { %p1118_p7 = pnand %p1117_p6, %p1260_p4 }
 0x4f1   : > { %p1123_p12 = por %p1122_p11, %p1121_p10 }
 0x4f2   : > { %p1119_p9 = pneg %p1118_p7 }
 0x4f4   : > { %p1124_p13 = pnand %p1123_p12, %p1119_p9 }
 0x4f6   : > { %1127 = shalt.err (!%p1124_p13)
}
 0x4f7   : > { %s1192_s22 = smov 64   ;;  %s1193_s26 = smov 4   ;;  %v629_v27 = vpop.f32.mrf.mxu0  ;;  %vm757_vm5 = vcmask 195584   ;;  %vm760_vm6 = vcmask 257024  }
 0x4f8   : > { %1015 = dma.vmem_to_hbm [thread:$0]  (%p1260_p4), %s1380_s14, 256, %s1378_s24, %s1384_s30, %s1192_s22, %s1192_s22, %s1193_s26  }
 0x4f9   : > { %v1002_v28 = vpop.f32.mrf.mxu0  ;;  %s1194_s18 = smov 24   ;;  %s284_s24 = scalar_lea.vmem %s1440_s3, %s926_s8 }
 0x4fb   : > { %v737_v29 = vpop.f32.mrf.mxu0 }
 0x4fc   : > { %752 = vrot.lane.b32.xlu1 %v737_v29, %s1194_s18 }
 0x4fd   : > { %v1013_v30 = vpop.f32.mrf.mxu0 }
 0x4ff   : > { %v740_v31 = vpop.f32.mrf.mxu0 }
 0x501   : > { %v1014_v32 = vpop.f32.mrf.mxu0 }
 0x554   : > { %v745_v34 = vpop.permute.xlu1 %744 }
 0x555   : > { %v755_v36 = vsel %vm298_vm1, %v1341_v33, %v745_v34 }
 0x55c   : > { %v749_v35 = vpop.permute.xlu0 %748 }
 0x55d   : > { %v756_v37 = vsel %vm346_vm3, %v755_v36, %v749_v35 }
 0x56e   : > { %v753_v38 = vpop.permute.xlu1 %752 }
 0x56f   : > { %v758_v39 = vsel %vm757_vm5, %v756_v37, %v753_v38 }
 0x570   : > { %v759_v40 = vpack.c.bf16 %v758_v39, %v758_v39 }
 0x572   : > { %761 = vst.msk [vmem:[%s284_s24] sm:$0xf] %vm760_vm6, %v759_v40 }
 0x573 PF: > { %p1021_p4 = scmp.ge.s32.totalorder %s1178_s20, 2  ;;  %s812_s30 = sand.u32 1, %s1158_s15  }
 0x574   : > { %s813_s6 = scalar_lea.sflag [#allocation3], %s812_s30 }
 0x575   : > { %p1018_p0 = pnand %p1021_p4, %p1267_p8 }
 0x577   : > { %p1019_p1 = pneg %p1018_p0 }
 0x579   : > { %1153 = dma.done.wait (%p1019_p1), %s813_s6, 256  }
 0x57a   : > { %1155 = vsyncadd (%p1019_p1), %s813_s6, 4294967040  ;;  %s18_s20 = sadd.s32 1, %s1178_s20   ;;  %s1444_s15 = smov %s1162_s16 }
 0x57b   : > { %p15_p2 = scmp.ge.s32.totalorder %s18_s20, 4   ;;  %s1445_s16 = smov %s1166_s17 }
 0x57c   : > { %s1446_s17 = smov %s1273_s28  ;;  %s1447_s18 = smov %s1174_s19 }
 0x57d   : > { %s1448_s19 = smov %s1450_s23  ;;  %17 = sbr.rel (!%p15_p2) target bundleno = 4 (0x4), region = 88 }
 0x582   :  { %818 = vsyncpa [#allocation3], 1 }
 0x583   :  { %820 = vsyncpa [#allocation3 + $0x1], 1 }

// kernel: decoder_layer.16
= control target key start
LH: loop header
LB: loop body
LE: loop exit
PB: predicated region body
PF: predicated region fallthrough
CT: control target
= control target key end

     0   :  { %s677_s18 = smov 0   ;;  %s746_s0 = inlined_call_operand.vmem [shape: bf16[2,8,32], index: 0, kind: input, shape index: {}]   ;;  %s747_s1 = inlined_call_operand.vmem [shape: f32[1,32], index: 1, kind: input, shape index: {}]   ;;  %s748_s2 = inlined_call_operand.vmem [shape: f32[1,32], index: 2, kind: input, shape index: {}]   ;;  %s749_s3 = inlined_call_operand.vmem [shape: bf16[3,32,64], index: 3, kind: input, shape index: {}]   ;;  %s750_s4 = inlined_call_operand.vmem [shape: f32[1,64], index: 4, kind: input, shape index: {}]   ;;  %s751_s5 = inlined_call_operand.vmem [shape: bf16[2,8,64], index: 5, kind: output, shape index: {}]  }
   0x1 LB: > { %s551_s19 = sadd.s32 4294967295, %s643_s18   ;;  %p555_p0 = scmp.ge.s32.totalorder %s643_s18, 1  ;;  %s643_s18 = sphi %s677_s18, %s15_s18  }
   0x2   : > { %p186_p1 = scmp.lt.s32.totalorder %s643_s18, 3 }
   0x4   : > { %p187_p2 = pnand %p555_p0, %p186_p1 }
   0x5   : > { %p212_p3 = scmp.lt.s32.totalorder (!%p187_p2), %s551_s19, 1 }
   0x6   : > { %190 = sbr.rel (%p187_p2) target bundleno = 560 (0x230), region = 40 }
   0xb   : > { %s755_s19 = smov (!%p212_p3, %s551_s19), 1  ;;  %vm225_vm0 = vcmask 261120   ;;  %vm254_vm1 = vcmask 253952   ;;  %vm255_vm2 = vsmask.f32 256  ;;  %v627_v13 = vld [vmem:[%s749_s3 + $0x8] sm:$0xff]  }
   0xc   : > { %s556_s20 = sshll.u32 %s755_s19, 2  ;;  %v257_v3 = vld [vmem:[#allocation2] sm:$0x1]  ;;  %vm260_vm3 = vsmask.f32 7938  ;;  %vm694_vm4 = vmand %vm254_vm1, %vm255_vm2  ;;  %v645_v14 = vmov 0.0  }
   0xd   : > { %s215_s23 = scalar_lea.vmem %s746_s0, %s556_s20  ;;  %v262_v5 = vld [vmem:[#allocation2 + $0x4] sm:$0x1]  ;;  %v258_v6 = vsel %vm694_vm4, 0, %v257_v3  ;;  %vm261_vm5 = vmand %vm254_vm1, %vm260_vm3  ;;  %601 = vmatprep.subr.bf16.mxu1 %v645_v14  ;;  %593 = vmatprep.subr.bf16.mxu0 %v645_v14  ;;  %v629_v15 = vld [vmem:[%s749_s3 + $0x18] sm:$0xff]   ;;  %vm646_vm6 = vmmov 0   ;;  %vm279_vm7 = vcmask 257024   ;;  %s219_s22 = scalar_lea.vmem %s751_s5, %s556_s20 }
   0xe   : > { %v221_v0 = vld [vmem:[%s215_s23] sm:$0xf]  ;;  %259 = vst [vmem:[#allocation2] sm:$0x1] %v258_v6  ;;  %v263_v7 = vsel %vm261_vm5, 0, %v262_v5  ;;  %602 = vmatpush3.bf16.msra.mxu1 %v627_v13  ;;  %605 = vmatprep.mubr.msk.bf16.mxu1 %vm646_vm6, %v645_v14  ;;  %v632_v17 = vld [vmem:[%s749_s3 + $0x10] sm:$0xff]   ;;  %vm280_vm8 = vmand %vm279_vm7, %vm260_vm3 }
   0xf   : > { %v222_v1 = vunpack.c.l.bf16 %v221_v0  ;;  %264 = vst [vmem:[#allocation2 + $0x4] sm:$0x1] %v263_v7  ;;  %v628_v16 = vld [vmem:[%s749_s3] sm:$0xff]   ;;  %603 = vmatprep.subr.bf16.mxu1 %v645_v14  ;;  %594 = vmatpush3.bf16.msra.mxu0 %v629_v15  ;;  %v633_v43 = vld [vmem:[%s749_s3 + $0x28] sm:$0xff]   ;;  %vm496_vm9 = vcmask 519168  }
  0x10   : > { %595 = vmatprep.subr.bf16.mxu0 %v645_v14  ;;  %597 = vmatprep.mubr.msk.bf16.mxu0 %vm646_vm6, %v645_v14  ;;  %v558_v22 = vld [vmem:[%s747_s1] ss:$0 sm:$0xff] }
  0x11   : > { %v226_v2 = vsel %vm225_vm0, %v222_v1, 0.0  ;;  %v559_v24 = vld [vmem:[%s748_s2] ss:$0 sm:$0xff] }
  0x12   : > { %227 = vadd.xlane.f32.xlu0 %v226_v2  ;;  %604 = vmatpush3.bf16.msra.mxu1 %v628_v16  ;;  %v634_v46 = vld [vmem:[%s749_s3 + $0x20] sm:$0xff]  }
  0x13   : > { %596 = vmatpush3.bf16.msra.mxu0 %v632_v17  ;;  %v580_v59 = vld [vmem:[%s750_s4] ss:$0 sm:$0xff] }
  0x14   : > { %609 = vmatprep.subr.bf16.mxu0 %v645_v14 }
  0x15   : > { %v281_v31 = vld [vmem:[#allocation2] sm:$0xf] }
  0x16   : > { %v284_v32 = vld [vmem:[#allocation2 + $0x4] sm:$0x1] }
  0x9b   : > { %v228_v8 = vpop.xlane.xlu0 %227 }
  0x9c   : > { %v230_v9 = vmul.f32 0.03125, %v228_v8 }
  0x9e   : > { %v231_v10 = vsub.f32 %v222_v1, %v230_v9 }
  0xa0   : > { %v232_v11 = vmul.f32 %v231_v10, %v231_v10 }
  0xa2   : > { %v233_v12 = vsel %vm225_vm0, %v232_v11, 0.0 }
  0xa3   : > { %234 = vadd.xlane.f32.xlu0 %v233_v12 }
 0x12c   : > { %v235_v18 = vpop.xlane.xlu0 %234 }
 0x12d   : > { %v236_v19 = vmul.f32 0.03125, %v235_v18 }
 0x12f   : > { %v237_v20 = vadd.f32 1e-05, %v236_v19 }
 0x131   : > { %635 = vrsqrt.f32 %v237_v20 }
 0x13e   : > { %v636_v21 = vpop.eup %635 }
 0x13f   : > { %v239_v23 = vmul.f32 %v636_v21, %v231_v10 }
 0x141   : > { %v246_v25 = vmul.f32 %v558_v22, %v239_v23 }
 0x143   : > { %v253_v26 = vadd.f32 %v559_v24, %v246_v25 }
 0x145   : > { %v583_v27 = vpack.c.bf16 %v253_v26, %v253_v26 }
 0x147   : > { %v270_v28 = vshrl.u32 %v583_v27, 16  ;;  %v273_v30 = vshll.u32 %v583_v27, 16 }
 0x149   : > { %v272_v29 = vrot.slane %v270_v28, 7 }
 0x14b   : > { %v275_v33 = vor.u32 %v273_v30, %v272_v29  ;;  %v276_v34 = vrot.slane %v272_v29, 4 }
 0x14d   : > { %v282_v35 = vsel %vm280_vm8, %v275_v33, %v281_v31  ;;  %v285_v36 = vsel %vm694_vm4, %v276_v34, %v284_v32 }
 0x14e   : > { %283 = vst [vmem:[#allocation2] sm:$0xf] %v282_v35  ;;  %286 = vst [vmem:[#allocation2 + $0x4] sm:$0x1] %v285_v36 }
 0x155   : > { %v287_v37 = vld [vmem:[#allocation2] sm:$0xf]  ;;  %v292_v38 = vld [vmem:[#allocation2 + $0x4] sm:$0x1] }
 0x156   : > { %v565_v39 = vcombine.low %v287_v37, %v292_v38  ;;  %606 = vmatmul.mubr.msk.bf16.vlgmr.msra.gmra.mxu1 %vm225_vm0, %v287_v37  ;;  %v420_v45 = vld [vmem:[#allocation2] sm:$0xe] }
 0x157   : > { %v576_v47 = vcombine.low %v420_v45, %v292_v38 }
 0x158   : > { %v306_v40 = vshll.u32 %v565_v39, 16  ;;  %v304_v41 = vshrl.u32 %v565_v39, 16 }
 0x159   : > { %v429_v48 = vrot.slane %v576_v47, 1 }
 0x15a   : > { %v308_v42 = vrot.slane %v306_v40, 1 }
 0x15c   : > { %v309_v44 = vor.u32 %v308_v42, %v304_v41 }
 0x15e   : > { %598 = vmatmul.mubr.msk.bf16.vlgmr.msra.gmra.mxu0 %vm225_vm0, %v309_v44 }
 0x15f   : > { %610 = vmatpush3.bf16.msra.mxu0 %v633_v43  ;;  %613 = vmatprep.mubr.msk.bf16.mxu0 %vm646_vm6, %v645_v14 }
 0x160   : > { %611 = vmatprep.subr.bf16.mxu0 %v645_v14 }
 0x163   : > { %612 = vmatpush3.bf16.msra.mxu0 %v634_v46 }
 0x166   : > { %614 = vmatmul.mubr.msk.bf16.vlgmr.msra.gmra.mxu0 %vm225_vm0, %v429_v48 }
 0x216   : > { %v414_v49 = vpop.f32.mrf.mxu1 }
 0x218   : > { %v607_v50 = vpop.f32.mrf.mxu1 }
 0x21a   : > { %v417_v51 = vpop.f32.mrf.mxu1 }
 0x21c   : > { %v608_v52 = vpop.f32.mrf.mxu1 }
 0x21e   : > { %v359_v53 = vpop.f32.mrf.mxu0 }
 0x21f   : > { %v415_v57 = vadd.f32 %v414_v49, %v359_v53 }
 0x220   : > { %v599_v54 = vpop.f32.mrf.mxu0 }
 0x222   : > { %v362_v55 = vpop.f32.mrf.mxu0 }
 0x224   : > { %v600_v56 = vpop.f32.mrf.mxu0 }
 0x226   : > { %v479_v58 = vpop.f32.mrf.mxu0 }
 0x227   : > { %v485_v60 = vadd.f32 %v479_v58, %v415_v57 }
 0x228   : > { %v615_v61 = vpop.f32.mrf.mxu0 }
 0x229   : > { %v493_v62 = vadd.f32 %v580_v59, %v485_v60 }
 0x22a   : > { %v482_v63 = vpop.f32.mrf.mxu0 }
 0x22b   : > { %v494_v0 = vmax.f32 %v493_v62, 0.0 }
 0x22c   : > { %v616_v1 = vpop.f32.mrf.mxu0 }
 0x22d   : > { %v495_v2 = vpack.c.bf16 %v494_v0, %v494_v0 }
 0x22f   : > { %497 = vst.msk [vmem:[%s219_s22] sm:$0xf] %vm496_vm9, %v495_v2 }
 0x230 PF: > { %s15_s18 = sadd.s32 1, %s643_s18  }
 0x231   : > { %p12_p4 = scmp.ge.s32.totalorder %s15_s18, 4  }
 0x233   :  { %14 = sbr.rel (!%p12_p4) target bundleno = 1 (0x1), region = 72 }

// kernel: decoder_layer.17
= control target key start
LH: loop header
LB: loop body
LE: loop exit
PB: predicated region body
PF: predicated region fallthrough
CT: control target
= control target key end

     0   :  { %9 = vsyncpa [#allocation4], 0  ;;  %s1003_s0 = inlined_call_operand.vmem [shape: bf16[2,8,64], index: 0, kind: input, shape index: {}]   ;;  %s1004_s1 = inlined_call_operand.vmem [shape: bf16[3,64,32], index: 1, kind: input, shape index: {}]   ;;  %s1005_s2 = inlined_call_operand.vmem [shape: f32[1,32], index: 2, kind: input, shape index: {}]   ;;  %s1006_s3 = inlined_call_operand.vmem [shape: bf16[2,8,32], index: 3, kind: input, shape index: {}]   ;;  %s1007_s4 = inlined_call_operand.hbm [shape: f32[2,8,32], index: 4, kind: output, shape index: {}]  }
   0x1   :  { %11 = vsyncpa [#allocation4 + $0x1], 0  ;;  %s828_s15 = smov 0   ;;  %s830_s16 = smov 0  }
   0x2   :  { %s832_s17 = smov 0   ;;  %s834_s18 = smov 0  }
   0x3 LB: > { %s849_s19 = sadd.s32 4294967295, %s798_s18   ;;  %s587_s20 = sadd.s32 4294967294, %s798_s18   ;;  %s798_s18 = sphi %s834_s18, %s1015_s18   ;;  %s794_s17 = sphi %s832_s17, %s1014_s17   ;;  %s790_s16 = sphi %s830_s16, %s1013_s16   ;;  %s786_s15 = sphi %s828_s15, %s1012_s15  }
   0x4   : > { %s853_s21 = sadd.s32 1, %s798_s18   ;;  %s118_s22 = sadd.s32 1, %s794_s17 }
   0x5   : > { %s115_s23 = ssub.s32 %s798_s18, %s853_s21  ;;  %p128_p0 = scmp.ne.s32.totalorder %s794_s17, %s790_s16 }
   0x6   : > { %p116_p1 = scmp.eq.s32.totalorder %s115_s23, 0  ;;  %p129_p2 = scmp.eq.s32.totalorder %s849_s19, 1 }
   0x7   : > { %p134_p3 = scmp.ne.s32.totalorder %s790_s16, %s786_s15  ;;  %p135_p4 = scmp.eq.s32.totalorder %s587_s20, 1 }
   0x8   : > { %s864_s24 = scalar_select %p116_p1, %s794_s17, %s118_s22  }
   0x9   : > { %p866_p5 = por %p129_p2, %p128_p0  ;;  %p870_p6 = por %p135_p4, %p134_p3 }
   0xa   : > { %p590_p7 = scmp.ge.s32.totalorder %s798_s18, 1  ;;  %p173_p8 = scmp.lt.s32.totalorder %s798_s18, 3 }
   0xc   : > { %p174_p9 = pnand %p590_p7, %p173_p8 }
   0xd   : > { %p202_p10 = scmp.lt.s32.totalorder (!%p174_p9), %s849_s19, 1  ;;  %s199_s20 = sand.u32 (!%p174_p9), 1, %s790_s16  }
   0xe   : > { %177 = sbr.rel (%p174_p9) target bundleno = 278 (0x116), region = 36  ;;  %s591_s28 = sshll.u32 (!%p174_p9), %s199_s20, 3 }
   0xf   : > { %s629_s5 = sshll.u32 (!%p174_p9), %s849_s19, 7  ;;  %s201_s6 = scalar_lea.vmem (!%p174_p9), [#allocation3], %s591_s28 }
  0x10   : > { %s516_s7 = sshll.u32 (!%p174_p9), %s201_s6, 4  ;;  %s968_s8 = scalar_lea.hbm (!%p174_p9), %s1007_s4, %s629_s5  ;;  %s517_s7 = int_to_ptr.vmem [resolvable:$true] %s516_s7 }
  0x11   : > { %s503_s10 = scalar_lea.sflag (!%p174_p9), [#allocation4], %s199_s20  ;;  %s738_s11 = scalar_lea.vmem (!%p174_p9), %s517_s7, 128 }
  0x12   : > { %p739_p11 = scmp.ne.s32.totalorder (!%p174_p9), %s517_s7, %s738_s11 }
  0x13   : > { %v724_v0 = vld [vmem:[%s1004_s1 + $0x38] sm:$0xff]   ;;  %v800_v1 = vmov 0.0   ;;  %v726_v3 = vld [vmem:[%s1004_s1 + $0x30] sm:$0xff]   ;;  %vm801_vm0 = vmmov 0   ;;  %s898_s9 = scalar_select %p202_p10, %s849_s19, 1  ;;  %vm211_vm1 = vcmask 516096  }
  0x14   : > { %647 = vmatprep.subr.bf16.mxu0 %v800_v1  ;;  %659 = vmatprep.subr.bf16.mxu1 %v800_v1  ;;  %v725_v2 = vld [vmem:[%s1004_s1 + $0x18] sm:$0xff]   ;;  %v727_v4 = vld [vmem:[%s1004_s1 + $0x10] sm:$0xff]   ;;  %v728_v5 = vld [vmem:[%s1004_s1 + $0x28] sm:$0xff]   ;;  %vm212_vm2 = vsmask.f32 256  ;;  %vm233_vm6 = vcmask 519168   ;;  %p740_p12 = pnand %p739_p11, %p866_p5 }
  0x15   : > { %648 = vmatpush3.bf16.msra.mxu0 %v724_v0  ;;  %655 = vmatprep.mubr.msk.bf16.mxu0 %vm801_vm0, %v800_v1  ;;  %s592_s12 = sshll.u32 %s898_s9, 2  ;;  %v729_v6 = vld [vmem:[%s1004_s1 + $0x8] sm:$0xff]   ;;  %v730_v7 = vld [vmem:[%s1004_s1 + $0x20] sm:$0xff]   ;;  %vm217_vm3 = vsmask.f32 7938  ;;  %vm918_vm4 = vmand %vm211_vm1, %vm212_vm2  ;;  %vm296_vm8 = vcmask 523264  }
  0x16   : > { %660 = vmatpush3.bf16.msra.mxu1 %v725_v2  ;;  %649 = vmatprep.subr.bf16.mxu0 %v800_v1  ;;  %s205_s23 = scalar_lea.vmem %s1003_s0, %s592_s12  ;;  %v214_v8 = vld [vmem:[#allocation2] sm:$0x1]  ;;  %v219_v10 = vld [vmem:[#allocation2 + $0x4] sm:$0x1]  ;;  %vm218_vm5 = vmand %vm211_vm1, %vm217_vm3  ;;  %s209_s27 = scalar_lea.vmem %s1006_s3, %s592_s12  ;;  %vm500_vm9 = vcmask 261120  }
  0x17   : > { %661 = vmatprep.subr.bf16.mxu1 %v800_v1  ;;  %667 = vmatprep.mubr.msk.bf16.mxu1 %vm801_vm0, %v800_v1  ;;  %v222_v11 = vld [vmem:[%s205_s23] sm:$0xf]  ;;  %v215_v13 = vsel %vm918_vm4, 0, %v214_v8  ;;  %v220_v15 = vsel %vm218_vm5, 0, %v219_v10  ;;  %vm234_vm7 = vmand %vm233_vm6, %vm217_vm3  ;;  %v733_v30 = vld [vmem:[%s1004_s1 + $0x58] sm:$0xff]   ;;  %p741_p13 = pneg %p740_p12  ;;  %s802_s19 = smov [#allocation3]  }
  0x18   : > { %v731_v12 = vld [vmem:[%s1004_s1] sm:$0xff]   ;;  %v224_v14 = vshrl.u32 %v222_v11, 16  ;;  %216 = vst [vmem:[#allocation2] sm:$0x1] %v215_v13  ;;  %v227_v16 = vshll.u32 %v222_v11, 16  ;;  %v734_v32 = vld [vmem:[%s1004_s1 + $0x50] sm:$0xff]  }
  0x19   : > { %650 = vmatpush3.bf16.msra.mxu0 %v726_v3  ;;  %221 = vst [vmem:[#allocation2 + $0x4] sm:$0x1] %v220_v15  ;;  %v735_v33 = vld [vmem:[%s1004_s1 + $0x48] sm:$0xff]   ;;  %v736_v36 = vld [vmem:[%s1004_s1 + $0x40] sm:$0xff]   ;;  %s742_s13 = sshll.u32 %s802_s19, 4  ;;  %s743_s13 = int_to_ptr.vmem [resolvable:$false] %s742_s13 }
  0x1a   : > { %662 = vmatpush3.bf16.msra.mxu1 %v727_v4  ;;  %651 = vmatprep.subr.bf16.mxu0 %v800_v1  ;;  %v226_v17 = vrot.slane %v224_v14, 7  ;;  %v497_v46 = vld [vmem:[%s209_s27] sm:$0xf]  ;;  %s744_s14 = scalar_lea.vmem %s743_s13, 256  ;;  %p745_p0 = scmp.lt.s32.totalorder %s517_s7, %s743_s13 }
  0x1b   : > { %663 = vmatprep.subr.bf16.mxu1 %v800_v1  ;;  %v627_v49 = vld [vmem:[%s1005_s2] ss:$0 sm:$0xff]  ;;  %v498_v51 = vunpack.c.l.bf16 %v497_v46  ;;  %p746_p1 = scmp.lt.s32.totalorder %s744_s14, %s738_s11 }
  0x1c   : > { %v229_v18 = vor.u32 %v227_v16, %v226_v17  ;;  %v230_v19 = vrot.slane %v226_v17, 4 }
  0x1d   : > { %652 = vmatpush3.bf16.msra.mxu0 %v728_v5  ;;  %p747_p2 = por %p746_p1, %p745_p0 }
  0x1e   : > { %664 = vmatpush3.bf16.msra.mxu1 %v729_v6  ;;  %653 = vmatprep.subr.bf16.mxu0 %v800_v1 }
  0x1f   : > { %665 = vmatprep.subr.bf16.mxu1 %v800_v1  ;;  %v235_v20 = vld [vmem:[#allocation2] sm:$0xf]  ;;  %p748_p3 = pnand %p747_p2, %p741_p13 }
  0x20   : > { %v236_v21 = vsel %vm234_vm7, %v229_v18, %v235_v20  ;;  %v238_v22 = vld [vmem:[#allocation2 + $0x4] sm:$0x1] }
  0x21   : > { %654 = vmatpush3.bf16.msra.mxu0 %v730_v7  ;;  %237 = vst [vmem:[#allocation2] sm:$0xf] %v236_v21  ;;  %v239_v23 = vsel %vm918_vm4, %v230_v19, %v238_v22 }
  0x22   : > { %666 = vmatpush3.bf16.msra.mxu1 %v731_v12  ;;  %671 = vmatprep.subr.bf16.mxu0 %v800_v1  ;;  %240 = vst [vmem:[#allocation2 + $0x4] sm:$0x1] %v239_v23 }
  0x28   : > { %v241_v24 = vld [vmem:[#allocation2] sm:$0xf] }
  0x29   : > { %v250_v25 = vld [vmem:[#allocation2 + $0x4] sm:$0x1]  ;;  %668 = vmatmul.mubr.msk.bf16.vlgmr.msra.gmra.mxu1 %vm296_vm8, %v241_v24  ;;  %v407_v34 = vld [vmem:[#allocation2] sm:$0xe] }
  0x2a   : > { %v602_v26 = vcombine.low %v241_v24, %v250_v25  ;;  %v621_v35 = vcombine.low %v407_v34, %v250_v25 }
  0x2c   : > { %v266_v27 = vshrl.u32 %v602_v26, 16  ;;  %v268_v28 = vshll.u32 %v602_v26, 16  ;;  %v420_v37 = vrot.slane %v621_v35, 1 }
  0x2e   : > { %v270_v29 = vrot.slane %v268_v28, 1 }
  0x30   : > { %v271_v31 = vor.u32 %v270_v29, %v266_v27 }
  0x32   : > { %656 = vmatmul.mubr.msk.bf16.vlgmr.msra.gmra.mxu0 %vm296_vm8, %v271_v31 }
  0x33   : > { %672 = vmatpush3.bf16.msra.mxu0 %v733_v30  ;;  %679 = vmatprep.mubr.msk.bf16.mxu0 %vm801_vm0, %v800_v1 }
  0x34   : > { %673 = vmatprep.subr.bf16.mxu0 %v800_v1 }
  0x37   : > { %674 = vmatpush3.bf16.msra.mxu0 %v734_v32 }
  0x38   : > { %675 = vmatprep.subr.bf16.mxu0 %v800_v1 }
  0x3b   : > { %676 = vmatpush3.bf16.msra.mxu0 %v735_v33 }
  0x3c   : > { %677 = vmatprep.subr.bf16.mxu0 %v800_v1 }
  0x3f   : > { %678 = vmatpush3.bf16.msra.mxu0 %v736_v36 }
  0x42   : > { %680 = vmatmul.mubr.msk.bf16.vlgmr.msra.gmra.mxu0 %vm296_vm8, %v420_v37 }
  0xe9   : > { %v401_v38 = vpop.f32.mrf.mxu1 }
  0xeb   : > { %v669_v39 = vpop.f32.mrf.mxu1 }
  0xed   : > { %v404_v40 = vpop.f32.mrf.mxu1 }
  0xef   : > { %v670_v41 = vpop.f32.mrf.mxu1 }
  0xf2   : > { %v334_v42 = vpop.f32.mrf.mxu0 }
  0xf3   : > { %v402_v47 = vadd.f32 %v401_v38, %v334_v42 }
  0xf4   : > { %v657_v43 = vpop.f32.mrf.mxu0 }
  0xf6   : > { %v337_v44 = vpop.f32.mrf.mxu0 }
  0xf8   : > { %v658_v45 = vpop.f32.mrf.mxu0 }
 0x102   : > { %v482_v48 = vpop.f32.mrf.mxu0 }
 0x103   : > { %v488_v50 = vadd.f32 %v482_v48, %v402_v47 }
 0x104   : > { %v681_v52 = vpop.f32.mrf.mxu0 }
 0x105   : > { %v496_v53 = vadd.f32 %v627_v49, %v488_v50 }
 0x106   : > { %v485_v54 = vpop.f32.mrf.mxu0 }
 0x107   : > { %v499_v55 = vadd.f32 %v498_v51, %v496_v53 }
 0x108   : > { %v682_v56 = vpop.f32.mrf.mxu0 }
 0x109   : > { %501 = vst.msk [vmem:[%s201_s6] sm:$0xff] %vm500_vm9, %v499_v55 }
 0x10a   : > { %751 = shalt.err (!%p748_p3)
}
 0x10b   : > { %s752_s22 = scalar_lea.hbm %s968_s8, 128  ;;  %s756_s27 = scalar_lea.hbm %s1007_s4, 256 }
 0x10c   : > { %p753_p4 = scmp.ne.s32.totalorder %s968_s8, %s752_s22  ;;  %p757_p9 = scmp.lt.s32.totalorder %s968_s8, %s1007_s4 }
 0x10d   : > { %p758_p10 = scmp.lt.s32.totalorder %s756_s27, %s752_s22 }
 0x10e   : > { %p754_p7 = pnand %p753_p4, %p866_p5 }
 0x10f   : > { %p759_p11 = por %p758_p10, %p757_p9 }
 0x110   : > { %p755_p8 = pneg %p754_p7 }
 0x112   : > { %p760_p12 = pnand %p759_p11, %p755_p8 }
 0x114   : > { %763 = shalt.err (!%p760_p12)
}
 0x115   : > { %683 = dma.vmem_to_hbm [thread:$0]  (%p866_p5), %s517_s7, 128, %s968_s8, %s503_s10  }
 0x116 PF: > { %p689_p13 = scmp.ge.s32.totalorder %s798_s18, 2  ;;  %s528_s30 = sand.u32 1, %s786_s15  }
 0x117   : > { %s529_s5 = scalar_lea.sflag [#allocation4], %s528_s30 }
 0x118   : > { %p686_p0 = pnand %p689_p13, %p870_p6 }
 0x11a   : > { %p687_p1 = pneg %p686_p0 }
 0x11c   : > { %781 = dma.done.wait (%p687_p1), %s529_s5, 128  }
 0x11d   : > { %783 = vsyncadd (%p687_p1), %s529_s5, 4294967168  ;;  %p14_p2 = scmp.ge.s32.totalorder %s853_s21, 4   ;;  %s1012_s15 = smov %s790_s16 }
 0x11e   : > { %s1013_s16 = smov %s794_s17  ;;  %s1014_s17 = smov %s864_s24 }
 0x11f   : > { %s1015_s18 = smov %s853_s21  ;;  %16 = sbr.rel (!%p14_p2) target bundleno = 3 (0x3), region = 76 }
 0x124   :  { %534 = vsyncpa [#allocation4], 1 }
 0x125   :  { %536 = vsyncpa [#allocation4 + $0x1], 1 }

</bundles_post_ra>
